<compile_context>
chip_gen: v5e
topology: v5e:2x2
jax: 0.10.0
libtpu: 0.0.40
codegen_flags: <defaults>
</compile_context>

<pallas_src>
import math

import jax
import jax.numpy as jnp
from jax.experimental import pallas as pl
from jax.experimental.pallas import tpu as pltpu

PADDING_IDX = 1  # esm alphabet padding_idx


def _layer_norm(x, gamma, beta, eps=1e-5):
    mu = jnp.mean(x, axis=-1, keepdims=True)
    var = jnp.mean(jnp.square(x - mu), axis=-1, keepdims=True)
    return (x - mu) * jax.lax.rsqrt(var + eps) * gamma + beta


def _gelu(x):
    # TODO(synk): real ESM2 uses exact erf-GELU; tanh approximation used here.
    return 0.5 * x * (1.0 + jnp.tanh(0.7978845608028654 * (x + 0.044715 * x * x * x)))


def esm2_stack_kernel(mask_ref, emb_ref, ln_ref, wqkv_ref, bqkv_ref,
                      wo_ref, bo_ref, w1_ref, b1_ref, w2_ref, b2_ref,
                      fln_ref, out_ref, x_ref):
    l = pl.program_id(1)
    num_layers = pl.num_programs(1)

    BT, S, D = emb_ref.shape
    H = wo_ref.shape[1]
    hd = wo_ref.shape[2]
    N = BT * S
    scale = 1.0 / math.sqrt(hd)

    # Initialize the residual stream from the (bf16) embeddings once per batch tile.
    @pl.when(l == 0)
    def _():
        x_ref[...] = emb_ref[...].reshape(N, D).astype(jnp.float32)

    x = x_ref[...]                                    # (N, D) f32 residual stream
    ln = ln_ref[0]                                    # (4, D) f32: g1, b1, g2, b2
    mask3 = mask_ref[...].reshape(BT, 1, S)           # (BT, 1, S) f32 {0,1}
    kbias = (mask3 - 1.0) * 1e9                       # 0 at real tokens, -1e9 at padding

    # ---------- self-attention block (pre-LN, key-padding masked) ----------
    xln = _layer_norm(x, ln[0:1, :], ln[1:2, :]).astype(jnp.bfloat16)
    attn = jnp.zeros((N, D), jnp.float32)
    for h in range(H):                                # per-head weights pre-split host-side
        qh = (jnp.dot(xln, wqkv_ref[0, h],
                      preferred_element_type=jnp.float32) + bqkv_ref[0, h]
              ).reshape(BT, S, hd)
        kh = (jnp.dot(xln, wqkv_ref[0, H + h],
                      preferred_element_type=jnp.float32) + bqkv_ref[0, H + h]
              ).reshape(BT, S, hd)
        vh = (jnp.dot(xln, wqkv_ref[0, 2 * H + h],
                      preferred_element_type=jnp.float32) + bqkv_ref[0, 2 * H + h]
              ).reshape(BT, S, hd)

        sc = jnp.einsum('bqd,bkd->bqk', qh.astype(jnp.bfloat16), kh.astype(jnp.bfloat16),
                        preferred_element_type=jnp.float32) * scale + kbias
        sc = sc - jnp.max(sc, axis=-1, keepdims=True)
        p = jnp.exp(sc)
        p = p * pl.reciprocal(jnp.sum(p, axis=-1, keepdims=True), approx=True)

        ctx = jnp.einsum('bqk,bkd->bqd', p.astype(jnp.bfloat16), vh.astype(jnp.bfloat16),
                         preferred_element_type=jnp.float32)          # (BT, S, hd)
        # accumulate the output projection head-by-head (no concatenate)
        attn = attn + jnp.dot(ctx.reshape(N, hd).astype(jnp.bfloat16), wo_ref[0, h],
                              preferred_element_type=jnp.float32)
    x = x + attn + bo_ref[0]

    # ---------- feed-forward block (pre-LN) ----------
    xln2 = _layer_norm(x, ln[2:3, :], ln[3:4, :]).astype(jnp.bfloat16)
    h1 = jnp.dot(xln2, w1_ref[0], preferred_element_type=jnp.float32) + b1_ref[0]
    h1 = _gelu(h1).astype(jnp.bfloat16)
    x = x + jnp.dot(h1, w2_ref[0], preferred_element_type=jnp.float32) + b2_ref[0]

    x_ref[...] = x

    # ---------- final LN + masked mean pool (pool_mode == 2) ----------
    @pl.when(l == num_layers - 1)
    def _():
        fln = fln_ref[...]                                            # (2, D)
        xf = _layer_norm(x, fln[0:1, :], fln[1:2, :]).reshape(BT, S, D)
        denom = jnp.maximum(jnp.sum(mask3, axis=-1), 1.0)             # (BT, 1), clamp >= 1
        pooled = jnp.einsum('bqs,bsd->bqd', mask3, xf,
                            preferred_element_type=jnp.float32).reshape(BT, D)
        out_ref[...] = pooled * pl.reciprocal(denom, approx=True)


def esm2_representation_finetune(tokens, params, *, num_layers, num_heads, b_tile=8):
    """Forward pass. tokens: (B, S) int32. Returns graph_feature (B, D) f32."""
    B, S = tokens.shape
    D = params["wo"].shape[-1]
    F = params["w1"].shape[-1]
    H = num_heads
    hd = D // H
    assert B % b_tile == 0, "batch must be a multiple of the batch tile"

    # Host-side glue: embedding lookup (ESM2 embed_scale == 1.0) and padding mask.
    # TODO(synk): rotary position embeddings / token-dropout of real ESM2 omitted.
    emb = jnp.take(params["embed"], tokens, axis=0).astype(jnp.bfloat16)   # (B, S, D)
    mask = (tokens != PADDING_IDX).astype(jnp.float32)                     # (B, S)

    grid = (B // b_tile, num_layers)   # (batch tiles, layers); layers streamed

    out = pl.pallas_call(
        esm2_stack_kernel,
        out_shape=jax.ShapeDtypeStruct((B, D), jnp.float32),
        grid=grid,
        in_specs=[
            pl.BlockSpec((b_tile, S), lambda b, l: (b, 0)),                   # mask
            pl.BlockSpec((b_tile, S, D), lambda b, l: (b, 0, 0)),             # embeddings
            pl.BlockSpec((1, 4, D), lambda b, l: (l, 0, 0)),                  # LN params
            pl.BlockSpec((1, 3 * H, D, hd), lambda b, l: (l, 0, 0, 0)),       # Wq|Wk|Wv per head (bf16)
            pl.BlockSpec((1, 3 * H, 1, hd), lambda b, l: (l, 0, 0, 0)),       # q/k/v biases per head
            pl.BlockSpec((1, H, hd, D), lambda b, l: (l, 0, 0, 0)),           # Wo per head (bf16)
            pl.BlockSpec((1, 1, D), lambda b, l: (l, 0, 0)),                  # attn out bias
            pl.BlockSpec((1, D, F), lambda b, l: (l, 0, 0)),                  # FFN W1 (bf16)
            pl.BlockSpec((1, 1, F), lambda b, l: (l, 0, 0)),                  # FFN b1
            pl.BlockSpec((1, F, D), lambda b, l: (l, 0, 0)),                  # FFN W2 (bf16)
            pl.BlockSpec((1, 1, D), lambda b, l: (l, 0, 0)),                  # FFN b2
            pl.BlockSpec((2, D), lambda b, l: (0, 0)),                        # final LN
        ],
        out_specs=pl.BlockSpec((b_tile, D), lambda b, l: (b, 0)),             # lane-dense slab
        scratch_shapes=[pltpu.VMEM((b_tile * S, D), jnp.float32)],            # residual carry
        compiler_params=pltpu.CompilerParams(
            dimension_semantics=("parallel", "arbitrary"),
            vmem_limit_bytes=64 * 1024 * 1024),
    )(mask, emb, params["ln"], params["wqkv"], params["bqkv"], params["wo"],
      params["bo"], params["w1"], params["b1"], params["w2"], params["b2"],
      params["fln"])
    return out


def init_params(key, *, vocab, D, F, L, H):
    """Deterministic synthetic ESM2-style parameters, head-major / bf16 weights."""
    hd = D // H
    k0, k1, k2, k3, k4 = jax.random.split(key, 5)
    p = {
        "embed": jax.random.normal(k0, (vocab, D), jnp.float32) * 0.02,
        # q/k/v projection weights, split per head: [q_0..q_{H-1}, k_*, v_*]
        "wqkv": (jax.random.normal(k1, (L, 3 * H, D, hd), jnp.float32)
                 / math.sqrt(D)).astype(jnp.bfloat16),
        "bqkv": jnp.zeros((L, 3 * H, 1, hd), jnp.float32),
        # output projection, split per head along its input dim
        "wo": (jax.random.normal(k2, (L, H, hd, D), jnp.float32)
               / math.sqrt(D)).astype(jnp.bfloat16),
        "bo": jnp.zeros((L, 1, D), jnp.float32),
        "w1": (jax.random.normal(k3, (L, D, F), jnp.float32)
               / math.sqrt(D)).astype(jnp.bfloat16),
        "b1": jnp.zeros((L, 1, F), jnp.float32),
        "w2": (jax.random.normal(k4, (L, F, D), jnp.float32)
               / math.sqrt(F)).astype(jnp.bfloat16),
        "b2": jnp.zeros((L, 1, D), jnp.float32),
    }
    ln = jnp.zeros((L, 4, D), jnp.float32)
    ln = ln.at[:, 0].set(1.0).at[:, 2].set(1.0)            # gammas = 1, betas = 0
    p["ln"] = ln
    p["fln"] = jnp.stack([jnp.ones((D,), jnp.float32),
                          jnp.zeros((D,), jnp.float32)])   # (2, D)
    return p


if __name__ == "__main__":
    B, S, D, F, L, H = 16, 8, 32, 64, 2, 2
    B_TILE = 8
    VOCAB = 33  # ESM2 alphabet size

    key = jax.random.PRNGKey(0)
    kp, kt = jax.random.split(key)
    params = init_params(kp, vocab=VOCAB, D=D, F=F, L=L, H=H)

    tokens = jax.random.randint(kt, (B, S), 4, 24, dtype=jnp.int32)
    # exercise the padding mask: partial padding and one fully-padded row
    tokens = tokens.at[1, 5:].set(PADDING_IDX)
    tokens = tokens.at[3, :].set(PADDING_IDX)

    graph_feature = esm2_representation_finetune(
        tokens, params, num_layers=L, num_heads=H, b_tile=B_TILE)
    jax.block_until_ready(graph_feature)

    assert graph_feature.shape == (B, D) and graph_feature.dtype == jnp.float32
    assert bool(jnp.all(jnp.isfinite(graph_feature)))
    print("KERNEL_OK")
</pallas_src>

<mosaic_0001>
module attributes {stable_mosaic.version = 11 : i64} {
  func.func @esm2_stack_kernel(%arg0: i32, %arg1: i32, %arg2: memref<8x8xf32, #tpu.memory_space<vmem>>, %arg3: memref<8x8x32xbf16, #tpu.memory_space<vmem>>, %arg4: memref<1x4x32xf32, #tpu.memory_space<vmem>>, %arg5: memref<1x6x32x16xbf16, #tpu.memory_space<vmem>>, %arg6: memref<1x6x1x16xf32, #tpu.memory_space<vmem>>, %arg7: memref<1x2x16x32xbf16, #tpu.memory_space<vmem>>, %arg8: memref<1x1x32xf32, #tpu.memory_space<vmem>>, %arg9: memref<1x32x64xbf16, #tpu.memory_space<vmem>>, %arg10: memref<1x1x64xf32, #tpu.memory_space<vmem>>, %arg11: memref<1x64x32xbf16, #tpu.memory_space<vmem>>, %arg12: memref<1x1x32xf32, #tpu.memory_space<vmem>>, %arg13: memref<2x32xf32, #tpu.memory_space<vmem>>, %arg14: memref<8x32xf32, #tpu.memory_space<vmem>>, %arg15: memref<64x32xf32, #tpu.memory_space<vmem>>) attributes {dimension_semantics = [#tpu.dimension_semantics<parallel>, #tpu.dimension_semantics<arbitrary>], iteration_bounds = array<i64: 2, 2>, scalar_prefetch = 0 : i64, scratch_operands = 1 : i64, tpu.core_type = #tpu.core_type<tc>, window_params = [{transform_indices = @transform_0, window_bounds = array<i64: 8, 8>}, {transform_indices = @transform_1, window_bounds = array<i64: 8, 8, 32>}, {transform_indices = @transform_2, window_bounds = array<i64: 1, 4, 32>}, {transform_indices = @transform_3, window_bounds = array<i64: 1, 6, 32, 16>}, {transform_indices = @transform_4, window_bounds = array<i64: 1, 6, 1, 16>}, {transform_indices = @transform_5, window_bounds = array<i64: 1, 2, 16, 32>}, {transform_indices = @transform_6, window_bounds = array<i64: 1, 1, 32>}, {transform_indices = @transform_7, window_bounds = array<i64: 1, 32, 64>}, {transform_indices = @transform_8, window_bounds = array<i64: 1, 1, 64>}, {transform_indices = @transform_9, window_bounds = array<i64: 1, 64, 32>}, {transform_indices = @transform_10, window_bounds = array<i64: 1, 1, 32>}, {pipeline_mode = #tpu.pipeline_mode<synchronous>, transform_indices = @transform_11, window_bounds = array<i64: 2, 32>}, {transform_indices = @transform_12, window_bounds = array<i64: 8, 32>}]} {
    %c0_i32 = arith.constant 0 : i32
    %0 = arith.cmpi eq, %arg1, %c0_i32 : i32
    %1 = arith.extui %0 : i1 to i32
    %c0_i32_0 = arith.constant 0 : i32
    %2 = arith.cmpi ne, %1, %c0_i32_0 : i32
    scf.if %2 {
      %c0_112 = arith.constant 0 : index
      %c0_113 = arith.constant 0 : index
      %c0_114 = arith.constant 0 : index
      %201 = vector.load %arg3[%c0_112, %c0_113, %c0_114] : memref<8x8x32xbf16, #tpu.memory_space<vmem>>, vector<8x8x32xbf16>
      %202 = vector.shape_cast %201 : vector<8x8x32xbf16> to vector<64x32xbf16>
      %203 = arith.extf %202 : vector<64x32xbf16> to vector<64x32xf32>
      %c0_115 = arith.constant 0 : index
      %c0_116 = arith.constant 0 : index
      %204 = vector.load %arg15[%c0_115, %c0_116] : memref<64x32xf32, #tpu.memory_space<vmem>>, vector<64x32xf32>
      tpu.vector_store %arg15[%c0_115, %c0_116], %203 {strides = array<i32>} : memref<64x32xf32, #tpu.memory_space<vmem>>, vector<64x32xf32>,
    } else {
    }
    %c0 = arith.constant 0 : index
    %c0_1 = arith.constant 0 : index
    %3 = vector.load %arg15[%c0, %c0_1] : memref<64x32xf32, #tpu.memory_space<vmem>>, vector<64x32xf32>
    %c0_2 = arith.constant 0 : index
    %c0_3 = arith.constant 0 : index
    %c0_4 = arith.constant 0 : index
    %4 = vector.load %arg4[%c0_2, %c0_3, %c0_4] : memref<1x4x32xf32, #tpu.memory_space<vmem>>, vector<1x4x32xf32>
    %5 = vector.shape_cast %4 : vector<1x4x32xf32> to vector<4x32xf32>
    %c0_5 = arith.constant 0 : index
    %c0_6 = arith.constant 0 : index
    %6 = vector.load %arg2[%c0_5, %c0_6] : memref<8x8xf32, #tpu.memory_space<vmem>>, vector<8x8xf32>
    %7 = vector.shape_cast %6 : vector<8x8xf32> to vector<8x1x8xf32>
    %cst = arith.constant 1.000000e+00 : f32
    %8 = vector.broadcast %cst : f32 to vector<8x1x8xf32>
    %9 = arith.subf %7, %8 : vector<8x1x8xf32>
    %cst_7 = arith.constant 1.000000e+09 : f32
    %10 = vector.broadcast %cst_7 : f32 to vector<8x1x8xf32>
    %11 = arith.mulf %9, %10 : vector<8x1x8xf32>
    %12 = vector.extract_strided_slice %5 {offsets = [0, 0], sizes = [1, 32], strides = [1, 1]} : vector<4x32xf32> to vector<1x32xf32>
    %13 = vector.extract_strided_slice %5 {offsets = [1, 0], sizes = [1, 32], strides = [1, 1]} : vector<4x32xf32> to vector<1x32xf32>
    %cst_8 = arith.constant dense<0.000000e+00> : vector<64xf32>
    %14 = vector.multi_reduction <add>, %3, %cst_8 [1] : vector<64x32xf32> to vector<64xf32>
    %15 = vector.shape_cast %14 : vector<64xf32> to vector<64x1xf32>
    %cst_9 = arith.constant 3.200000e+01 : f32
    %16 = vector.broadcast %cst_9 : f32 to vector<64x1xf32>
    %17 = arith.divf %15, %16 : vector<64x1xf32>
    %18 = vector.broadcast %17 : vector<64x1xf32> to vector<64x32xf32>
    %19 = arith.subf %3, %18 : vector<64x32xf32>
    %20 = arith.mulf %19, %19 : vector<64x32xf32>
    %cst_10 = arith.constant dense<0.000000e+00> : vector<64xf32>
    %21 = vector.multi_reduction <add>, %20, %cst_10 [1] : vector<64x32xf32> to vector<64xf32>
    %22 = vector.shape_cast %21 : vector<64xf32> to vector<64x1xf32>
    %cst_11 = arith.constant 3.200000e+01 : f32
    %23 = vector.broadcast %cst_11 : f32 to vector<64x1xf32>
    %24 = arith.divf %22, %23 : vector<64x1xf32>
    %25 = vector.broadcast %17 : vector<64x1xf32> to vector<64x32xf32>
    %26 = arith.subf %3, %25 : vector<64x32xf32>
    %cst_12 = arith.constant 9.99999974E-6 : f32
    %27 = vector.broadcast %cst_12 : f32 to vector<64x1xf32>
    %28 = arith.addf %24, %27 : vector<64x1xf32>
    %29 = math.rsqrt %28 : vector<64x1xf32>
    %30 = vector.broadcast %29 : vector<64x1xf32> to vector<64x32xf32>
    %31 = arith.mulf %26, %30 : vector<64x32xf32>
    %32 = vector.broadcast %12 : vector<1x32xf32> to vector<64x32xf32>
    %33 = arith.mulf %31, %32 : vector<64x32xf32>
    %34 = vector.broadcast %13 : vector<1x32xf32> to vector<64x32xf32>
    %35 = arith.addf %33, %34 : vector<64x32xf32>
    %36 = arith.truncf %35 : vector<64x32xf32> to vector<64x32xbf16>
    %cst_13 = arith.constant 0.000000e+00 : f32
    %37 = vector.broadcast %cst_13 : f32 to vector<64x32xf32>
    %c0_14 = arith.constant 0 : index
    %c0_15 = arith.constant 0 : index
    %c0_16 = arith.constant 0 : index
    %c0_17 = arith.constant 0 : index
    %38 = vector.load %arg5[%c0_14, %c0_15, %c0_16, %c0_17] : memref<1x6x32x16xbf16, #tpu.memory_space<vmem>>, vector<1x1x32x16xbf16>
    %39 = vector.shape_cast %38 : vector<1x1x32x16xbf16> to vector<32x16xbf16>
    %cst_18 = arith.constant dense<0.000000e+00> : vector<64x16xf32>
    %40 = tpu.matmul %36, %39, %cst_18 {dimension_numbers = #tpu.dot_dimension_numbers<[1], [0], [0], [1], [0, 0, 1, 1], [], []>} : vector<64x32xbf16>, vector<32x16xbf16>, vector<64x16xf32> -> vector<64x16xf32>
    %c0_19 = arith.constant 0 : index
    %c0_20 = arith.constant 0 : index
    %c0_21 = arith.constant 0 : index
    %c0_22 = arith.constant 0 : index
    %41 = vector.load %arg6[%c0_19, %c0_20, %c0_21, %c0_22] : memref<1x6x1x16xf32, #tpu.memory_space<vmem>>, vector<1x1x1x16xf32>
    %42 = vector.shape_cast %41 : vector<1x1x1x16xf32> to vector<1x16xf32>
    %43 = vector.broadcast %42 : vector<1x16xf32> to vector<64x16xf32>
    %44 = arith.addf %40, %43 : vector<64x16xf32>
    %45 = vector.shape_cast %44 : vector<64x16xf32> to vector<8x8x16xf32>
    %c0_23 = arith.constant 0 : index
    %c2 = arith.constant 2 : index
    %c0_24 = arith.constant 0 : index
    %c0_25 = arith.constant 0 : index
    %46 = vector.load %arg5[%c0_23, %c2, %c0_24, %c0_25] : memref<1x6x32x16xbf16, #tpu.memory_space<vmem>>, vector<1x1x32x16xbf16>
    %47 = vector.shape_cast %46 : vector<1x1x32x16xbf16> to vector<32x16xbf16>
    %cst_26 = arith.constant dense<0.000000e+00> : vector<64x16xf32>
    %48 = tpu.matmul %36, %47, %cst_26 {dimension_numbers = #tpu.dot_dimension_numbers<[1], [0], [0], [1], [0, 0, 1, 1], [], []>} : vector<64x32xbf16>, vector<32x16xbf16>, vector<64x16xf32> -> vector<64x16xf32>
    %c0_27 = arith.constant 0 : index
    %c2_28 = arith.constant 2 : index
    %c0_29 = arith.constant 0 : index
    %c0_30 = arith.constant 0 : index
    %49 = vector.load %arg6[%c0_27, %c2_28, %c0_29, %c0_30] : memref<1x6x1x16xf32, #tpu.memory_space<vmem>>, vector<1x1x1x16xf32>
    %50 = vector.shape_cast %49 : vector<1x1x1x16xf32> to vector<1x16xf32>
    %51 = vector.broadcast %50 : vector<1x16xf32> to vector<64x16xf32>
    %52 = arith.addf %48, %51 : vector<64x16xf32>
    %53 = vector.shape_cast %52 : vector<64x16xf32> to vector<8x8x16xf32>
    %c0_31 = arith.constant 0 : index
    %c4 = arith.constant 4 : index
    %c0_32 = arith.constant 0 : index
    %c0_33 = arith.constant 0 : index
    %54 = vector.load %arg5[%c0_31, %c4, %c0_32, %c0_33] : memref<1x6x32x16xbf16, #tpu.memory_space<vmem>>, vector<1x1x32x16xbf16>
    %55 = vector.shape_cast %54 : vector<1x1x32x16xbf16> to vector<32x16xbf16>
    %cst_34 = arith.constant dense<0.000000e+00> : vector<64x16xf32>
    %56 = tpu.matmul %36, %55, %cst_34 {dimension_numbers = #tpu.dot_dimension_numbers<[1], [0], [0], [1], [0, 0, 1, 1], [], []>} : vector<64x32xbf16>, vector<32x16xbf16>, vector<64x16xf32> -> vector<64x16xf32>
    %c0_35 = arith.constant 0 : index
    %c4_36 = arith.constant 4 : index
    %c0_37 = arith.constant 0 : index
    %c0_38 = arith.constant 0 : index
    %57 = vector.load %arg6[%c0_35, %c4_36, %c0_37, %c0_38] : memref<1x6x1x16xf32, #tpu.memory_space<vmem>>, vector<1x1x1x16xf32>
    %58 = vector.shape_cast %57 : vector<1x1x1x16xf32> to vector<1x16xf32>
    %59 = vector.broadcast %58 : vector<1x16xf32> to vector<64x16xf32>
    %60 = arith.addf %56, %59 : vector<64x16xf32>
    %61 = vector.shape_cast %60 : vector<64x16xf32> to vector<8x8x16xf32>
    %62 = arith.truncf %45 : vector<8x8x16xf32> to vector<8x8x16xbf16>
    %63 = arith.truncf %53 : vector<8x8x16xf32> to vector<8x8x16xbf16>
    "tpu.trace_start"() <{level = 10 : i32, message = "bqd,bkd->bqk"}> : () -> ()
    %cst_39 = arith.constant dense<0.000000e+00> : vector<8x8x8xf32>
    %64 = tpu.matmul %62, %63, %cst_39 {dimension_numbers = #tpu.dot_dimension_numbers<[2], [2], [1], [1], [0, 0, 0, 1, 1, 1], [0], [0]>} : vector<8x8x16xbf16>, vector<8x8x16xbf16>, vector<8x8x8xf32> -> vector<8x8x8xf32>
    "tpu.trace_stop"() : () -> ()
    %cst_40 = arith.constant 2.500000e-01 : f32
    %65 = vector.broadcast %cst_40 : f32 to vector<8x8x8xf32>
    %66 = arith.mulf %64, %65 : vector<8x8x8xf32>
    %67 = vector.broadcast %11 : vector<8x1x8xf32> to vector<8x8x8xf32>
    %68 = arith.addf %66, %67 : vector<8x8x8xf32>
    %cst_41 = arith.constant dense<0xFF800000> : vector<8x8xf32>
    %69 = vector.multi_reduction <maximumf>, %68, %cst_41 [2] : vector<8x8x8xf32> to vector<8x8xf32>
    %70 = vector.shape_cast %69 : vector<8x8xf32> to vector<8x8x1xf32>
    %71 = vector.broadcast %70 : vector<8x8x1xf32> to vector<8x8x8xf32>
    %72 = arith.subf %68, %71 : vector<8x8x8xf32>
    %73 = math.exp %72 : vector<8x8x8xf32>
    %cst_42 = arith.constant dense<0.000000e+00> : vector<8x8xf32>
    %74 = vector.multi_reduction <add>, %73, %cst_42 [2] : vector<8x8x8xf32> to vector<8x8xf32>
    %75 = vector.shape_cast %74 : vector<8x8xf32> to vector<8x8x1xf32>
    %76 = tpu.reciprocal %75 {approx = true} : vector<8x8x1xf32> -> vector<8x8x1xf32>
    %77 = vector.broadcast %76 : vector<8x8x1xf32> to vector<8x8x8xf32>
    %78 = arith.mulf %73, %77 : vector<8x8x8xf32>
    %79 = arith.truncf %78 : vector<8x8x8xf32> to vector<8x8x8xbf16>
    %80 = arith.truncf %61 : vector<8x8x16xf32> to vector<8x8x16xbf16>
    "tpu.trace_start"() <{level = 10 : i32, message = "bqk,bkd->bqd"}> : () -> ()
    %cst_43 = arith.constant dense<0.000000e+00> : vector<8x8x16xf32>
    %81 = tpu.matmul %79, %80, %cst_43 {dimension_numbers = #tpu.dot_dimension_numbers<[2], [1], [1], [2], [0, 0, 0, 1, 1, 2], [0], [0]>} : vector<8x8x8xbf16>, vector<8x8x16xbf16>, vector<8x8x16xf32> -> vector<8x8x16xf32>
    "tpu.trace_stop"() : () -> ()
    %82 = vector.shape_cast %81 : vector<8x8x16xf32> to vector<64x16xf32>
    %83 = arith.truncf %82 : vector<64x16xf32> to vector<64x16xbf16>
    %c0_44 = arith.constant 0 : index
    %c0_45 = arith.constant 0 : index
    %c0_46 = arith.constant 0 : index
    %c0_47 = arith.constant 0 : index
    %84 = vector.load %arg7[%c0_44, %c0_45, %c0_46, %c0_47] : memref<1x2x16x32xbf16, #tpu.memory_space<vmem>>, vector<1x1x16x32xbf16>
    %85 = vector.shape_cast %84 : vector<1x1x16x32xbf16> to vector<16x32xbf16>
    %cst_48 = arith.constant dense<0.000000e+00> : vector<64x32xf32>
    %86 = tpu.matmul %83, %85, %cst_48 {dimension_numbers = #tpu.dot_dimension_numbers<[1], [0], [0], [1], [0, 0, 1, 1], [], []>} : vector<64x16xbf16>, vector<16x32xbf16>, vector<64x32xf32> -> vector<64x32xf32>
    %87 = arith.addf %37, %86 : vector<64x32xf32>
    %c0_49 = arith.constant 0 : index
    %c1 = arith.constant 1 : index
    %c0_50 = arith.constant 0 : index
    %c0_51 = arith.constant 0 : index
    %88 = vector.load %arg5[%c0_49, %c1, %c0_50, %c0_51] : memref<1x6x32x16xbf16, #tpu.memory_space<vmem>>, vector<1x1x32x16xbf16>
    %89 = vector.shape_cast %88 : vector<1x1x32x16xbf16> to vector<32x16xbf16>
    %cst_52 = arith.constant dense<0.000000e+00> : vector<64x16xf32>
    %90 = tpu.matmul %36, %89, %cst_52 {dimension_numbers = #tpu.dot_dimension_numbers<[1], [0], [0], [1], [0, 0, 1, 1], [], []>} : vector<64x32xbf16>, vector<32x16xbf16>, vector<64x16xf32> -> vector<64x16xf32>
    %c0_53 = arith.constant 0 : index
    %c1_54 = arith.constant 1 : index
    %c0_55 = arith.constant 0 : index
    %c0_56 = arith.constant 0 : index
    %91 = vector.load %arg6[%c0_53, %c1_54, %c0_55, %c0_56] : memref<1x6x1x16xf32, #tpu.memory_space<vmem>>, vector<1x1x1x16xf32>
    %92 = vector.shape_cast %91 : vector<1x1x1x16xf32> to vector<1x16xf32>
    %93 = vector.broadcast %92 : vector<1x16xf32> to vector<64x16xf32>
    %94 = arith.addf %90, %93 : vector<64x16xf32>
    %95 = vector.shape_cast %94 : vector<64x16xf32> to vector<8x8x16xf32>
    %c0_57 = arith.constant 0 : index
    %c3 = arith.constant 3 : index
    %c0_58 = arith.constant 0 : index
    %c0_59 = arith.constant 0 : index
    %96 = vector.load %arg5[%c0_57, %c3, %c0_58, %c0_59] : memref<1x6x32x16xbf16, #tpu.memory_space<vmem>>, vector<1x1x32x16xbf16>
    %97 = vector.shape_cast %96 : vector<1x1x32x16xbf16> to vector<32x16xbf16>
    %cst_60 = arith.constant dense<0.000000e+00> : vector<64x16xf32>
    %98 = tpu.matmul %36, %97, %cst_60 {dimension_numbers = #tpu.dot_dimension_numbers<[1], [0], [0], [1], [0, 0, 1, 1], [], []>} : vector<64x32xbf16>, vector<32x16xbf16>, vector<64x16xf32> -> vector<64x16xf32>
    %c0_61 = arith.constant 0 : index
    %c3_62 = arith.constant 3 : index
    %c0_63 = arith.constant 0 : index
    %c0_64 = arith.constant 0 : index
    %99 = vector.load %arg6[%c0_61, %c3_62, %c0_63, %c0_64] : memref<1x6x1x16xf32, #tpu.memory_space<vmem>>, vector<1x1x1x16xf32>
    %100 = vector.shape_cast %99 : vector<1x1x1x16xf32> to vector<1x16xf32>
    %101 = vector.broadcast %100 : vector<1x16xf32> to vector<64x16xf32>
    %102 = arith.addf %98, %101 : vector<64x16xf32>
    %103 = vector.shape_cast %102 : vector<64x16xf32> to vector<8x8x16xf32>
    %c0_65 = arith.constant 0 : index
    %c5 = arith.constant 5 : index
    %c0_66 = arith.constant 0 : index
    %c0_67 = arith.constant 0 : index
    %104 = vector.load %arg5[%c0_65, %c5, %c0_66, %c0_67] : memref<1x6x32x16xbf16, #tpu.memory_space<vmem>>, vector<1x1x32x16xbf16>
    %105 = vector.shape_cast %104 : vector<1x1x32x16xbf16> to vector<32x16xbf16>
    %cst_68 = arith.constant dense<0.000000e+00> : vector<64x16xf32>
    %106 = tpu.matmul %36, %105, %cst_68 {dimension_numbers = #tpu.dot_dimension_numbers<[1], [0], [0], [1], [0, 0, 1, 1], [], []>} : vector<64x32xbf16>, vector<32x16xbf16>, vector<64x16xf32> -> vector<64x16xf32>
    %c0_69 = arith.constant 0 : index
    %c5_70 = arith.constant 5 : index
    %c0_71 = arith.constant 0 : index
    %c0_72 = arith.constant 0 : index
    %107 = vector.load %arg6[%c0_69, %c5_70, %c0_71, %c0_72] : memref<1x6x1x16xf32, #tpu.memory_space<vmem>>, vector<1x1x1x16xf32>
    %108 = vector.shape_cast %107 : vector<1x1x1x16xf32> to vector<1x16xf32>
    %109 = vector.broadcast %108 : vector<1x16xf32> to vector<64x16xf32>
    %110 = arith.addf %106, %109 : vector<64x16xf32>
    %111 = vector.shape_cast %110 : vector<64x16xf32> to vector<8x8x16xf32>
    %112 = arith.truncf %95 : vector<8x8x16xf32> to vector<8x8x16xbf16>
    %113 = arith.truncf %103 : vector<8x8x16xf32> to vector<8x8x16xbf16>
    "tpu.trace_start"() <{level = 10 : i32, message = "bqd,bkd->bqk"}> : () -> ()
    %cst_73 = arith.constant dense<0.000000e+00> : vector<8x8x8xf32>
    %114 = tpu.matmul %112, %113, %cst_73 {dimension_numbers = #tpu.dot_dimension_numbers<[2], [2], [1], [1], [0, 0, 0, 1, 1, 1], [0], [0]>} : vector<8x8x16xbf16>, vector<8x8x16xbf16>, vector<8x8x8xf32> -> vector<8x8x8xf32>
    "tpu.trace_stop"() : () -> ()
    %cst_74 = arith.constant 2.500000e-01 : f32
    %115 = vector.broadcast %cst_74 : f32 to vector<8x8x8xf32>
    %116 = arith.mulf %114, %115 : vector<8x8x8xf32>
    %117 = vector.broadcast %11 : vector<8x1x8xf32> to vector<8x8x8xf32>
    %118 = arith.addf %116, %117 : vector<8x8x8xf32>
    %cst_75 = arith.constant dense<0xFF800000> : vector<8x8xf32>
    %119 = vector.multi_reduction <maximumf>, %118, %cst_75 [2] : vector<8x8x8xf32> to vector<8x8xf32>
    %120 = vector.shape_cast %119 : vector<8x8xf32> to vector<8x8x1xf32>
    %121 = vector.broadcast %120 : vector<8x8x1xf32> to vector<8x8x8xf32>
    %122 = arith.subf %118, %121 : vector<8x8x8xf32>
    %123 = math.exp %122 : vector<8x8x8xf32>
    %cst_76 = arith.constant dense<0.000000e+00> : vector<8x8xf32>
    %124 = vector.multi_reduction <add>, %123, %cst_76 [2] : vector<8x8x8xf32> to vector<8x8xf32>
    %125 = vector.shape_cast %124 : vector<8x8xf32> to vector<8x8x1xf32>
    %126 = tpu.reciprocal %125 {approx = true} : vector<8x8x1xf32> -> vector<8x8x1xf32>
    %127 = vector.broadcast %126 : vector<8x8x1xf32> to vector<8x8x8xf32>
    %128 = arith.mulf %123, %127 : vector<8x8x8xf32>
    %129 = arith.truncf %128 : vector<8x8x8xf32> to vector<8x8x8xbf16>
    %130 = arith.truncf %111 : vector<8x8x16xf32> to vector<8x8x16xbf16>
    "tpu.trace_start"() <{level = 10 : i32, message = "bqk,bkd->bqd"}> : () -> ()
    %cst_77 = arith.constant dense<0.000000e+00> : vector<8x8x16xf32>
    %131 = tpu.matmul %129, %130, %cst_77 {dimension_numbers = #tpu.dot_dimension_numbers<[2], [1], [1], [2], [0, 0, 0, 1, 1, 2], [0], [0]>} : vector<8x8x8xbf16>, vector<8x8x16xbf16>, vector<8x8x16xf32> -> vector<8x8x16xf32>
    "tpu.trace_stop"() : () -> ()
    %132 = vector.shape_cast %131 : vector<8x8x16xf32> to vector<64x16xf32>
    %133 = arith.truncf %132 : vector<64x16xf32> to vector<64x16xbf16>
    %c0_78 = arith.constant 0 : index
    %c1_79 = arith.constant 1 : index
    %c0_80 = arith.constant 0 : index
    %c0_81 = arith.constant 0 : index
    %134 = vector.load %arg7[%c0_78, %c1_79, %c0_80, %c0_81] : memref<1x2x16x32xbf16, #tpu.memory_space<vmem>>, vector<1x1x16x32xbf16>
    %135 = vector.shape_cast %134 : vector<1x1x16x32xbf16> to vector<16x32xbf16>
    %cst_82 = arith.constant dense<0.000000e+00> : vector<64x32xf32>
    %136 = tpu.matmul %133, %135, %cst_82 {dimension_numbers = #tpu.dot_dimension_numbers<[1], [0], [0], [1], [0, 0, 1, 1], [], []>} : vector<64x16xbf16>, vector<16x32xbf16>, vector<64x32xf32> -> vector<64x32xf32>
    %137 = arith.addf %87, %136 : vector<64x32xf32>
    %138 = arith.addf %3, %137 : vector<64x32xf32>
    %c0_83 = arith.constant 0 : index
    %c0_84 = arith.constant 0 : index
    %c0_85 = arith.constant 0 : index
    %139 = vector.load %arg8[%c0_83, %c0_84, %c0_85] : memref<1x1x32xf32, #tpu.memory_space<vmem>>, vector<1x1x32xf32>
    %140 = vector.shape_cast %139 : vector<1x1x32xf32> to vector<1x32xf32>
    %141 = vector.broadcast %140 : vector<1x32xf32> to vector<64x32xf32>
    %142 = arith.addf %138, %141 : vector<64x32xf32>
    %143 = vector.extract_strided_slice %5 {offsets = [2, 0], sizes = [1, 32], strides = [1, 1]} : vector<4x32xf32> to vector<1x32xf32>
    %144 = vector.extract_strided_slice %5 {offsets = [3, 0], sizes = [1, 32], strides = [1, 1]} : vector<4x32xf32> to vector<1x32xf32>
    %cst_86 = arith.constant dense<0.000000e+00> : vector<64xf32>
    %145 = vector.multi_reduction <add>, %142, %cst_86 [1] : vector<64x32xf32> to vector<64xf32>
    %146 = vector.shape_cast %145 : vector<64xf32> to vector<64x1xf32>
    %cst_87 = arith.constant 3.200000e+01 : f32
    %147 = vector.broadcast %cst_87 : f32 to vector<64x1xf32>
    %148 = arith.divf %146, %147 : vector<64x1xf32>
    %149 = vector.broadcast %148 : vector<64x1xf32> to vector<64x32xf32>
    %150 = arith.subf %142, %149 : vector<64x32xf32>
    %151 = arith.mulf %150, %150 : vector<64x32xf32>
    %cst_88 = arith.constant dense<0.000000e+00> : vector<64xf32>
    %152 = vector.multi_reduction <add>, %151, %cst_88 [1] : vector<64x32xf32> to vector<64xf32>
    %153 = vector.shape_cast %152 : vector<64xf32> to vector<64x1xf32>
    %cst_89 = arith.constant 3.200000e+01 : f32
    %154 = vector.broadcast %cst_89 : f32 to vector<64x1xf32>
    %155 = arith.divf %153, %154 : vector<64x1xf32>
    %156 = vector.broadcast %148 : vector<64x1xf32> to vector<64x32xf32>
    %157 = arith.subf %142, %156 : vector<64x32xf32>
    %cst_90 = arith.constant 9.99999974E-6 : f32
    %158 = vector.broadcast %cst_90 : f32 to vector<64x1xf32>
    %159 = arith.addf %155, %158 : vector<64x1xf32>
    %160 = math.rsqrt %159 : vector<64x1xf32>
    %161 = vector.broadcast %160 : vector<64x1xf32> to vector<64x32xf32>
    %162 = arith.mulf %157, %161 : vector<64x32xf32>
    %163 = vector.broadcast %143 : vector<1x32xf32> to vector<64x32xf32>
    %164 = arith.mulf %162, %163 : vector<64x32xf32>
    %165 = vector.broadcast %144 : vector<1x32xf32> to vector<64x32xf32>
    %166 = arith.addf %164, %165 : vector<64x32xf32>
    %167 = arith.truncf %166 : vector<64x32xf32> to vector<64x32xbf16>
    %c0_91 = arith.constant 0 : index
    %c0_92 = arith.constant 0 : index
    %c0_93 = arith.constant 0 : index
    %168 = vector.load %arg9[%c0_91, %c0_92, %c0_93] : memref<1x32x64xbf16, #tpu.memory_space<vmem>>, vector<1x32x64xbf16>
    %169 = vector.shape_cast %168 : vector<1x32x64xbf16> to vector<32x64xbf16>
    %cst_94 = arith.constant dense<0.000000e+00> : vector<64x64xf32>
    %170 = tpu.matmul %167, %169, %cst_94 {dimension_numbers = #tpu.dot_dimension_numbers<[1], [0], [0], [1], [0, 0, 1, 1], [], []>} : vector<64x32xbf16>, vector<32x64xbf16>, vector<64x64xf32> -> vector<64x64xf32>
    %c0_95 = arith.constant 0 : index
    %c0_96 = arith.constant 0 : index
    %c0_97 = arith.constant 0 : index
    %171 = vector.load %arg10[%c0_95, %c0_96, %c0_97] : memref<1x1x64xf32, #tpu.memory_space<vmem>>, vector<1x1x64xf32>
    %172 = vector.shape_cast %171 : vector<1x1x64xf32> to vector<1x64xf32>
    %173 = vector.broadcast %172 : vector<1x64xf32> to vector<64x64xf32>
    %174 = arith.addf %170, %173 : vector<64x64xf32>
    %cst_98 = arith.constant 5.000000e-01 : f32
    %175 = vector.broadcast %cst_98 : f32 to vector<64x64xf32>
    %176 = arith.mulf %175, %174 : vector<64x64xf32>
    %cst_99 = arith.constant 4.471500e-02 : f32
    %177 = vector.broadcast %cst_99 : f32 to vector<64x64xf32>
    %178 = arith.mulf %177, %174 : vector<64x64xf32>
    %179 = arith.mulf %178, %174 : vector<64x64xf32>
    %180 = arith.mulf %179, %174 : vector<64x64xf32>
    %181 = arith.addf %174, %180 : vector<64x64xf32>
    %cst_100 = arith.constant 0.797884583 : f32
    %182 = vector.broadcast %cst_100 : f32 to vector<64x64xf32>
    %183 = arith.mulf %182, %181 : vector<64x64xf32>
    %184 = math.tanh %183 : vector<64x64xf32>
    %cst_101 = arith.constant 1.000000e+00 : f32
    %185 = vector.broadcast %cst_101 : f32 to vector<64x64xf32>
    %186 = arith.addf %185, %184 : vector<64x64xf32>
    %187 = arith.mulf %176, %186 : vector<64x64xf32>
    %188 = arith.truncf %187 : vector<64x64xf32> to vector<64x64xbf16>
    %c0_102 = arith.constant 0 : index
    %c0_103 = arith.constant 0 : index
    %c0_104 = arith.constant 0 : index
    %189 = vector.load %arg11[%c0_102, %c0_103, %c0_104] : memref<1x64x32xbf16, #tpu.memory_space<vmem>>, vector<1x64x32xbf16>
    %190 = vector.shape_cast %189 : vector<1x64x32xbf16> to vector<64x32xbf16>
    %cst_105 = arith.constant dense<0.000000e+00> : vector<64x32xf32>
    %191 = tpu.matmul %188, %190, %cst_105 {dimension_numbers = #tpu.dot_dimension_numbers<[1], [0], [0], [1], [0, 0, 1, 1], [], []>} : vector<64x64xbf16>, vector<64x32xbf16>, vector<64x32xf32> -> vector<64x32xf32>
    %192 = arith.addf %142, %191 : vector<64x32xf32>
    %c0_106 = arith.constant 0 : index
    %c0_107 = arith.constant 0 : index
    %c0_108 = arith.constant 0 : index
    %193 = vector.load %arg12[%c0_106, %c0_107, %c0_108] : memref<1x1x32xf32, #tpu.memory_space<vmem>>, vector<1x1x32xf32>
    %194 = vector.shape_cast %193 : vector<1x1x32xf32> to vector<1x32xf32>
    %195 = vector.broadcast %194 : vector<1x32xf32> to vector<64x32xf32>
    %196 = arith.addf %192, %195 : vector<64x32xf32>
    %c0_109 = arith.constant 0 : index
    %c0_110 = arith.constant 0 : index
    %197 = vector.load %arg15[%c0_109, %c0_110] : memref<64x32xf32, #tpu.memory_space<vmem>>, vector<64x32xf32>
    tpu.vector_store %arg15[%c0_109, %c0_110], %196 {strides = array<i32>} : memref<64x32xf32, #tpu.memory_space<vmem>>, vector<64x32xf32>,
    %c1_i32 = arith.constant 1 : i32
    %198 = arith.cmpi eq, %arg1, %c1_i32 : i32
    %199 = arith.extui %198 : i1 to i32
    %c0_i32_111 = arith.constant 0 : i32
    %200 = arith.cmpi ne, %199, %c0_i32_111 : i32
    scf.if %200 {
      %c0_112 = arith.constant 0 : index
      %c0_113 = arith.constant 0 : index
      %201 = vector.load %arg13[%c0_112, %c0_113] : memref<2x32xf32, #tpu.memory_space<vmem>>, vector<2x32xf32>
      %202 = vector.extract_strided_slice %201 {offsets = [0, 0], sizes = [1, 32], strides = [1, 1]} : vector<2x32xf32> to vector<1x32xf32>
      %203 = vector.extract_strided_slice %201 {offsets = [1, 0], sizes = [1, 32], strides = [1, 1]} : vector<2x32xf32> to vector<1x32xf32>
      %cst_114 = arith.constant dense<0.000000e+00> : vector<64xf32>
      %204 = vector.multi_reduction <add>, %196, %cst_114 [1] : vector<64x32xf32> to vector<64xf32>
      %205 = vector.shape_cast %204 : vector<64xf32> to vector<64x1xf32>
      %cst_115 = arith.constant 3.200000e+01 : f32
      %206 = vector.broadcast %cst_115 : f32 to vector<64x1xf32>
      %207 = arith.divf %205, %206 : vector<64x1xf32>
      %208 = vector.broadcast %207 : vector<64x1xf32> to vector<64x32xf32>
      %209 = arith.subf %196, %208 : vector<64x32xf32>
      %210 = arith.mulf %209, %209 : vector<64x32xf32>
      %cst_116 = arith.constant dense<0.000000e+00> : vector<64xf32>
      %211 = vector.multi_reduction <add>, %210, %cst_116 [1] : vector<64x32xf32> to vector<64xf32>
      %212 = vector.shape_cast %211 : vector<64xf32> to vector<64x1xf32>
      %cst_117 = arith.constant 3.200000e+01 : f32
      %213 = vector.broadcast %cst_117 : f32 to vector<64x1xf32>
      %214 = arith.divf %212, %213 : vector<64x1xf32>
      %215 = vector.broadcast %207 : vector<64x1xf32> to vector<64x32xf32>
      %216 = arith.subf %196, %215 : vector<64x32xf32>
      %cst_118 = arith.constant 9.99999974E-6 : f32
      %217 = vector.broadcast %cst_118 : f32 to vector<64x1xf32>
      %218 = arith.addf %214, %217 : vector<64x1xf32>
      %219 = math.rsqrt %218 : vector<64x1xf32>
      %220 = vector.broadcast %219 : vector<64x1xf32> to vector<64x32xf32>
      %221 = arith.mulf %216, %220 : vector<64x32xf32>
      %222 = vector.broadcast %202 : vector<1x32xf32> to vector<64x32xf32>
      %223 = arith.mulf %221, %222 : vector<64x32xf32>
      %224 = vector.broadcast %203 : vector<1x32xf32> to vector<64x32xf32>
      %225 = arith.addf %223, %224 : vector<64x32xf32>
      %226 = vector.shape_cast %225 : vector<64x32xf32> to vector<8x8x32xf32>
      %cst_119 = arith.constant dense<0.000000e+00> : vector<8x1xf32>
      %227 = vector.multi_reduction <add>, %7, %cst_119 [2] : vector<8x1x8xf32> to vector<8x1xf32>
      %cst_120 = arith.constant 1.000000e+00 : f32
      %228 = vector.broadcast %cst_120 : f32 to vector<8x1xf32>
      %229 = arith.maximumf %227, %228 : vector<8x1xf32>
      "tpu.trace_start"() <{level = 10 : i32, message = "bqs,bsd->bqd"}> : () -> ()
      %cst_121 = arith.constant dense<0.000000e+00> : vector<8x1x32xf32>
      %230 = tpu.matmul %7, %226, %cst_121 {dimension_numbers = #tpu.dot_dimension_numbers<[2], [1], [1], [2], [0, 0, 0, 1, 1, 2], [0], [0]>} : vector<8x1x8xf32>, vector<8x8x32xf32>, vector<8x1x32xf32> -> vector<8x1x32xf32>
      "tpu.trace_stop"() : () -> ()
      %231 = vector.shape_cast %230 : vector<8x1x32xf32> to vector<8x32xf32>
      %232 = tpu.reciprocal %229 {approx = true} : vector<8x1xf32> -> vector<8x1xf32>
      %233 = vector.broadcast %232 : vector<8x1xf32> to vector<8x32xf32>
      %234 = arith.mulf %231, %233 : vector<8x32xf32>
      %c0_122 = arith.constant 0 : index
      %c0_123 = arith.constant 0 : index
      %235 = vector.load %arg14[%c0_122, %c0_123] : memref<8x32xf32, #tpu.memory_space<vmem>>, vector<8x32xf32>
      tpu.vector_store %arg14[%c0_122, %c0_123], %234 {strides = array<i32>} : memref<8x32xf32, #tpu.memory_space<vmem>>, vector<8x32xf32>,
    } else {
    }
    return
  }
  func.func @transform_0(%arg0: i32, %arg1: i32) -> (i32, i32) {
    %c0_i32 = arith.constant 0 : i32
    %c0_i32_0 = arith.constant 0 : i32
    return %arg0, %c0_i32 : i32, i32
  }
  func.func @transform_1(%arg0: i32, %arg1: i32) -> (i32, i32, i32) {
    %c0_i32 = arith.constant 0 : i32
    %c0_i32_0 = arith.constant 0 : i32
    %c0_i32_1 = arith.constant 0 : i32
    return %arg0, %c0_i32, %c0_i32_0 : i32, i32, i32
  }
  func.func @transform_2(%arg0: i32, %arg1: i32) -> (i32, i32, i32) {
    %c0_i32 = arith.constant 0 : i32
    %c0_i32_0 = arith.constant 0 : i32
    %c0_i32_1 = arith.constant 0 : i32
    return %arg1, %c0_i32, %c0_i32_0 : i32, i32, i32
  }
  func.func @transform_3(%arg0: i32, %arg1: i32) -> (i32, i32, i32, i32) {
    %c0_i32 = arith.constant 0 : i32
    %c0_i32_0 = arith.constant 0 : i32
    %c0_i32_1 = arith.constant 0 : i32
    %c0_i32_2 = arith.constant 0 : i32
    return %arg1, %c0_i32, %c0_i32_0, %c0_i32_1 : i32, i32, i32, i32
  }
  func.func @transform_4(%arg0: i32, %arg1: i32) -> (i32, i32, i32, i32) {
    %c0_i32 = arith.constant 0 : i32
    %c0_i32_0 = arith.constant 0 : i32
    %c0_i32_1 = arith.constant 0 : i32
    %c0_i32_2 = arith.constant 0 : i32
    return %arg1, %c0_i32, %c0_i32_0, %c0_i32_1 : i32, i32, i32, i32
  }
  func.func @transform_5(%arg0: i32, %arg1: i32) -> (i32, i32, i32, i32) {
    %c0_i32 = arith.constant 0 : i32
    %c0_i32_0 = arith.constant 0 : i32
    %c0_i32_1 = arith.constant 0 : i32
    %c0_i32_2 = arith.constant 0 : i32
    return %arg1, %c0_i32, %c0_i32_0, %c0_i32_1 : i32, i32, i32, i32
  }
  func.func @transform_6(%arg0: i32, %arg1: i32) -> (i32, i32, i32) {
    %c0_i32 = arith.constant 0 : i32
    %c0_i32_0 = arith.constant 0 : i32
    %c0_i32_1 = arith.constant 0 : i32
    return %arg1, %c0_i32, %c0_i32_0 : i32, i32, i32
  }
  func.func @transform_7(%arg0: i32, %arg1: i32) -> (i32, i32, i32) {
    %c0_i32 = arith.constant 0 : i32
    %c0_i32_0 = arith.constant 0 : i32
    %c0_i32_1 = arith.constant 0 : i32
    return %arg1, %c0_i32, %c0_i32_0 : i32, i32, i32
  }
  func.func @transform_8(%arg0: i32, %arg1: i32) -> (i32, i32, i32) {
    %c0_i32 = arith.constant 0 : i32
    %c0_i32_0 = arith.constant 0 : i32
    %c0_i32_1 = arith.constant 0 : i32
    return %arg1, %c0_i32, %c0_i32_0 : i32, i32, i32
  }
  func.func @transform_9(%arg0: i32, %arg1: i32) -> (i32, i32, i32) {
    %c0_i32 = arith.constant 0 : i32
    %c0_i32_0 = arith.constant 0 : i32
    %c0_i32_1 = arith.constant 0 : i32
    return %arg1, %c0_i32, %c0_i32_0 : i32, i32, i32
  }
  func.func @transform_10(%arg0: i32, %arg1: i32) -> (i32, i32, i32) {
    %c0_i32 = arith.constant 0 : i32
    %c0_i32_0 = arith.constant 0 : i32
    %c0_i32_1 = arith.constant 0 : i32
    return %arg1, %c0_i32, %c0_i32_0 : i32, i32, i32
  }
  func.func @transform_11(%arg0: i32, %arg1: i32) -> (i32, i32) {
    %c0_i32 = arith.constant 0 : i32
    %c0_i32_0 = arith.constant 0 : i32
    %c0_i32_1 = arith.constant 0 : i32
    return %c0_i32, %c0_i32_0 : i32, i32
  }
  func.func @transform_12(%arg0: i32, %arg1: i32) -> (i32, i32) {
    %c0_i32 = arith.constant 0 : i32
    %c0_i32_0 = arith.constant 0 : i32
    return %arg0, %c0_i32 : i32, i32
  }
}

</mosaic_0001>

<bundles_post_ra>
// kernel: tpu_custom_call.1
= control target key start
LH: loop header
LB: loop body
LE: loop exit
PB: predicated region body
PF: predicated region fallthrough
CT: control target
= control target key end

     0   :  { %s5128_s0 = inlined_call_operand.vmem [shape: f32[16,8], index: 0, kind: input, shape index: {}]   ;;  %s5129_s1 = inlined_call_operand.vmem [shape: bf16[16,8,32], index: 1, kind: input, shape index: {}]   ;;  %s5130_s2 = inlined_call_operand.vmem [shape: f32[2,4,32], index: 2, kind: input, shape index: {}]   ;;  %s5131_s3 = inlined_call_operand.vmem [shape: bf16[2,6,32,16], index: 3, kind: input, shape index: {}]   ;;  %s5132_s4 = inlined_call_operand.vmem [shape: f32[2,6,1,16], index: 4, kind: input, shape index: {}]   ;;  %s5133_s5 = inlined_call_operand.vmem [shape: bf16[2,2,16,32], index: 5, kind: input, shape index: {}]   ;;  %s5134_s6 = inlined_call_operand.vmem [shape: f32[2,1,32], index: 6, kind: input, shape index: {}]   ;;  %s5135_s7 = inlined_call_operand.vmem [shape: bf16[2,32,64], index: 7, kind: input, shape index: {}]   ;;  %s5136_s8 = inlined_call_operand.vmem [shape: f32[2,1,64], index: 8, kind: input, shape index: {}]   ;;  %s5137_s9 = inlined_call_operand.vmem [shape: bf16[2,64,32], index: 9, kind: input, shape index: {}]   ;;  %s5138_s10 = inlined_call_operand.vmem [shape: f32[2,1,32], index: 10, kind: input, shape index: {}]   ;;  %s5139_s11 = inlined_call_operand.vmem [shape: f32[2,32], index: 11, kind: input, shape index: {}]   ;;  %s5140_s12 = inlined_call_operand.hbm [shape: f32[16,32], index: 12, kind: output, shape index: {}]  }
   0x1   :  { %5155 = sst [smem:[#allocation18_spill]] %s5128_s0 }
   0x2   :  { %5156 = sst [smem:[#allocation19_spill]] %s5129_s1 }
   0x3   :  { %5157 = sst [smem:[#allocation20_spill]] %s5130_s2 }
   0x4   :  { %5158 = sst [smem:[#allocation21_spill]] %s5131_s3 }
   0x5   :  { %5159 = sst [smem:[#allocation22_spill]] %s5132_s4 }
   0x6   :  { %5160 = sst [smem:[#allocation23_spill]] %s5139_s11 }
   0x7   :  { %5161 = sst [smem:[#allocation24_spill]] %s5140_s12 }
   0x8   :  { %17 = vsyncpa [#allocation4], 0 }
   0x9   :  { %19 = vsyncpa [#allocation4 + $0x1], 0  ;;  %s3983_s21 = smov 0   ;;  %s3985_s22 = smov 0  }
   0xa   :  { %s3987_s23 = smov 0   ;;  %s3989_s24 = smov 0  }
   0xb   :  { %s3991_s25 = smov 0   ;;  %s3993_s26 = smov 0  }
   0xc   :  { %s3995_s27 = smov 0   ;;  %s3997_s28 = smov 0  }
   0xd LB: > { %5162 = sst [smem:[#allocation6_spill]] %s3887_s21  ;;  %s3323_s29 = sadd.s32 4294967295, %s3915_s28   ;;  %s3915_s28 = sphi %s3997_s28, %s25_s28   ;;  %s3911_s27 = sphi %s3995_s27, %s5200_s27   ;;  %s3907_s26 = sphi %s3993_s26, %s5199_s26   ;;  %s3903_s25 = sphi %s3991_s25, %s5198_s25   ;;  %s3899_s24 = sphi %s3989_s24, %s5197_s24   ;;  %s3895_s23 = sphi %s3987_s23, %s5196_s23   ;;  %s3891_s22 = sphi %s3985_s22, %s5195_s22   ;;  %s3887_s21 = sphi %s3983_s21, %s5194_s21  }
   0xe   : > { %5163 = sst [smem:[#allocation7_spill]] %s3891_s22  ;;  %s3324_s30 = sadd.s32 4294967294, %s3915_s28  }
   0xf   : > { %5164 = sst [smem:[#allocation8_spill]] %s3895_s23  ;;  %s34_s13 = sadd.s32 1, %s3907_s26 }
  0x10   : > { %5165 = sst [smem:[#allocation9_spill]] %s3907_s26  ;;  %p35_p0 = scmp.ge.s32.totalorder %s34_s13, 2 }
  0x11   : > { %5166 = sst [smem:[#allocation10_spill]] %s3911_s27  ;;  %s37_s14 = sadd.s32 1, %s3911_s27 }
  0x12   : > { %5167 = sst [smem:[#allocation11_spill]] %s3915_s28  ;;  %p361_p1 = scmp.ne.s32.totalorder %s3895_s23, %s3891_s22 }
  0x13   : > { %p362_p2 = scmp.eq.s32.totalorder %s3323_s29, 3  ;;  %s5202_s13 = smov (%p35_p0, %s34_s13), 0 }
  0x14   : > { %5168 = sst [smem:[#allocation12_spill]] %s5202_s13  ;;  %s5204_s14 = smov (!%p35_p0, %s37_s14), %s3911_s27 }
  0x15   : > { %p4032_p3 = por %p362_p2, %p361_p1  ;;  %p367_p4 = scmp.ne.s32.totalorder %s3891_s22, %s3887_s21 }
  0x16   : > { %p39_p5 = scmp.ge.s32.totalorder %s5204_s14, 2  ;;  %p368_p6 = scmp.eq.s32.totalorder %s3324_s30, 3 }
  0x17   : > { %s5169_s15 = scalar_select %p4032_p3, 1, 0 }
  0x18   : > { %p3327_p7 = scmp.ge.s32.totalorder %s3915_s28, 1  ;;  %p469_p8 = scmp.lt.s32.totalorder %s3915_s28, 5 }
  0x19   : > { %5170 = sst [smem:[#allocation13_spill]] %s5169_s15  ;;  %s5206_s14 = smov (%p39_p5, %s5204_s14), 0 }
  0x1a   : > { %5171 = sst [smem:[#allocation14_spill]] %s5206_s14  ;;  %p4042_p9 = por %p368_p6, %p367_p4 }
  0x1b   : > { %p470_p10 = pnand %p3327_p7, %p469_p8  ;;  %s348_s17 = ssub.s32 %s3911_s27, %s5206_s14 }
  0x1c   : > { %s5172_s16 = scalar_select %p4042_p9, 1, 0 }
  0x1d   : > { %s351_s18 = sadd.s32 1, %s3895_s23  ;;  %p349_p11 = scmp.eq.s32.totalorder %s348_s17, 0 }
  0x1e   : > { %5173 = sst [smem:[#allocation15_spill]] %s5172_s16  ;;  %473 = sbr.rel (%p470_p10) target bundleno = 2893 (0xb4d), region = 68 }
  0x1f   : > { %s4050_s19 = scalar_select %p349_p11, %s3895_s23, %s351_s18  }
  0x21   : > { %5174 = sst [smem:[#allocation16_spill]] %s4050_s19 }
  0x23   : > { %s5145_s20 = sand.u32 1, %s3891_s22   ;;  %p552_p12 = scmp.lt.s32.totalorder %s3903_s25, 1 }
  0x24   : > { %s4056_s29 = sshll.u32 %s5145_s20, 3  ;;  %s4059_s30 = sshll.u32 %s3903_s25, 3 }
  0x25   : > { %5175 = sst [smem:[#allocation17_spill]] %s4059_s30  ;;  %p557_p13 = scmp.lt.s32.totalorder %s4059_s30, 15 }
  0x26   : > { %s5208_s25 = smov (!%p552_p12, %s3903_s25), 1  ;;  %p562_p0 = scmp.lt.s32.totalorder %s3899_s24, 1 }
  0x27   : > { %s558_s17 = scalar_select %p557_p13, %s4059_s30, 15 }
  0x28   : > { %s3329_s18 = sshll.u32 %s5208_s25, 3  ;;  %s5176_s0 = sld [smem:[#allocation18_spill]] }
  0x29   : > { %s3331_s26 = sshll.u32 %s558_s17, 2  ;;  %s5177_s1 = sld [smem:[#allocation19_spill]] }
  0x2a   : > { %s4074_s16 = scalar_select %p562_p0, %s3899_s24, 1 }
  0x2b   : > { %s5178_s2 = sld [smem:[#allocation20_spill]]  ;;  %p3340_p1 = scmp.ne.s32.totalorder %s3899_s24, 0 }
  0x2c   : > { %s3332_s25 = sshll.u32 %s4074_s16, 2  ;;  %s3583_s13 = smul.u32 96, %s4074_s16 }
  0x2d   : > { %s3584_s23 = smul.u32 6, %s4074_s16  ;;  %s5179_s3 = sld [smem:[#allocation21_spill]] }
  0x2e   : > { %s4068_s27 = scalar_lea.vmem %s5176_s0, %s3329_s18  ;;  %s5180_s4 = sld [smem:[#allocation22_spill]] }
  0x2f   : > { %s560_s20 = scalar_lea.vmem %s5177_s1, %s3331_s26  ;;  %s3541_s1 = sshll.u32 %s4074_s16, 4 }
  0x30   : > { %s4098_s30 = scalar_lea.vmem %s5133_s5, %s3541_s1  ;;  %s582_s18 = scalar_lea.vmem %s5134_s6, %s4074_s16 }
  0x31   : > { %s4081_s17 = scalar_lea.vmem %s5178_s2, %s3332_s25  ;;  %s590_s21 = scalar_lea.vmem %s5136_s8, %s4074_s16 }
  0x32   : > { %s3543_s28 = sshll.u32 %s4074_s16, 5  ;;  %s598_s14 = scalar_lea.vmem %s5138_s10, %s4074_s16 }
  0x33   : > { %s4087_s0 = scalar_lea.vmem %s5179_s3, %s3583_s13  ;;  %s4107_s13 = scalar_lea.vmem %s5135_s7, %s3541_s1 }
  0x34   : > { %s4093_s15 = scalar_lea.vmem %s5180_s4, %s3584_s23  ;;  %s4117_s12 = scalar_lea.vmem %s5137_s9, %s3543_s28 }
  0x35   : > { %s551_s25 = scalar_lea.vmem [#allocation3], %s4056_s29  ;;  %603 = sbr.rel (%p3340_p1) target bundleno = 69 (0x45), region = 72 }
  0x3a   : > { %v3565_v0 = vld [vmem:[%s560_s20] sm:$0xff]   ;;  %vm620_vm0 = vcmask 261120   ;;  %v3580_v1 = vld [vmem:[%s560_s20 + $0x8] sm:$0xff]   ;;  %v3581_v2 = vld [vmem:[%s560_s20 + $0x10] sm:$0xff]  }
  0x3b   : > { %v3566_v3 = vunpack.c.l.bf16 %v3565_v0  ;;  %v3567_v4 = vunpack.c.h.bf16 %v3565_v0  ;;  %v3570_v5 = vunpack.c.l.bf16 %v3580_v1  ;;  %v3571_v6 = vunpack.c.h.bf16 %v3580_v1  ;;  %v3582_v7 = vld [vmem:[%s560_s20 + $0x18] sm:$0xff]  }
  0x3c   : > { %v3574_v8 = vunpack.c.l.bf16 %v3581_v2  ;;  %v3575_v9 = vunpack.c.h.bf16 %v3581_v2  ;;  %v3578_v10 = vunpack.c.l.bf16 %v3582_v7  ;;  %v3579_v11 = vunpack.c.h.bf16 %v3582_v7 }
  0x3d   : > { %621 = vst.msk [vmem:[#allocation2] sm:$0xff] %vm620_vm0, %v3566_v3 }
  0x3e   : > { %622 = vst.msk [vmem:[#allocation2 + $0x8] sm:$0xff] %vm620_vm0, %v3567_v4 }
  0x3f   : > { %623 = vst.msk [vmem:[#allocation2 + $0x10] sm:$0xff] %vm620_vm0, %v3570_v5 }
  0x40   : > { %624 = vst.msk [vmem:[#allocation2 + $0x18] sm:$0xff] %vm620_vm0, %v3571_v6 }
  0x41   : > { %625 = vst.msk [vmem:[#allocation2 + $0x20] sm:$0xff] %vm620_vm0, %v3574_v8 }
  0x42   : > { %626 = vst.msk [vmem:[#allocation2 + $0x28] sm:$0xff] %vm620_vm0, %v3575_v9 }
  0x43   : > { %627 = vst.msk [vmem:[#allocation2 + $0x30] sm:$0xff] %vm620_vm0, %v3578_v10 }
  0x44   : > { %628 = vst.msk [vmem:[#allocation2 + $0x38] sm:$0xff] %vm620_vm0, %v3579_v11 }
  0x45 PF: > { %vm670_vm1 = vcmask 261120   ;;  %v629_v14 = vld [vmem:[#allocation2] sm:$0xff]  ;;  %v630_v20 = vld [vmem:[#allocation2 + $0x8] sm:$0xff]  ;;  %v3917_v24 = vmov 32.0   ;;  %p3528_p2 = scmp.ne.s32.totalorder %s3899_s24, 1 }
  0x46   : > { %v631_v13 = vld [vmem:[#allocation2 + $0x10] sm:$0xff]  ;;  %v671_v17 = vsel %vm670_vm1, %v629_v14, 0.0  ;;  %v674_v23 = vsel %vm670_vm1, %v630_v20, 0.0  ;;  %3666 = vrcp.f32 %v3917_v24  ;;  %v3545_v4 = vld [vmem:[%s4087_s0 + $0x8] sm:$0xff]  ;;  %v3544_v9 = vld [vmem:[%s4087_s0] sm:$0xff] }
  0x47   : > { %v677_v16 = vsel %vm670_vm1, %v631_v13, 0.0  ;;  %v632_v19 = vld [vmem:[#allocation2 + $0x18] sm:$0xff]  ;;  %672 = vadd.xlane.f32.xlu0 %v671_v17  ;;  %v3547_v5 = vld [vmem:[%s4087_s0 + $0x28] sm:$0xff]  ;;  %914 = vmatpush.bf16.msra.mxu0 %v3545_v4  ;;  %v3546_v10 = vld [vmem:[%s4087_s0 + $0x20] sm:$0xff] }
  0x48   : > { %v633_v12 = vld [vmem:[#allocation2 + $0x20] sm:$0xff]  ;;  %678 = vadd.xlane.f32.xlu1 %v677_v16  ;;  %v680_v22 = vsel %vm670_vm1, %v632_v19, 0.0  ;;  %v3549_v6 = vld [vmem:[%s4087_s0 + $0x48] sm:$0xff]  ;;  %965 = vmatpush.bf16.msra.mxu1 %v3547_v5 }
  0x49   : > { %v683_v15 = vsel %vm670_vm1, %v633_v12, 0.0  ;;  %v634_v18 = vld [vmem:[#allocation2 + $0x28] sm:$0xff]  ;;  %1016 = vmatpush.bf16.msra.mxu2 %v3549_v6  ;;  %v3548_v11 = vld [vmem:[%s4087_s0 + $0x40] sm:$0xff] }
  0x4a   : > { %684 = vadd.xlane.f32.xlu2 %v683_v15  ;;  %v686_v21 = vsel %vm670_vm1, %v634_v18, 0.0  ;;  %v635_v60 = vld [vmem:[#allocation2 + $0x30] sm:$0xff] }
  0x4b   : > { %v689_v61 = vsel %vm670_vm1, %v635_v60, 0.0  ;;  %v4178_v63 = vld [vmem:[#allocation2 + $0x38] sm:$0xff]  ;;  %915 = vmatpush.bf16.msra.mxu0 %v3544_v9 }
  0x4c   : > { %v3667_v25 = vpop.eup %3666  ;;  %v692_v0 = vsel %vm670_vm1, %v4178_v63, 0.0  ;;  %966 = vmatpush.bf16.msra.mxu1 %v3546_v10 }
  0x4d   : > { %v696_v26 = vmul.f32 32.0, %v3667_v25  ;;  %vm700_vm2 = vweird.f32 %v3667_v25  ;;  %1017 = vmatpush.bf16.msra.mxu2 %v3548_v11 }
  0x4f   : > { %675 = vadd.xlane.f32.xlu0 %v674_v23  ;;  %v697_v27 = vsub.f32 1.0, %v696_v26 }
  0x50   : > { %681 = vadd.xlane.f32.xlu1 %v680_v22 }
  0x51   : > { %v698_v28 = vmul.f32 %v3667_v25, %v697_v27 }
  0x52   : > { %687 = vadd.xlane.f32.xlu2 %v686_v21 }
  0x53   : > { %v699_v29 = vadd.f32 %v3667_v25, %v698_v28 }
  0x55   : > { %v4139_v30 = vsel %vm700_vm2, %v3667_v25, %v699_v29 }
  0xba   : > { %v673_v34 = vpop.xlane.xlu0 %672 }
  0xbb   : > { %v679_v32 = vpop.xlane.xlu1 %678  ;;  %v702_v35 = vmul.f32 %v4139_v30, %v673_v34 }
  0xbc   : > { %v704_v33 = vmul.f32 %v4139_v30, %v679_v32 }
  0xbd   : > { %v685_v31 = vpop.xlane.xlu2 %684  ;;  %v4145_v37 = vsub.f32 %v629_v14, %v702_v35 }
  0xbe   : > { %v4143_v36 = vsub.f32 %v631_v13, %v704_v33  ;;  %v706_v47 = vmul.f32 %v4139_v30, %v685_v31 }
  0xbf   : > { %v718_v39 = vmul.f32 %v4145_v37, %v4145_v37 }
  0xc0   : > { %v720_v38 = vmul.f32 %v4143_v36, %v4143_v36  ;;  %v4167_v54 = vsub.f32 %v633_v12, %v706_v47 }
  0xc1   : > { %v726_v43 = vsel %vm670_vm1, %v718_v39, 0.0 }
  0xc2   : > { %v732_v40 = vsel %vm670_vm1, %v720_v38, 0.0  ;;  %727 = vadd.xlane.f32.xlu0 %v726_v43  ;;  %v676_v46 = vpop.xlane.xlu0 %675  ;;  %v722_v59 = vmul.f32 %v4167_v54, %v4167_v54 }
  0xc3   : > { %733 = vadd.xlane.f32.xlu2 %v732_v40  ;;  %v682_v42 = vpop.xlane.xlu1 %681  ;;  %v703_v48 = vmul.f32 %v4139_v30, %v676_v46  ;;  %v637_v46 = vld [vmem:[%s4081_s17] sm:$0xf] }
  0xc4   : > { %v705_v45 = vmul.f32 %v4139_v30, %v682_v42  ;;  %v738_v62 = vsel %vm670_vm1, %v722_v59, 0.0  ;;  %v4238_v6 = vperm.slane %v637_v46, 1 }
  0xc5   : > { %v688_v41 = vpop.xlane.xlu2 %687  ;;  %v4161_v51 = vsub.f32 %v630_v20, %v703_v48 }
  0xc6   : > { %v707_v44 = vmul.f32 %v4139_v30, %v688_v41  ;;  %v4159_v50 = vsub.f32 %v632_v19, %v705_v45 }
  0xc7   : > { %v719_v55 = vmul.f32 %v4161_v51, %v4161_v51 }
  0xc8   : > { %v4157_v49 = vsub.f32 %v634_v18, %v707_v44  ;;  %v721_v53 = vmul.f32 %v4159_v50, %v4159_v50 }
  0xc9   : > { %v729_v58 = vsel %vm670_vm1, %v719_v55, 0.0 }
  0xca   : > { %v723_v52 = vmul.f32 %v4157_v49, %v4157_v49  ;;  %v735_v57 = vsel %vm670_vm1, %v721_v53, 0.0  ;;  %730 = vadd.xlane.f32.xlu1 %v729_v58 }
  0xcb   : > { %736 = vadd.xlane.f32.xlu0 %v735_v57 }
  0xcc   : > { %v741_v56 = vsel %vm670_vm1, %v723_v52, 0.0 }
  0xcd   : > { %742 = vadd.xlane.f32.xlu2 %v741_v56 }
  0xd2   : > { %739 = vadd.xlane.f32.xlu1 %v738_v62 }
  0xd3   : > { %690 = vadd.xlane.f32.xlu0 %v689_v61 }
  0xda   : > { %693 = vadd.xlane.f32.xlu1 %v692_v0 }
 0x135   : > { %v728_v2 = vpop.xlane.xlu0 %727 }
 0x136   : > { %v734_v1 = vpop.xlane.xlu2 %733  ;;  %v750_v3 = vmul.f32 %v728_v2, %v4139_v30 }
 0x137   : > { %v752_v7 = vmul.f32 %v734_v1, %v4139_v30 }
 0x138   : > { %v758_v8 = vadd.f32 1e-05, %v750_v3 }
 0x139   : > { %v4190_v12 = vadd.f32 1e-05, %v752_v7 }
 0x13a   : > { %3668 = vrsqrt.f32 %v758_v8  ;;  %vm772_vm4 = vweird.f32 %v758_v8 }
 0x13b   : > { %3670 = vrsqrt.f32 %v4190_v12  ;;  %vm792_vm11 = vweird.f32 %v4190_v12 }
 0x13d   : > { %v731_v13 = vpop.xlane.xlu1 %730 }
 0x13e   : > { %v737_v14 = vpop.xlane.xlu0 %736  ;;  %v751_v15 = vmul.f32 %v731_v13, %v4139_v30 }
 0x13f   : > { %v753_v16 = vmul.f32 %v737_v14, %v4139_v30 }
 0x140   : > { %v3669_v17 = vpop.eup %3668  ;;  %v759_v18 = vadd.f32 1e-05, %v751_v15  ;;  %v743_v22 = vpop.xlane.xlu2 %742 }
 0x141   : > { %v4195_v19 = vadd.f32 1e-05, %v753_v16  ;;  %v767_v20 = vmul.f32 %v3669_v17, %v758_v8  ;;  %v4198_v23 = vpop.eup %3670  ;;  %v755_v33 = vmul.f32 %v743_v22, %v4139_v30  ;;  %vm773_vm3 = vweird.f32 %v3669_v17 }
 0x142   : > { %3672 = vrsqrt.f32 %v759_v18  ;;  %v787_v32 = vmul.f32 %v4198_v23, %v4190_v12  ;;  %vm4213_vm5 = vmor %vm772_vm4, %vm773_vm3  ;;  %vm782_vm7 = vweird.f32 %v759_v18  ;;  %vm793_vm12 = vweird.f32 %v4198_v23 }
 0x143   : > { %v768_v21 = vmul.f32 %v3669_v17, %v767_v20  ;;  %3674 = vrsqrt.f32 %v4195_v19  ;;  %v4217_v44 = vadd.f32 1e-05, %v755_v33  ;;  %vm802_vm9 = vweird.f32 %v4195_v19  ;;  %vm794_vm14 = vmor %vm792_vm11, %vm793_vm12 }
 0x144   : > { %v788_v47 = vmul.f32 %v4198_v23, %v787_v32  ;;  %vm1055_vm11 = vcmask 130048  }
 0x145   : > { %v769_v24 = vmul.f32 0.5, %v768_v21  ;;  %v740_v25 = vpop.xlane.xlu1 %739  ;;  %vm822_vm2 = vweird.f32 %v4217_v44 }
 0x146   : > { %v691_v26 = vpop.xlane.xlu0 %690  ;;  %v754_v27 = vmul.f32 %v740_v25, %v4139_v30  ;;  %v789_v0 = vmul.f32 0.5, %v788_v47 }
 0x147   : > { %v708_v28 = vmul.f32 %v4139_v30, %v691_v26  ;;  %v770_v29 = vsub.f32 1.5, %v769_v24 }
 0x148   : > { %v3673_v31 = vpop.eup %3672  ;;  %v4211_v41 = vadd.f32 1e-05, %v754_v27  ;;  %v790_v8 = vsub.f32 1.5, %v789_v0 }
 0x149   : > { %v4205_v34 = vpop.eup %3674  ;;  %v771_v35 = vmul.f32 %v3669_v17, %v770_v29  ;;  %v777_v38 = vmul.f32 %v3673_v31, %v759_v18  ;;  %v4207_v39 = vsub.f32 %v635_v60, %v708_v28  ;;  %vm783_vm6 = vweird.f32 %v3673_v31 }
 0x14a   : > { %v797_v40 = vmul.f32 %v4205_v34, %v4195_v19  ;;  %3676 = vrsqrt.f32 %v4211_v41  ;;  %v4229_v60 = vperm.slane %v637_v46, 0  ;;  %vm784_vm8 = vmor %vm782_vm7, %vm783_vm6  ;;  %vm803_vm10 = vweird.f32 %v4205_v34 }
 0x14b   : > { %v778_v42 = vmul.f32 %v3673_v31, %v777_v38  ;;  %v775_v48 = vsel %vm4213_vm5, %v3669_v17, %v771_v35  ;;  %v724_v55 = vmul.f32 %v4207_v39, %v4207_v39  ;;  %3678 = vrsqrt.f32 %v4217_v44  ;;  %vm804_vm13 = vmor %vm802_vm9, %vm803_vm10 }
 0x14c   : > { %v798_v45 = vmul.f32 %v4205_v34, %v797_v40  ;;  %v846_v61 = vmul.f32 %v775_v48, %v4145_v37  ;;  %v791_v15 = vmul.f32 %v4198_v23, %v790_v8  ;;  %vm812_vm15 = vweird.f32 %v4211_v41 }
 0x14d   : > { %v779_v52 = vmul.f32 0.5, %v778_v42  ;;  %v694_v53 = vpop.xlane.xlu1 %693  ;;  %v744_v59 = vsel %vm670_vm1, %v724_v55, 0.0 }
 0x14e   : > { %v709_v56 = vmul.f32 %v4139_v30, %v694_v53  ;;  %v799_v58 = vmul.f32 0.5, %v798_v45  ;;  %745 = vadd.xlane.f32.xlu2 %v744_v59  ;;  %v855_v37 = vmul.f32 %v4229_v60, %v846_v61  ;;  %v795_v19 = vsel %vm794_vm14, %v4198_v23, %v791_v15  ;;  %v4297_v61 = vld [vmem:[%s4093_s15 + $0x2] ss:$0 sm:$0xff] }
 0x14f   : > { %v780_v57 = vsub.f32 1.5, %v779_v52  ;;  %v848_v24 = vmul.f32 %v795_v19, %v4143_v36  ;;  %vm1248_vm14 = vcmask 64512  }
 0x150   : > { %v4234_v62 = vsub.f32 %v4178_v63, %v709_v56  ;;  %v800_v3 = vsub.f32 1.5, %v799_v58  ;;  %v3677_v5 = vpop.eup %3676 }
 0x151   : > { %v781_v1 = vmul.f32 %v3673_v31, %v780_v57  ;;  %v3679_v9 = vpop.eup %3678  ;;  %v807_v13 = vmul.f32 %v3677_v5, %v4211_v41  ;;  %v857_v28 = vmul.f32 %v4229_v60, %v848_v24  ;;  %vm813_vm0 = vweird.f32 %v3677_v5 }
 0x152   : > { %v725_v4 = vmul.f32 %v4234_v62, %v4234_v62  ;;  %v801_v11 = vmul.f32 %v4205_v34, %v800_v3  ;;  %v817_v16 = vmul.f32 %v3679_v9, %v4217_v44  ;;  %vm823_vm3 = vweird.f32 %v3679_v9  ;;  %vm814_vm4 = vmor %vm812_vm15, %vm813_vm0 }
 0x153   : > { %v785_v2 = vsel %vm784_vm8, %v3673_v31, %v781_v1  ;;  %v808_v18 = vmul.f32 %v3677_v5, %v807_v13  ;;  %vm824_vm5 = vmor %vm822_vm2, %vm823_vm3 }
 0x154   : > { %v847_v7 = vmul.f32 %v785_v2, %v4161_v51  ;;  %v747_v63 = vsel %vm670_vm1, %v725_v4, 0.0  ;;  %v864_v51 = vadd.f32 %v4238_v6, %v855_v37  ;;  %v805_v12 = vsel %vm804_vm13, %v4205_v34, %v801_v11 }
 0x155   : > { %748 = vadd.xlane.f32.xlu0 %v747_v63  ;;  %v818_v20 = vmul.f32 %v3679_v9, %v817_v16  ;;  %v849_v21 = vmul.f32 %v805_v12, %v4159_v50  ;;  %v809_v22 = vmul.f32 0.5, %v808_v18  ;;  %v866_v50 = vadd.f32 %v4238_v6, %v857_v28  ;;  %v4302_v63 = vld [vmem:[%s4093_s15] ss:$0 sm:$0xff] }
 0x156   : > { %v856_v10 = vmul.f32 %v4229_v60, %v847_v7  ;;  %vm1356_vm13 = vcmask 1043456  }
 0x157   : > { %v819_v25 = vmul.f32 0.5, %v818_v20  ;;  %v858_v26 = vmul.f32 %v4229_v60, %v849_v21  ;;  %v810_v27 = vsub.f32 1.5, %v809_v22 }
 0x158   : > { %v865_v14 = vadd.f32 %v4238_v6, %v856_v10 }
 0x159   : > { %v820_v29 = vsub.f32 1.5, %v819_v25  ;;  %v867_v23 = vadd.f32 %v4238_v6, %v858_v26  ;;  %v811_v31 = vmul.f32 %v3677_v5, %v810_v27 }
 0x15a   : > { %v4254_v17 = vpack.c.bf16 %v865_v14, %v864_v51 }
 0x15b   : > { %v821_v36 = vmul.f32 %v3679_v9, %v820_v29  ;;  %v4272_v32 = vpack.c.bf16 %v867_v23, %v866_v50  ;;  %v815_v33 = vsel %vm814_vm4, %v3677_v5, %v811_v31 }
 0x15c   : > { %3357 = vmatmul.msk.bf16.vlgmr.msra.gmra.mxu0 %vm670_vm1, %v4254_v17  ;;  %3374 = vmatmul.msk.bf16.vlgmr.msra.gmra.mxu1 %vm670_vm1, %v4254_v17  ;;  %v850_v35 = vmul.f32 %v815_v33, %v4167_v54 }
 0x15d   : > { %3391 = vmatmul.msk.bf16.vlgmr.msra.gmra.mxu2 %vm670_vm1, %v4254_v17  ;;  %v825_v34 = vsel %vm824_vm5, %v3679_v9, %v821_v36 }
 0x15e   : > { %v851_v38 = vmul.f32 %v825_v34, %v4157_v49  ;;  %v859_v40 = vmul.f32 %v4229_v60, %v850_v35  ;;  %v4327_v34 = vld [vmem:[%s4093_s15 + $0x4] ss:$0 sm:$0xff] }
 0x160   : > { %v860_v41 = vmul.f32 %v4229_v60, %v851_v38  ;;  %v868_v42 = vadd.f32 %v4238_v6, %v859_v40 }
 0x162   : > { %v869_v43 = vadd.f32 %v4238_v6, %v860_v41 }
 0x164   : > { %v4286_v44 = vpack.c.bf16 %v869_v43, %v868_v42 }
 0x16c   : > { %3358 = vmatmul.msk.bf16.gmra.mxu0 %vm670_vm1, %v4272_v32  ;;  %3375 = vmatmul.msk.bf16.gmra.mxu1 %vm670_vm1, %v4272_v32 }
 0x16d   : > { %3392 = vmatmul.msk.bf16.gmra.mxu2 %vm670_vm1, %v4272_v32 }
 0x17c   : > { %3359 = vmatmul.msk.bf16.gmra.mxu0 %vm670_vm1, %v4286_v44  ;;  %3376 = vmatmul.msk.bf16.gmra.mxu1 %vm670_vm1, %v4286_v44 }
 0x17d   : > { %3393 = vmatmul.msk.bf16.gmra.mxu2 %vm670_vm1, %v4286_v44 }
 0x1c1   : > { %v746_v49 = vpop.xlane.xlu2 %745 }
 0x1c2   : > { %v756_v54 = vmul.f32 %v746_v49, %v4139_v30 }
 0x1c4   : > { %v764_v45 = vadd.f32 1e-05, %v756_v54 }
 0x1c6   : > { %3680 = vrsqrt.f32 %v764_v45  ;;  %vm832_vm6 = vweird.f32 %v764_v45 }
 0x1c8   : > { %v749_v46 = vpop.xlane.xlu0 %748 }
 0x1c9   : > { %v757_v47 = vmul.f32 %v749_v46, %v4139_v30 }
 0x1cb   : > { %v765_v48 = vadd.f32 1e-05, %v757_v47 }
 0x1cc   : > { %v3681_v52 = vpop.eup %3680 }
 0x1cd   : > { %3682 = vrsqrt.f32 %v765_v48  ;;  %v827_v53 = vmul.f32 %v3681_v52, %v764_v45  ;;  %vm833_vm7 = vweird.f32 %v3681_v52  ;;  %vm842_vm9 = vweird.f32 %v765_v48 }
 0x1ce   : > { %vm834_vm8 = vmor %vm832_vm6, %vm833_vm7 }
 0x1cf   : > { %v828_v55 = vmul.f32 %v3681_v52, %v827_v53 }
 0x1d1   : > { %v829_v56 = vmul.f32 0.5, %v828_v55 }
 0x1d3   : > { %v3683_v57 = vpop.eup %3682  ;;  %v830_v58 = vsub.f32 1.5, %v829_v56 }
 0x1d4   : > { %v837_v59 = vmul.f32 %v3683_v57, %v765_v48  ;;  %vm843_vm10 = vweird.f32 %v3683_v57 }
 0x1d5   : > { %v831_v0 = vmul.f32 %v3681_v52, %v830_v58  ;;  %vm844_vm12 = vmor %vm842_vm9, %vm843_vm10 }
 0x1d6   : > { %v838_v1 = vmul.f32 %v3683_v57, %v837_v59 }
 0x1d7   : > { %v835_v2 = vsel %vm834_vm8, %v3681_v52, %v831_v0 }
 0x1d8   : > { %v839_v3 = vmul.f32 0.5, %v838_v1  ;;  %v852_v8 = vmul.f32 %v835_v2, %v4207_v39 }
 0x1d9   : > { %v917_v4 = vpop.f32.mrf.mxu0  ;;  %v968_v5 = vpop.f32.mrf.mxu1 }
 0x1da   : > { %v969_v37 = vadd.f32 %v4297_v61, %v968_v5  ;;  %v840_v7 = vsub.f32 1.5, %v839_v3  ;;  %v861_v51 = vmul.f32 %v4229_v60, %v852_v8  ;;  %v918_v15 = vadd.f32 %v4302_v63, %v917_v4 }
 0x1dc   : > { %v1047_v9 = vpack.c.bf16 %v969_v37, %v969_v37  ;;  %v841_v10 = vmul.f32 %v3683_v57, %v840_v7  ;;  %v870_v20 = vadd.f32 %v4238_v6, %v861_v51  ;;  %v1039_v22 = vpack.c.bf16 %v918_v15, %v918_v15 }
 0x1de   : > { %v1060_v11 = vsel %vm1055_vm11, %v1047_v9, 0  ;;  %v845_v13 = vsel %vm844_vm12, %v3683_v57, %v841_v10 }
 0x1df   : > { %1069 = vmatpush.bf16.xpose.msra.mxu3 %v1060_v11  ;;  %v853_v14 = vmul.f32 %v845_v13, %v4234_v62 }
 0x1e0   : > { %v1019_v16 = vpop.f32.mrf.mxu2 }
 0x1e1   : > { %v919_v12 = vpop.f32.mrf.mxu0  ;;  %v970_v18 = vpop.f32.mrf.mxu1  ;;  %v862_v39 = vmul.f32 %v4229_v60, %v853_v14  ;;  %v1020_v41 = vadd.f32 %v4327_v34, %v1019_v16 }
 0x1e2   : > { %v971_v19 = vadd.f32 %v4297_v61, %v970_v18  ;;  %v920_v23 = vadd.f32 %v4302_v63, %v919_v12  ;;  %v4352_v12 = vld [vmem:[%s4068_s27] sm:$0xff] }
 0x1e3   : > { %v871_v21 = vadd.f32 %v4238_v6, %v862_v39  ;;  %v1345_v54 = vpack.c.bf16 %v1020_v41, %v1020_v41  ;;  %v3341_v18 = vadd.f32 -1.0, %v4352_v12 }
 0x1e4   : > { %v1048_v24 = vpack.c.bf16 %v971_v19, %v971_v19  ;;  %v1040_v35 = vpack.c.bf16 %v920_v23, %v920_v23 }
 0x1e5   : > { %v4312_v25 = vpack.c.bf16 %v871_v21, %v870_v20  ;;  %v1358_v48 = vsel %vm1356_vm13, %v1345_v54, 0  ;;  %v4356_v19 = vmul.f32 1e+09, %v3341_v18 }
 0x1e6   : > { %3395 = vmatmul.msk.bf16.vlgmr.msra.gmra.mxu3 %vm1055_vm11, %v1039_v22  ;;  %v1079_v62 = vsel %vm1055_vm11, %v1048_v24, 0 }
 0x1e7   : > { %1088 = vmatpush.bf16.xpose.msrb.mxu3 %v1079_v62  ;;  %3360 = vmatmul.msk.bf16.gmra.mxu0 %vm670_vm1, %v4312_v25 }
 0x1e8   : > { %3377 = vmatmul.msk.bf16.gmra.mxu1 %vm670_vm1, %v4312_v25  ;;  %v1021_v60 = vpop.f32.mrf.mxu2  ;;  %3394 = vmatmul.msk.bf16.gmra.mxu2 %vm670_vm1, %v4312_v25 }
 0x1e9   : > { %v922_v6 = vpop.f32.mrf.mxu0  ;;  %v973_v26 = vpop.f32.mrf.mxu1  ;;  %v1022_v52 = vadd.f32 %v4327_v34, %v1021_v60  ;;  %v1224_v60 = vperm.slane %v4356_v19, 0 }
 0x1ea   : > { %v974_v27 = vadd.f32 %v4297_v61, %v973_v26  ;;  %v923_v53 = vadd.f32 %v4302_v63, %v922_v6 }
 0x1eb   : > { %v1346_v0 = vpack.c.bf16 %v1022_v52, %v1022_v52 }
 0x1ec   : > { %v1049_v28 = vpack.c.bf16 %v974_v27, %v974_v27  ;;  %v1041_v2 = vpack.c.bf16 %v923_v53, %v923_v53 }
 0x1ed   : > { %v1377_v8 = vsel %vm1356_vm13, %v1346_v0, 0 }
 0x1ee   : > { %v1098_v29 = vsel %vm1055_vm11, %v1049_v28, 0 }
 0x1ef   : > { %1107 = vmatpush.bf16.xpose.msra.mxu3 %v1098_v29 }
 0x1f0   : > { %v1024_v31 = vpop.f32.mrf.mxu2 }
 0x1f1   : > { %v924_v50 = vpop.f32.mrf.mxu0  ;;  %v975_v36 = vpop.f32.mrf.mxu1  ;;  %v1025_v39 = vadd.f32 %v4327_v34, %v1024_v31 }
 0x1f2   : > { %v976_v33 = vadd.f32 %v4297_v61, %v975_v36  ;;  %v925_v15 = vadd.f32 %v4302_v63, %v924_v50  ;;  %v4369_v36 = vrot.slane %v4352_v12, 1 }
 0x1f3   : > { %v1347_v22 = vpack.c.bf16 %v1025_v39, %v1025_v39 }
 0x1f4   : > { %v1050_v38 = vpack.c.bf16 %v976_v33, %v976_v33  ;;  %v1042_v16 = vpack.c.bf16 %v925_v15, %v925_v15  ;;  %v3342_v54 = vadd.f32 -1.0, %v4369_v36 }
 0x1f5   : > { %v1396_v28 = vsel %vm1356_vm13, %v1347_v22, 0 }
 0x1f6   : > { %3396 = vmatmul.msk.bf16.vlgmr.msrb.gmra.mxu3 %vm1055_vm11, %v1040_v35  ;;  %v1117_v40 = vsel %vm1055_vm11, %v1050_v38, 0 }
 0x1f7   : > { %1126 = vmatpush.bf16.xpose.msrb.mxu3 %v1117_v40 }
 0x1f8   : > { %v1026_v42 = vpop.f32.mrf.mxu2 }
 0x1f9   : > { %v978_v43 = vpop.f32.mrf.mxu1  ;;  %v927_v45 = vpop.f32.mrf.mxu0  ;;  %v1027_v29 = vadd.f32 %v4327_v34, %v1026_v42 }
 0x1fa   : > { %v979_v49 = vadd.f32 %v4297_v61, %v978_v43  ;;  %v928_v55 = vadd.f32 %v4302_v63, %v927_v45 }
 0x1fb   : > { %v1348_v41 = vpack.c.bf16 %v1027_v29, %v1027_v29 }
 0x1fc   : > { %v1051_v46 = vpack.c.bf16 %v979_v49, %v979_v49  ;;  %v1043_v3 = vpack.c.bf16 %v928_v55, %v928_v55  ;;  %v4381_v55 = vmul.f32 1e+09, %v3342_v54 }
 0x1fe   : > { %v1136_v47 = vsel %vm1055_vm11, %v1051_v46, 0  ;;  %v1225_v0 = vperm.slane %v4381_v55, 0 }
 0x1ff   : > { %1145 = vmatpush.bf16.xpose.msrb.mxu0 %v1136_v47 }
 0x200   : > { %v1029_v56 = vpop.f32.mrf.mxu2 }
 0x201   : > { %v1030_v57 = vadd.f32 %v4327_v34, %v1029_v56  ;;  %v980_v58 = vpop.f32.mrf.mxu1  ;;  %v929_v5 = vpop.f32.mrf.mxu0 }
 0x202   : > { %v981_v59 = vadd.f32 %v4297_v61, %v980_v58  ;;  %v930_v9 = vadd.f32 %v4302_v63, %v929_v5 }
 0x203   : > { %v1349_v1 = vpack.c.bf16 %v1030_v57, %v1030_v57  ;;  %v4385_v57 = vrot.slane %v4352_v12, 4 }
 0x204   : > { %v1052_v4 = vpack.c.bf16 %v981_v59, %v981_v59  ;;  %v1044_v51 = vpack.c.bf16 %v930_v9, %v930_v9 }
 0x205   : > { %v1434_v37 = vsel %vm1356_vm13, %v1349_v1, 0 }
 0x206   : > { %3397 = vmatmul.msk.bf16.vlgmr.msra.gmra.mxu3 %vm1055_vm11, %v1041_v2  ;;  %3399 = vmatmul.msk.bf16.vlgmr.msrb.gmra.mxu0 %vm1055_vm11, %v1043_v3  ;;  %v1155_v7 = vsel %vm1055_vm11, %v1052_v4, 0 }
 0x207   : > { %1367 = vmatpush.bf16.msra.mxu0 %v1358_v48  ;;  %1164 = vmatpush.bf16.xpose.msrb.mxu1 %v1155_v7 }
 0x208   : > { %v1031_v10 = vpop.f32.mrf.mxu2 }
 0x209   : > { %v1032_v11 = vadd.f32 %v4327_v34, %v1031_v10 }
 0x20b   : > { %1443 = vmatpush.bf16.msrb.mxu0 %v1434_v37  ;;  %v1350_v13 = vpack.c.bf16 %v1032_v11, %v1032_v11  ;;  %v4397_v37 = vrot.slane %v4352_v12, 5 }
 0x20d   : > { %v1453_v14 = vsel %vm1356_vm13, %v1350_v13, 0  ;;  %v3346_v9 = vadd.f32 -1.0, %v4397_v37 }
 0x20e   : > { %3400 = vmatmul.msk.bf16.vlgmr.msrb.gmra.mxu1 %vm1055_vm11, %v1044_v51 }
 0x20f   : > { %1386 = vmatpush.bf16.msra.mxu1 %v1377_v8  ;;  %v4403_v51 = vmul.f32 1e+09, %v3346_v9 }
 0x213   : > { %1462 = vmatpush.bf16.msrb.mxu1 %v1453_v14 }
 0x216   : > { %3398 = vmatmul.msk.bf16.vlgmr.msrb.gmra.mxu3 %vm1055_vm11, %v1042_v16  ;;  %v1229_v16 = vperm.slane %v4403_v51, 0 }
 0x264   : > { %v932_v24 = vpop.f32.mrf.mxu0 }
 0x265   : > { %v983_v20 = vpop.f32.mrf.mxu1  ;;  %v933_v23 = vadd.f32 %v4302_v63, %v932_v24 }
 0x266   : > { %v984_v21 = vadd.f32 %v4297_v61, %v983_v20 }
 0x267   : > { %v1045_v43 = vpack.c.bf16 %v933_v23, %v933_v23 }
 0x268   : > { %v1053_v62 = vpack.c.bf16 %v984_v21, %v984_v21 }
 0x269   : > { %v1071_v6 = vpop.f32.mrf.mxu3 }
 0x26a   : > { %v1208_v26 = vmul.f32 0.25, %v1071_v6  ;;  %v1174_v27 = vsel %vm1055_vm11, %v1053_v62, 0 }
 0x26b   : > { %1183 = vmatpush.bf16.xpose.msrb.mxu2 %v1174_v27  ;;  %v1034_v31 = vpop.f32.mrf.mxu2 }
 0x26c   : > { %v4366_v50 = vadd.f32 %v1224_v60, %v1208_v26  ;;  %v1035_v33 = vadd.f32 %v4327_v34, %v1034_v31  ;;  %v934_v45 = vpop.f32.mrf.mxu0 }
 0x26d   : > { %v985_v35 = vpop.f32.mrf.mxu1  ;;  %v935_v52 = vadd.f32 %v4302_v63, %v934_v45  ;;  %v3345_v63 = vadd.f32 -1.0, %v4385_v57 }
 0x26e   : > { %v986_v38 = vadd.f32 %v4297_v61, %v985_v35  ;;  %v1249_v40 = vsel %vm1248_vm14, %v4366_v50, -inf  ;;  %v1351_v42 = vpack.c.bf16 %v1035_v33, %v1035_v33  ;;  %v1415_v61 = vsel %vm1356_vm13, %v1348_v41, 0 }
 0x26f   : > { %1250 = vmax.xlane.f32.xlu2 %v1249_v40  ;;  %v1046_v59 = vpack.c.bf16 %v935_v52, %v935_v52  ;;  %v4394_v5 = vmul.f32 1e+09, %v3345_v63  ;;  %v4420_v35 = vrot.slane %v4352_v12, 6 }
 0x270   : > { %v1054_v49 = vpack.c.bf16 %v986_v38, %v986_v38  ;;  %v1472_v47 = vsel %vm1356_vm13, %v1351_v42, 0 }
 0x271   : > { %v1073_v46 = vpop.f32.mrf.mxu3  ;;  %v1228_v8 = vperm.slane %v4394_v5, 0 }
 0x272   : > { %3401 = vmatmul.msk.bf16.vlgmr.msrb.gmra.mxu2 %vm1055_vm11, %v1045_v43  ;;  %v1193_v48 = vsel %vm1055_vm11, %v1054_v49, 0  ;;  %v3347_v43 = vadd.f32 -1.0, %v4420_v35 }
 0x273   : > { %1405 = vmatpush.bf16.msra.mxu2 %v1396_v28  ;;  %1202 = vmatpush.bf16.xpose.msra.mxu3 %v1193_v48  ;;  %v1036_v53 = vpop.f32.mrf.mxu2  ;;  %v4413_v28 = vrot.slane %v4352_v12, 3 }
 0x274   : > { %v1037_v56 = vadd.f32 %v4327_v34, %v1036_v53  ;;  %v4427_v54 = vmul.f32 1e+09, %v3347_v43 }
 0x275   : > { %v3344_v31 = vadd.f32 -1.0, %v4413_v28 }
 0x276   : > { %v1352_v58 = vpack.c.bf16 %v1037_v56, %v1037_v56  ;;  %v1230_v52 = vperm.slane %v4427_v54, 0 }
 0x277   : > { %1481 = vmatpush.bf16.msrb.mxu2 %v1472_v47  ;;  %v4417_v33 = vmul.f32 1e+09, %v3344_v31 }
 0x278   : > { %v1491_v3 = vsel %vm1356_vm13, %v1352_v58, 0  ;;  %v4434_v58 = vrot.slane %v4352_v12, 7 }
 0x279   : > { %v1090_v1 = vpop.f32.mrf.mxu3  ;;  %v1227_v42 = vperm.slane %v4417_v33, 0 }
 0x27a   : > { %v1209_v2 = vmul.f32 0.25, %v1090_v1  ;;  %3402 = vmatmul.msk.bf16.vlgmr.msra.gmra.mxu3 %vm1055_vm11, %v1046_v59 }
 0x27b   : > { %1424 = vmatpush.bf16.msrb.mxu3 %v1415_v61 }
 0x27c   : > { %v1241_v4 = vadd.f32 %v1225_v0, %v1209_v2 }
 0x27e   : > { %v1252_v34 = vsel %vm1248_vm14, %v1241_v4, -inf }
 0x27f   : > { %1500 = vmatpush.bf16.msra.mxu3 %v1491_v3  ;;  %1253 = vmax.xlane.f32.xlu1 %v1252_v34 }
 0x281   : > { %v1092_v7 = vpop.f32.mrf.mxu3 }
 0x282   : > { %v3348_v7 = vadd.f32 -1.0, %v4434_v58 }
 0x283   : > { %v1147_v10 = vpop.f32.mrf.mxu0 }
 0x284   : > { %v1212_v11 = vmul.f32 0.25, %v1147_v10  ;;  %v4439_v10 = vmul.f32 1e+09, %v3348_v7  ;;  %v3554_v7 = vld [vmem:[%s4087_s0 + $0x38] sm:$0xff] }
 0x286   : > { %v1244_v13 = vadd.f32 %v1228_v8, %v1212_v11  ;;  %v4442_v11 = vrot.slane %v4352_v12, 2 }
 0x288   : > { %v1261_v14 = vsel %vm1248_vm14, %v1244_v13, -inf }
 0x289   : > { %v4406_v15 = vpop.f32.mrf.mxu3  ;;  %1262 = vmax.xlane.f32.xlu1 %v1261_v14 }
 0x28b   : > { %v1149_v18 = vpop.f32.mrf.mxu0  ;;  %v1166_v39 = vpop.f32.mrf.mxu1 }
 0x28c   : > { %v1213_v20 = vmul.f32 0.25, %v1166_v39 }
 0x28e   : > { %v1245_v21 = vadd.f32 %v1229_v16, %v1213_v20 }
 0x290   : > { %v1264_v22 = vsel %vm1248_vm14, %v1245_v21, -inf }
 0x291   : > { %v1111_v24 = vpop.f32.mrf.mxu3  ;;  %1265 = vmax.xlane.f32.xlu0 %v1264_v22 }
 0x292   : > { %v1231_v24 = vperm.slane %v4439_v10, 0 }
 0x293   : > { %v1168_v62 = vpop.f32.mrf.mxu1 }
 0x294   : > { %v3343_v62 = vadd.f32 -1.0, %v4442_v11 }
 0x299   : > { %v1128_v6 = vpop.f32.mrf.mxu3 }
 0x29a   : > { %v1211_v40 = vmul.f32 0.25, %v1128_v6 }
 0x2a1   : > { %v1130_v26 = vpop.f32.mrf.mxu3 }
 0x2a2   : > { %v4449_v26 = vmul.f32 1e+09, %v3343_v62 }
 0x2a4   : > { %v1226_v31 = vperm.slane %v4449_v26, 0 }
 0x2e2   : > { %v1251_v27 = vpop.xlane.xlu2 %1250 }
 0x2e3   : > { %v1273_v29 = vsub.f32 %v4366_v50, %v1251_v27  ;;  %v1243_v50 = vadd.f32 %v1227_v42, %v1211_v40 }
 0x2e5   : > { %v1281_v23 = vmul.f32 1.442695, %v1273_v29  ;;  %v1258_v61 = vsel %vm1248_vm14, %v1243_v50, -inf }
 0x2e7   : > { %3684 = vpow2.f32 %v1281_v23 }
 0x2ed   : > { %v3685_v38 = vpop.eup %3684 }
 0x2ee   : > { %v1297_v41 = vsel %vm1248_vm14, %v3685_v38, 0.0 }
 0x2ef   : > { %1298 = vadd.xlane.f32.xlu0 %v1297_v41 }
 0x2f2   : > { %v1254_v49 = vpop.xlane.xlu1 %1253 }
 0x2f3   : > { %v1274_v45 = vsub.f32 %v1241_v4, %v1254_v49 }
 0x2f5   : > { %v1283_v46 = vmul.f32 1.442695, %v1274_v45  ;;  %v1185_v47 = vpop.f32.mrf.mxu2 }
 0x2f6   : > { %v1214_v48 = vmul.f32 0.25, %v1185_v47 }
 0x2f7   : > { %3686 = vpow2.f32 %v1283_v46  ;;  %1259 = vmax.xlane.f32.xlu0 %v1258_v61  ;;  %v3552_v61 = vld [vmem:[%s4087_s0 + $0x18] sm:$0xff] }
 0x2f8   : > { %v1246_v53 = vadd.f32 %v1230_v52, %v1214_v48 }
 0x2fa   : > { %v1267_v4 = vsel %vm1248_vm14, %v1246_v53, -inf }
 0x2fc   : > { %v1263_v56 = vpop.xlane.xlu1 %1262 }
 0x2fd   : > { %v3687_v59 = vpop.eup %3686  ;;  %v1277_v1 = vsub.f32 %v1244_v13, %v1263_v56  ;;  %v1187_v2 = vpop.f32.mrf.mxu2 }
 0x2fe   : > { %v1204_v3 = vpop.f32.mrf.mxu3  ;;  %v1300_v63 = vsel %vm1248_vm14, %v3687_v59, 0.0 }
 0x2ff   : > { %v1289_v34 = vmul.f32 1.442695, %v1277_v1  ;;  %1301 = vadd.xlane.f32.xlu2 %v1300_v63  ;;  %1268 = vmax.xlane.f32.xlu0 %v1267_v4  ;;  %v1215_v20 = vmul.f32 0.25, %v1204_v3  ;;  %v3551_v3 = vld [vmem:[%s4087_s0 + $0x10] sm:$0xff] }
 0x301   : > { %3688 = vpow2.f32 %v1289_v34  ;;  %v1247_v6 = vadd.f32 %v1231_v24, %v1215_v20 }
 0x303   : > { %v1270_v23 = vsel %vm1248_vm14, %v1247_v6, -inf }
 0x304   : > { %v1266_v9 = vpop.xlane.xlu0 %1265 }
 0x305   : > { %v1278_v14 = vsub.f32 %v1245_v21, %v1266_v9  ;;  %v1210_v21 = vmul.f32 0.25, %v4406_v15 }
 0x306   : > { %v1206_v13 = vpop.f32.mrf.mxu3 }
 0x307   : > { %v3689_v18 = vpop.eup %3688  ;;  %v1291_v39 = vmul.f32 1.442695, %v1278_v14  ;;  %v1242_v40 = vadd.f32 %v1226_v31, %v1210_v21 }
 0x308   : > { %v1309_v22 = vsel %vm1248_vm14, %v3689_v18, 0.0 }
 0x309   : > { %3690 = vpow2.f32 %v1291_v39  ;;  %1310 = vadd.xlane.f32.xlu2 %v1309_v22  ;;  %v1255_v41 = vsel %vm1248_vm14, %v1242_v40, -inf  ;;  %v3553_v39 = vld [vmem:[%s4087_s0 + $0x30] sm:$0xff] }
 0x30f   : > { %v3691_v27 = vpop.eup %3690 }
 0x310   : > { %v1312_v29 = vsel %vm1248_vm14, %v3691_v27, 0.0 }
 0x311   : > { %1313 = vadd.xlane.f32.xlu1 %v1312_v29  ;;  %1271 = vmax.xlane.f32.xlu2 %v1270_v23 }
 0x319   : > { %1256 = vmax.xlane.f32.xlu1 %v1255_v41 }
 0x362   : > { %v1299_v43 = vpop.xlane.xlu0 %1298 }
 0x363   : > { %3692 = vrcp.f32 %v1299_v43 }
 0x369   : > { %v3693_v49 = vpop.eup %3692 }
 0x36a   : > { %v1329_v15 = vmul.f32 %v3693_v49, %v3685_v38  ;;  %v1260_v45 = vpop.xlane.xlu0 %1259 }
 0x36b   : > { %v1276_v46 = vsub.f32 %v1243_v50, %v1260_v45 }
 0x36c   : > { %v1337_v47 = vpack.c.bf16 %v1329_v15, %v1329_v15 }
 0x36d   : > { %v1287_v48 = vmul.f32 1.442695, %v1276_v46 }
 0x36e   : > { %3403 = vmatmul.msk.bf16.vlgmr.msra.gmra.mxu0 %vm1248_vm14, %v1337_v47 }
 0x36f   : > { %3694 = vpow2.f32 %v1287_v48  ;;  %1540 = vmatpush.bf16.msra.mxu0 %v3552_v61 }
 0x372   : > { %v1302_v56 = vpop.xlane.xlu2 %1301  ;;  %v1269_v1 = vpop.xlane.xlu0 %1268 }
 0x373   : > { %3696 = vrcp.f32 %v1302_v56  ;;  %v1279_v2 = vsub.f32 %v1246_v53, %v1269_v1  ;;  %1541 = vmatpush.bf16.msra.mxu0 %v3551_v3 }
 0x375   : > { %v3695_v63 = vpop.eup %3694  ;;  %v1293_v4 = vmul.f32 1.442695, %v1279_v2 }
 0x376   : > { %v1306_v38 = vsel %vm1248_vm14, %v3695_v63, 0.0 }
 0x377   : > { %3698 = vpow2.f32 %v1293_v4  ;;  %1307 = vadd.xlane.f32.xlu1 %v1306_v38 }
 0x379   : > { %v3697_v50 = vpop.eup %3696 }
 0x37a   : > { %v1330_v34 = vmul.f32 %v3697_v50, %v3687_v59 }
 0x37c   : > { %v1338_v9 = vpack.c.bf16 %v1330_v34, %v1330_v34  ;;  %v1311_v14 = vpop.xlane.xlu2 %1310 }
 0x37d   : > { %v4463_v13 = vpop.eup %3698  ;;  %3700 = vrcp.f32 %v1311_v14 }
 0x37e   : > { %3404 = vmatmul.msk.bf16.vlgmr.msra.gmra.mxu1 %vm1248_vm14, %v1338_v9  ;;  %v1315_v53 = vsel %vm1248_vm14, %v4463_v13, 0.0 }
 0x37f   : > { %1316 = vadd.xlane.f32.xlu1 %v1315_v53  ;;  %1591 = vmatpush.bf16.msra.mxu1 %v3554_v7 }
 0x383   : > { %v3701_v20 = vpop.eup %3700  ;;  %1592 = vmatpush.bf16.msra.mxu1 %v3553_v39 }
 0x384   : > { %v1333_v22 = vmul.f32 %v3701_v20, %v3689_v18  ;;  %v1314_v62 = vpop.xlane.xlu1 %1313  ;;  %v1272_v21 = vpop.xlane.xlu2 %1271 }
 0x385   : > { %3702 = vrcp.f32 %v1314_v62  ;;  %v1280_v59 = vsub.f32 %v1247_v6, %v1272_v21 }
 0x386   : > { %v1341_v29 = vpack.c.bf16 %v1333_v22, %v1333_v22 }
 0x387   : > { %v1295_v23 = vmul.f32 1.442695, %v1280_v59  ;;  %v3556_v59 = vld [vmem:[%s4087_s0 + $0x58] sm:$0xff] }
 0x388   : > { %3407 = vmatmul.msk.bf16.vlgmr.msrb.gmra.mxu0 %vm1248_vm14, %v1341_v29 }
 0x389   : > { %3704 = vpow2.f32 %v1295_v23 }
 0x38b   : > { %v3703_v41 = vpop.eup %3702 }
 0x38c   : > { %v1334_v43 = vmul.f32 %v3703_v41, %v3691_v27  ;;  %v1257_v49 = vpop.xlane.xlu1 %1256 }
 0x38d   : > { %v1275_v15 = vsub.f32 %v1242_v40, %v1257_v49  ;;  %v4507_v49 = vld [vmem:[%s4093_s15 + $0x3] ss:$0 sm:$0xff] }
 0x38e   : > { %v1342_v45 = vpack.c.bf16 %v1334_v43, %v1334_v43  ;;  %v3555_v43 = vld [vmem:[%s4087_s0 + $0x50] sm:$0xff] }
 0x38f   : > { %v3705_v46 = vpop.eup %3704  ;;  %v1285_v47 = vmul.f32 1.442695, %v1275_v15 }
 0x390   : > { %3408 = vmatmul.msk.bf16.vlgmr.msrb.gmra.mxu1 %vm1248_vm14, %v1342_v45  ;;  %v1318_v18 = vsel %vm1248_vm14, %v3705_v46, 0.0 }
 0x391   : > { %3706 = vpow2.f32 %v1285_v47  ;;  %1319 = vadd.xlane.f32.xlu0 %v1318_v18  ;;  %v4511_v47 = vld [vmem:[%s4093_s15 + $0x1] ss:$0 sm:$0xff] }
 0x397   : > { %v3707_v48 = vpop.eup %3706 }
 0x398   : > { %3424 = vmatmul.msk.bf16.vlgmr.msra.gmra.mxu0 %vm670_vm1, %v4254_v17  ;;  %v1303_v6 = vsel %vm1248_vm14, %v3707_v48, 0.0 }
 0x399   : > { %1304 = vadd.xlane.f32.xlu2 %v1303_v6 }
 0x3a0   : > { %3441 = vmatmul.msk.bf16.vlgmr.msra.gmra.mxu1 %vm670_vm1, %v4254_v17 }
 0x3a8   : > { %3425 = vmatmul.msk.bf16.gmra.mxu0 %vm670_vm1, %v4272_v32 }
 0x3b0   : > { %3442 = vmatmul.msk.bf16.gmra.mxu1 %vm670_vm1, %v4272_v32 }
 0x3b8   : > { %3426 = vmatmul.msk.bf16.gmra.mxu0 %vm670_vm1, %v4286_v44 }
 0x3c0   : > { %3443 = vmatmul.msk.bf16.gmra.mxu1 %vm670_vm1, %v4286_v44 }
 0x3c8   : > { %3427 = vmatmul.msk.bf16.gmra.mxu0 %vm670_vm1, %v4312_v25 }
 0x3d0   : > { %3444 = vmatmul.msk.bf16.gmra.mxu1 %vm670_vm1, %v4312_v25 }
 0x3ea   : > { %v1308_v27 = vpop.xlane.xlu1 %1307 }
 0x3eb   : > { %3708 = vrcp.f32 %v1308_v27  ;;  %v4489_v40 = vpop.f32.mrf.mxu0 }
 0x3f1   : > { %v3709_v61 = vpop.eup %3708 }
 0x3f2   : > { %v1332_v56 = vmul.f32 %v3709_v61, %v3695_v63  ;;  %v1317_v29 = vpop.xlane.xlu1 %1316 }
 0x3f3   : > { %v1371_v1 = vpop.f32.mrf.mxu0 }
 0x3f4   : > { %v1340_v2 = vpack.c.bf16 %v1332_v56, %v1332_v56 }
 0x3f6   : > { %3406 = vmatmul.msk.bf16.vlgmr.msrb.gmra.mxu3 %vm1248_vm14, %v1340_v2 }
 0x3fb   : > { %v4492_v3 = vpop.f32.mrf.mxu1 }
 0x3fc   : > { %v1506_v4 = vpack.c.bf16 %v4492_v3, %v4489_v40  ;;  %v3557_v40 = vld [vmem:[%s4098_s30 + $0x8] sm:$0xff] }
 0x403   : > { %v1390_v38 = vpop.f32.mrf.mxu1 }
 0x404   : > { %v1320_v50 = vpop.xlane.xlu0 %1319 }
 0x405   : > { %3710 = vrcp.f32 %v1320_v50  ;;  %v4496_v34 = vpop.f32.mrf.mxu0 }
 0x40b   : > { %v3711_v7 = vpop.eup %3710 }
 0x40c   : > { %v1336_v9 = vmul.f32 %v3711_v7, %v3705_v46  ;;  %v1305_v14 = vpop.xlane.xlu2 %1304 }
 0x40d   : > { %3712 = vrcp.f32 %v1305_v14  ;;  %v1447_v63 = vpop.f32.mrf.mxu0  ;;  %v4498_v53 = vpop.f32.mrf.mxu1 }
 0x40e   : > { %v1344_v39 = vpack.c.bf16 %v1336_v9, %v1336_v9  ;;  %v1508_v20 = vpack.c.bf16 %v4498_v53, %v4496_v34  ;;  %3714 = vrcp.f32 %v1317_v29 }
 0x410   : > { %3410 = vmatmul.msk.bf16.vlgmr.msra.gmra.mxu3 %vm1248_vm14, %v1344_v39 }
 0x413   : > { %v3713_v22 = vpop.eup %3712 }
 0x414   : > { %v1331_v62 = vmul.f32 %v3713_v22, %v3707_v48  ;;  %v3715_v46 = vpop.eup %3714 }
 0x415   : > { %v1466_v21 = vpop.f32.mrf.mxu1  ;;  %v1543_v41 = vpop.f32.mrf.mxu0  ;;  %v1335_v6 = vmul.f32 %v3715_v46, %v4463_v13 }
 0x416   : > { %v1339_v23 = vpack.c.bf16 %v1331_v62, %v1331_v62  ;;  %v1544_v61 = vadd.f32 %v4511_v47, %v1543_v41 }
 0x417   : > { %v1343_v1 = vpack.c.bf16 %v1335_v6, %v1335_v6 }
 0x418   : > { %3405 = vmatmul.msk.bf16.vlgmr.msra.gmra.mxu2 %vm1248_vm14, %v1339_v23  ;;  %v1665_v38 = vpack.c.bf16 %v1544_v61, %v1544_v61 }
 0x419   : > { %1642 = vmatpush.bf16.msra.mxu2 %v3556_v59 }
 0x41d   : > { %v1594_v15 = vpop.f32.mrf.mxu1  ;;  %1643 = vmatpush.bf16.msra.mxu2 %v3555_v43  ;;  %v1545_v48 = vpop.f32.mrf.mxu0 }
 0x41e   : > { %v1595_v45 = vadd.f32 %v4507_v49, %v1594_v15  ;;  %v1546_v22 = vadd.f32 %v4511_v47, %v1545_v48 }
 0x420   : > { %v1673_v18 = vpack.c.bf16 %v1595_v45, %v1595_v45  ;;  %v1666_v29 = vpack.c.bf16 %v1546_v22, %v1546_v22 }
 0x422   : > { %v1685_v27 = vsel %vm1055_vm11, %v1673_v18, 0 }
 0x423   : > { %1694 = vmatpush.bf16.xpose.msrb.mxu3 %v1685_v27 }
 0x425   : > { %v1596_v56 = vpop.f32.mrf.mxu1  ;;  %v1548_v9 = vpop.f32.mrf.mxu0 }
 0x426   : > { %v1597_v2 = vadd.f32 %v4507_v49, %v1596_v56  ;;  %v1549_v48 = vadd.f32 %v4511_v47, %v1548_v9 }
 0x428   : > { %v1674_v50 = vpack.c.bf16 %v1597_v2, %v1597_v2  ;;  %3409 = vmatmul.msk.bf16.vlgmr.msrb.gmra.mxu2 %vm1248_vm14, %v1343_v1  ;;  %v1667_v61 = vpack.c.bf16 %v1549_v48, %v1549_v48 }
 0x42a   : > { %v1704_v7 = vsel %vm1055_vm11, %v1674_v50, 0  ;;  %3462 = vmatmul.msk.bf16.vlgmr.msrb.gmra.mxu3 %vm1055_vm11, %v1665_v38 }
 0x42b   : > { %1713 = vmatpush.bf16.xpose.msra.mxu3 %v1704_v7 }
 0x42d   : > { %v1599_v13 = vpop.f32.mrf.mxu1  ;;  %v1550_v62 = vpop.f32.mrf.mxu0 }
 0x42e   : > { %v1600_v14 = vadd.f32 %v4507_v49, %v1599_v13 }
 0x430   : > { %v1675_v63 = vpack.c.bf16 %v1600_v14, %v1600_v14 }
 0x432   : > { %v1723_v39 = vsel %vm1055_vm11, %v1675_v63, 0 }
 0x433   : > { %1732 = vmatpush.bf16.xpose.msrb.mxu3 %v1723_v39 }
 0x435   : > { %v1601_v21 = vpop.f32.mrf.mxu1  ;;  %v1553_v45 = vpop.f32.mrf.mxu0 }
 0x436   : > { %v1602_v59 = vadd.f32 %v4507_v49, %v1601_v21  ;;  %v1554_v6 = vadd.f32 %v4511_v47, %v1553_v45 }
 0x438   : > { %v1676_v23 = vpack.c.bf16 %v1602_v59, %v1602_v59  ;;  %3458 = vmatmul.msk.bf16.vlgmr.msra.gmra.mxu2 %vm670_vm1, %v4254_v17  ;;  %v1669_v56 = vpack.c.bf16 %v1554_v6, %v1554_v6 }
 0x43a   : > { %v1742_v41 = vsel %vm1055_vm11, %v1676_v23, 0  ;;  %3463 = vmatmul.msk.bf16.vlgmr.msra.gmra.mxu3 %vm1055_vm11, %v1666_v29 }
 0x43b   : > { %1751 = vmatpush.bf16.xpose.msra.mxu3 %v1742_v41 }
 0x43d   : > { %v1604_v43 = vpop.f32.mrf.mxu1  ;;  %v1555_v2 = vpop.f32.mrf.mxu0 }
 0x43e   : > { %v1605_v15 = vadd.f32 %v4507_v49, %v1604_v43  ;;  %v1556_v50 = vadd.f32 %v4511_v47, %v1555_v2 }
 0x440   : > { %v1677_v46 = vpack.c.bf16 %v1605_v15, %v1605_v15  ;;  %v1670_v13 = vpack.c.bf16 %v1556_v50, %v1556_v50  ;;  %v4573_v50 = vld [vmem:[%s4093_s15 + $0x5] ss:$0 sm:$0xff]  ;;  %s5183_s15 = sld [smem:[#allocation23_spill]] (!%p3528_p2) }
 0x442   : > { %v1761_v18 = vsel %vm1055_vm11, %v1677_v46, 0 }
 0x443   : > { %1770 = vmatpush.bf16.xpose.msrb.mxu0 %v1761_v18 }
 0x445   : > { %v1606_v27 = vpop.f32.mrf.mxu1  ;;  %v1558_v21 = vpop.f32.mrf.mxu0 }
 0x446   : > { %v1607_v17 = vadd.f32 %v4507_v49, %v1606_v27 }
 0x448   : > { %v1678_v1 = vpack.c.bf16 %v1607_v17, %v1607_v17  ;;  %3459 = vmatmul.msk.bf16.gmra.mxu2 %vm670_vm1, %v4272_v32  ;;  %v1551_v32 = vadd.f32 %v4511_v47, %v1550_v62 }
 0x44a   : > { %v1780_v38 = vsel %vm1055_vm11, %v1678_v1, 0  ;;  %3464 = vmatmul.msk.bf16.vlgmr.msrb.gmra.mxu3 %vm1055_vm11, %v1667_v61  ;;  %3466 = vmatmul.msk.bf16.vlgmr.msrb.gmra.mxu0 %vm1055_vm11, %v1669_v56  ;;  %v1668_v59 = vpack.c.bf16 %v1551_v32, %v1551_v32 }
 0x44b   : > { %1789 = vmatpush.bf16.xpose.msrb.mxu1 %v1780_v38 }
 0x44d   : > { %v1609_v7 = vpop.f32.mrf.mxu1  ;;  %v1560_v41 = vpop.f32.mrf.mxu0 }
 0x44e   : > { %v1610_v9 = vadd.f32 %v4507_v49, %v1609_v7  ;;  %v1561_v43 = vadd.f32 %v4511_v47, %v1560_v41 }
 0x450   : > { %v1679_v14 = vpack.c.bf16 %v1610_v9, %v1610_v9  ;;  %v1672_v15 = vpack.c.bf16 %v1561_v43, %v1561_v43 }
 0x452   : > { %v1799_v63 = vsel %vm1055_vm11, %v1679_v14, 0  ;;  %3467 = vmatmul.msk.bf16.vlgmr.msrb.gmra.mxu1 %vm1055_vm11, %v1670_v13 }
 0x453   : > { %1808 = vmatpush.bf16.xpose.msrb.mxu2 %v1799_v63 }
 0x455   : > { %v1611_v39 = vpop.f32.mrf.mxu1 }
 0x456   : > { %v1612_v22 = vadd.f32 %v4507_v49, %v1611_v39  ;;  %v1559_v49 = vadd.f32 %v4511_v47, %v1558_v21 }
 0x458   : > { %v1680_v29 = vpack.c.bf16 %v1612_v22, %v1612_v22  ;;  %3460 = vmatmul.msk.bf16.gmra.mxu2 %vm670_vm1, %v4286_v44  ;;  %v1671_v62 = vpack.c.bf16 %v1559_v49, %v1559_v49 }
 0x45a   : > { %v1818_v23 = vsel %vm1055_vm11, %v1680_v29, 0  ;;  %3465 = vmatmul.msk.bf16.vlgmr.msra.gmra.mxu3 %vm1055_vm11, %v1668_v59 }
 0x45b   : > { %1827 = vmatpush.bf16.xpose.msrb.mxu3 %v1818_v23 }
 0x468   : > { %3461 = vmatmul.msk.bf16.gmra.mxu2 %vm670_vm1, %v4312_v25 }
 0x46a   : > { %3469 = vmatmul.msk.bf16.vlgmr.msrb.gmra.mxu3 %vm1055_vm11, %v1672_v15 }
 0x478   : > { %3468 = vmatmul.msk.bf16.vlgmr.msrb.gmra.mxu2 %vm1055_vm11, %v1671_v62 }
 0x479   : > { %v4554_v44 = vpop.f32.mrf.mxu3 }
 0x481   : > { %v1428_v45 = vpop.f32.mrf.mxu3 }
 0x493   : > { %v4556_v46 = vpop.f32.mrf.mxu3 }
 0x49b   : > { %v4558_v18 = vpop.f32.mrf.mxu2  ;;  %v1504_v48 = vpop.f32.mrf.mxu3 }
 0x49c   : > { %v1507_v6 = vpack.c.bf16 %v4554_v44, %v4558_v18 }
 0x4a3   : > { %v1409_v25 = vpop.f32.mrf.mxu2 }
 0x4ab   : > { %v4562_v27 = vpop.f32.mrf.mxu2 }
 0x4ac   : > { %v1509_v47 = vpack.c.bf16 %v4556_v46, %v4562_v27 }
 0x4ad   : > { %v1696_v17 = vpop.f32.mrf.mxu3 }
 0x4ae   : > { %v1833_v61 = vmul.f32 0.25, %v1696_v17 }
 0x4b0   : > { %v4568_v56 = vadd.f32 %v1833_v61, %v1224_v60 }
 0x4b2   : > { %v1849_v1 = vsel %vm1248_vm14, %v4568_v56, -inf }
 0x4b3   : > { %1850 = vmax.xlane.f32.xlu2 %v1849_v1  ;;  %v1485_v2 = vpop.f32.mrf.mxu2 }
 0x4b5   : > { %v1698_v38 = vpop.f32.mrf.mxu3 }
 0x4bb   : > { %v1645_v7 = vpop.f32.mrf.mxu2 }
 0x4bc   : > { %v1646_v9 = vadd.f32 %v4573_v50, %v1645_v7 }
 0x4bd   : > { %v1715_v13 = vpop.f32.mrf.mxu3 }
 0x4be   : > { %v1945_v14 = vpack.c.bf16 %v1646_v9, %v1646_v9  ;;  %v1834_v63 = vmul.f32 0.25, %v1715_v13 }
 0x4c0   : > { %v1957_v32 = vsel %vm1356_vm13, %v1945_v14, 0  ;;  %v4579_v19 = vadd.f32 %v1834_v63, %v1225_v0 }
 0x4c1   : > { %1966 = vmatpush.bf16.msra.mxu0 %v1957_v32 }
 0x4c2   : > { %v1852_v60 = vsel %vm1248_vm14, %v4579_v19, -inf }
 0x4c3   : > { %1853 = vmax.xlane.f32.xlu0 %v1852_v60  ;;  %v1647_v39 = vpop.f32.mrf.mxu2 }
 0x4c4   : > { %v1648_v22 = vadd.f32 %v4573_v50, %v1647_v39 }
 0x4c5   : > { %v1717_v21 = vpop.f32.mrf.mxu3 }
 0x4c6   : > { %v1946_v59 = vpack.c.bf16 %v1648_v22, %v1648_v22 }
 0x4c7   : > { %v1772_v29 = vpop.f32.mrf.mxu0 }
 0x4c8   : > { %v1976_v23 = vsel %vm1356_vm13, %v1946_v59, 0  ;;  %v1837_v41 = vmul.f32 0.25, %v1772_v29 }
 0x4c9   : > { %1985 = vmatpush.bf16.msra.mxu1 %v1976_v23 }
 0x4ca   : > { %v4587_v55 = vadd.f32 %v1837_v41, %v1228_v8 }
 0x4cb   : > { %v1650_v0 = vpop.f32.mrf.mxu2 }
 0x4cc   : > { %v1651_v43 = vadd.f32 %v4573_v50, %v1650_v0  ;;  %v1861_v15 = vsel %vm1248_vm14, %v4587_v55, -inf }
 0x4cd   : > { %1862 = vmax.xlane.f32.xlu0 %v1861_v15  ;;  %v1734_v49 = vpop.f32.mrf.mxu3 }
 0x4ce   : > { %v1947_v62 = vpack.c.bf16 %v1651_v43, %v1651_v43  ;;  %v1835_v45 = vmul.f32 0.25, %v1734_v49 }
 0x4cf   : > { %v1774_v48 = vpop.f32.mrf.mxu0  ;;  %v1791_v25 = vpop.f32.mrf.mxu1 }
 0x4d0   : > { %v1995_v17 = vsel %vm1356_vm13, %v1947_v62, 0  ;;  %v4595_v61 = vadd.f32 %v1835_v45, %v1226_v31  ;;  %v1838_v5 = vmul.f32 0.25, %v1791_v25 }
 0x4d1   : > { %2004 = vmatpush.bf16.msra.mxu2 %v1995_v17 }
 0x4d2   : > { %v1855_v8 = vsel %vm1248_vm14, %v4595_v61, -inf  ;;  %v4602_v9 = vadd.f32 %v1838_v5, %v1229_v16 }
 0x4d3   : > { %1856 = vmax.xlane.f32.xlu1 %v1855_v8  ;;  %v1652_v1 = vpop.f32.mrf.mxu2 }
 0x4d4   : > { %v1653_v2 = vadd.f32 %v4573_v50, %v1652_v1  ;;  %v1864_v31 = vsel %vm1248_vm14, %v4602_v9, -inf }
 0x4d5   : > { %v1736_v38 = vpop.f32.mrf.mxu3 }
 0x4d6   : > { %v1948_v7 = vpack.c.bf16 %v1653_v2, %v1653_v2 }
 0x4d7   : > { %v1793_v13 = vpop.f32.mrf.mxu1 }
 0x4d8   : > { %v2014_v26 = vsel %vm1356_vm13, %v1948_v7, 0 }
 0x4d9   : > { %2023 = vmatpush.bf16.msra.mxu3 %v2014_v26 }
 0x4db   : > { %1865 = vmax.xlane.f32.xlu1 %v1864_v31  ;;  %v1655_v14 = vpop.f32.mrf.mxu2 }
 0x4dc   : > { %v1656_v63 = vadd.f32 %v4573_v50, %v1655_v14 }
 0x4dd   : > { %v1753_v32 = vpop.f32.mrf.mxu3 }
 0x4de   : > { %v1949_v60 = vpack.c.bf16 %v1656_v63, %v1656_v63  ;;  %v1836_v39 = vmul.f32 0.25, %v1753_v32 }
 0x4e0   : > { %v2033_v22 = vsel %vm1356_vm13, %v1949_v60, 0  ;;  %v4611_v51 = vadd.f32 %v1836_v39, %v1227_v42 }
 0x4e1   : > { %2042 = vmatpush.bf16.msrb.mxu0 %v2033_v22 }
 0x4e2   : > { %v1858_v16 = vsel %vm1248_vm14, %v4611_v51, -inf }
 0x4e3   : > { %1859 = vmax.xlane.f32.xlu2 %v1858_v16  ;;  %v1657_v21 = vpop.f32.mrf.mxu2 }
 0x4e4   : > { %v1658_v59 = vadd.f32 %v4573_v50, %v1657_v21 }
 0x4e5   : > { %v1755_v29 = vpop.f32.mrf.mxu3 }
 0x4e6   : > { %v1950_v23 = vpack.c.bf16 %v1658_v59, %v1658_v59 }
 0x4e8   : > { %v2052_v41 = vsel %vm1356_vm13, %v1950_v23, 0 }
 0x4e9   : > { %2061 = vmatpush.bf16.msrb.mxu1 %v2052_v41 }
 0x4eb   : > { %v1660_v0 = vpop.f32.mrf.mxu2 }
 0x4ec   : > { %v1661_v43 = vadd.f32 %v4573_v50, %v1660_v0 }
 0x4ed   : > { %v1829_v15 = vpop.f32.mrf.mxu3 }
 0x4ee   : > { %v1951_v33 = vpack.c.bf16 %v1661_v43, %v1661_v43  ;;  %v1840_v42 = vmul.f32 0.25, %v1829_v15 }
 0x4f0   : > { %v2071_v49 = vsel %vm1356_vm13, %v1951_v33, 0  ;;  %v1848_v62 = vadd.f32 %v1840_v42, %v1231_v24 }
 0x4f1   : > { %2080 = vmatpush.bf16.msrb.mxu2 %v2071_v49 }
 0x4f2   : > { %v1870_v45 = vsel %vm1248_vm14, %v1848_v62, -inf }
 0x4f3   : > { %1871 = vmax.xlane.f32.xlu0 %v1870_v45  ;;  %v1662_v48 = vpop.f32.mrf.mxu2 }
 0x4f4   : > { %v1663_v25 = vadd.f32 %v4573_v50, %v1662_v48 }
 0x4f5   : > { %v1831_v17 = vpop.f32.mrf.mxu3 }
 0x4f6   : > { %v1952_v5 = vpack.c.bf16 %v1663_v25, %v1663_v25 }
 0x4f8   : > { %v2090_v8 = vsel %vm1356_vm13, %v1952_v5, 0 }
 0x4f9   : > { %2099 = vmatpush.bf16.msrb.mxu3 %v2090_v8 }
 0x4fb   : > { %v1810_v1 = vpop.f32.mrf.mxu2 }
 0x4fc   : > { %v1839_v2 = vmul.f32 0.25, %v1810_v1 }
 0x4fe   : > { %v1847_v38 = vadd.f32 %v1839_v2, %v1230_v52 }
 0x500   : > { %v1867_v10 = vsel %vm1248_vm14, %v1847_v38, -inf }
 0x501   : > { %1868 = vmax.xlane.f32.xlu2 %v1867_v10 }
 0x503   : > { %v1812_v24 = vpop.f32.mrf.mxu2 }
 0x526   : > { %v1851_v7 = vpop.xlane.xlu2 %1850 }
 0x527   : > { %v1873_v13 = vsub.f32 %v4568_v56, %v1851_v7 }
 0x529   : > { %v1881_v26 = vmul.f32 1.442695, %v1873_v13 }
 0x52b   : > { %3716 = vpow2.f32 %v1881_v26 }
 0x531   : > { %v3717_v50 = vpop.eup %3716 }
 0x532   : > { %v1897_v31 = vsel %vm1248_vm14, %v3717_v50, 0.0 }
 0x533   : > { %1898 = vadd.xlane.f32.xlu1 %v1897_v31 }
 0x536   : > { %v1854_v14 = vpop.xlane.xlu0 %1853 }
 0x537   : > { %v1874_v63 = vsub.f32 %v4579_v19, %v1854_v14 }
 0x539   : > { %v1883_v32 = vmul.f32 1.442695, %v1874_v63 }
 0x53b   : > { %3718 = vpow2.f32 %v1883_v32 }
 0x540   : > { %v1863_v54 = vpop.xlane.xlu0 %1862 }
 0x541   : > { %v3719_v52 = vpop.eup %3718  ;;  %v1877_v60 = vsub.f32 %v4587_v55, %v1863_v54 }
 0x542   : > { %v1900_v39 = vsel %vm1248_vm14, %v3719_v52, 0.0 }
 0x543   : > { %v1889_v22 = vmul.f32 1.442695, %v1877_v60  ;;  %1901 = vadd.xlane.f32.xlu2 %v1900_v39  ;;  %v3550_v39 = vld [vmem:[%s4098_s30] sm:$0xff] }
 0x545   : > { %3720 = vpow2.f32 %v1889_v22 }
 0x546   : > { %v1857_v56 = vpop.xlane.xlu1 %1856 }
 0x547   : > { %v1875_v16 = vsub.f32 %v4595_v61, %v1857_v56 }
 0x549   : > { %v1885_v21 = vmul.f32 1.442695, %v1875_v16 }
 0x54b   : > { %v3721_v59 = vpop.eup %3720  ;;  %3722 = vpow2.f32 %v1885_v21 }
 0x54c   : > { %v1909_v29 = vsel %vm1248_vm14, %v3721_v59, 0.0 }
 0x54d   : > { %1910 = vadd.xlane.f32.xlu2 %v1909_v29 }
 0x54e   : > { %v1866_v19 = vpop.xlane.xlu1 %1865 }
 0x54f   : > { %v1878_v23 = vsub.f32 %v4602_v9, %v1866_v19 }
 0x551   : > { %v3723_v41 = vpop.eup %3722  ;;  %v1891_v0 = vmul.f32 1.442695, %v1878_v23 }
 0x552   : > { %v1903_v55 = vsel %vm1248_vm14, %v3723_v41, 0.0 }
 0x553   : > { %3724 = vpow2.f32 %v1891_v0  ;;  %1904 = vadd.xlane.f32.xlu0 %v1903_v55 }
 0x556   : > { %v1860_v43 = vpop.xlane.xlu2 %1859 }
 0x557   : > { %v1876_v15 = vsub.f32 %v4611_v51, %v1860_v43 }
 0x559   : > { %v3725_v33 = vpop.eup %3724  ;;  %v1887_v61 = vmul.f32 1.442695, %v1876_v15 }
 0x55a   : > { %v1912_v42 = vsel %vm1248_vm14, %v3725_v33, 0.0 }
 0x55b   : > { %3726 = vpow2.f32 %v1887_v61  ;;  %1913 = vadd.xlane.f32.xlu0 %v1912_v42 }
 0x561   : > { %v3727_v49 = vpop.eup %3726 }
 0x562   : > { %v1906_v45 = vsel %vm1248_vm14, %v3727_v49, 0.0 }
 0x563   : > { %1907 = vadd.xlane.f32.xlu1 %v1906_v45 }
 0x566   : > { %v1872_v9 = vpop.xlane.xlu0 %1871 }
 0x567   : > { %v1880_v48 = vsub.f32 %v1848_v62, %v1872_v9 }
 0x569   : > { %v1895_v25 = vmul.f32 1.442695, %v1880_v48 }
 0x56b   : > { %3728 = vpow2.f32 %v1895_v25 }
 0x571   : > { %v3729_v17 = vpop.eup %3728 }
 0x572   : > { %v1918_v5 = vsel %vm1248_vm14, %v3729_v17, 0.0 }
 0x573   : > { %1919 = vadd.xlane.f32.xlu2 %v1918_v5 }
 0x574   : > { %v1869_v8 = vpop.xlane.xlu2 %1868 }
 0x575   : > { %v1879_v51 = vsub.f32 %v1847_v38, %v1869_v8 }
 0x577   : > { %v1893_v1 = vmul.f32 1.442695, %v1879_v51 }
 0x579   : > { %3730 = vpow2.f32 %v1893_v1 }
 0x57f   : > { %v3731_v2 = vpop.eup %3730 }
 0x580   : > { %v1915_v10 = vsel %vm1248_vm14, %v3731_v2, 0.0 }
 0x581   : > { %1916 = vadd.xlane.f32.xlu1 %v1915_v10 }
 0x5a6   : > { %v1899_v24 = vpop.xlane.xlu1 %1898 }
 0x5a7   : > { %3732 = vrcp.f32 %v1899_v24 }
 0x5ad   : > { %v3733_v7 = vpop.eup %3732 }
 0x5ae   : > { %v1929_v13 = vmul.f32 %v3733_v7, %v3717_v50 }
 0x5b0   : > { %v1937_v62 = vpack.c.bf16 %v1929_v13, %v1929_v13  ;;  %v4676_v13 = vld [vmem:[%s582_s18] ss:$0 sm:$0xff] }
 0x5b2   : > { %3470 = vmatmul.msk.bf16.vlgmr.msra.gmra.mxu0 %vm1248_vm14, %v1937_v62  ;;  %v3780_v62 = vld [vmem:[#allocation2] sm:$0xff] }
 0x5b3   : > { %2137 = vmatpush.bf16.msra.mxu0 %v3557_v40 }
 0x5b6   : > { %v1902_v26 = vpop.xlane.xlu2 %1901 }
 0x5b7   : > { %3734 = vrcp.f32 %v1902_v26 }
 0x5bd   : > { %v3735_v31 = vpop.eup %3734 }
 0x5be   : > { %v1930_v14 = vmul.f32 %v3735_v31, %v3719_v52 }
 0x5c0   : > { %v1938_v63 = vpack.c.bf16 %v1930_v14, %v1930_v14  ;;  %v1911_v38 = vpop.xlane.xlu2 %1910 }
 0x5c1   : > { %3736 = vrcp.f32 %v1911_v38 }
 0x5c2   : > { %3471 = vmatmul.msk.bf16.vlgmr.msra.gmra.mxu1 %vm1248_vm14, %v1938_v63 }
 0x5c3   : > { %2184 = vmatpush.bf16.msra.mxu1 %v3550_v39 }
 0x5c6   : > { %v1905_v32 = vpop.xlane.xlu0 %1904 }
 0x5c7   : > { %v3737_v54 = vpop.eup %3736  ;;  %3738 = vrcp.f32 %v1905_v32 }
 0x5c8   : > { %v1933_v60 = vmul.f32 %v3737_v54, %v3721_v59  ;;  %v3781_v54 = vld [vmem:[#allocation2 + $0x8] sm:$0xff] }
 0x5ca   : > { %v1941_v22 = vpack.c.bf16 %v1933_v60, %v1933_v60 }
 0x5cc   : > { %3474 = vmatmul.msk.bf16.vlgmr.msrb.gmra.mxu0 %vm1248_vm14, %v1941_v22 }
 0x5cd   : > { %v3739_v50 = vpop.eup %3738 }
 0x5ce   : > { %v1931_v56 = vmul.f32 %v3739_v50, %v3723_v41  ;;  %v1914_v16 = vpop.xlane.xlu0 %1913 }
 0x5cf   : > { %3740 = vrcp.f32 %v1914_v16 }
 0x5d0   : > { %v1939_v21 = vpack.c.bf16 %v1931_v56, %v1931_v56 }
 0x5d2   : > { %3472 = vmatmul.msk.bf16.vlgmr.msra.gmra.mxu2 %vm1248_vm14, %v1939_v21 }
 0x5d5   : > { %v3741_v52 = vpop.eup %3740 }
 0x5d6   : > { %v1934_v29 = vmul.f32 %v3741_v52, %v3725_v33  ;;  %v1908_v19 = vpop.xlane.xlu1 %1907  ;;  %v3782_v52 = vld [vmem:[#allocation2 + $0x10] sm:$0xff] }
 0x5d7   : > { %3742 = vrcp.f32 %v1908_v19 }
 0x5d8   : > { %v1942_v23 = vpack.c.bf16 %v1934_v29, %v1934_v29 }
 0x5da   : > { %3475 = vmatmul.msk.bf16.vlgmr.msrb.gmra.mxu1 %vm1248_vm14, %v1942_v23 }
 0x5dd   : > { %v3743_v59 = vpop.eup %3742 }
 0x5de   : > { %v1932_v0 = vmul.f32 %v3743_v59, %v3727_v49 }
 0x5e0   : > { %v1940_v55 = vpack.c.bf16 %v1932_v0, %v1932_v0 }
 0x5e2   : > { %3473 = vmatmul.msk.bf16.vlgmr.msra.gmra.mxu3 %vm1248_vm14, %v1940_v55  ;;  %v3783_v55 = vld [vmem:[#allocation2 + $0x18] sm:$0xff] }
 0x5e6   : > { %v1920_v43 = vpop.xlane.xlu2 %1919 }
 0x5e7   : > { %3744 = vrcp.f32 %v1920_v43 }
 0x5ea   : > { %3492 = vmatmul.msk.bf16.vlgmr.msra.gmra.mxu1 %vm1055_vm11, %v1506_v4 }
 0x5ed   : > { %v3745_v41 = vpop.eup %3744 }
 0x5ee   : > { %v1936_v15 = vmul.f32 %v3745_v41, %v3729_v17 }
 0x5f0   : > { %v1944_v33 = vpack.c.bf16 %v1936_v15, %v1936_v15 }
 0x5f2   : > { %3477 = vmatmul.msk.bf16.vlgmr.msrb.gmra.mxu3 %vm1248_vm14, %v1944_v33 }
 0x5f4   : > { %v1917_v61 = vpop.xlane.xlu1 %1916 }
 0x5f5   : > { %3746 = vrcp.f32 %v1917_v61 }
 0x5fa   : > { %3493 = vmatmul.msk.bf16.gmra.mxu1 %vm1055_vm11, %v1507_v6 }
 0x5fb   : > { %v3747_v42 = vpop.eup %3746 }
 0x5fc   : > { %v1935_v49 = vmul.f32 %v3747_v42, %v3731_v2 }
 0x5fe   : > { %v1943_v45 = vpack.c.bf16 %v1935_v49, %v1935_v49  ;;  %v3784_v49 = vld [vmem:[#allocation2 + $0x20] sm:$0xff] }
 0x600   : > { %3476 = vmatmul.msk.bf16.vlgmr.msrb.gmra.mxu2 %vm1248_vm14, %v1943_v45 }
 0x60a   : > { %3494 = vmatmul.msk.bf16.gmra.mxu1 %vm1055_vm11, %v1508_v20 }
 0x61a   : > { %3495 = vmatmul.msk.bf16.gmra.mxu1 %vm1055_vm11, %v1509_v47 }
 0x62f   : > { %v1968_v3 = vpop.f32.mrf.mxu0 }
 0x637   : > { %v1970_v4 = vpop.f32.mrf.mxu0 }
 0x63f   : > { %v1987_v44 = vpop.f32.mrf.mxu1 }
 0x640   : > { %v2105_v18 = vpack.c.bf16 %v1987_v44, %v1968_v3 }
 0x642   : > { %3484 = vmatmul.msk.bf16.vlgmr.msra.gmra.mxu0 %vm1055_vm11, %v2105_v18 }
 0x647   : > { %v1989_v6 = vpop.f32.mrf.mxu1 }
 0x648   : > { %v3785_v6 = vld [vmem:[#allocation2 + $0x28] sm:$0xff] }
 0x649   : > { %v2044_v9 = vpop.f32.mrf.mxu0 }
 0x651   : > { %v2046_v48 = vpop.f32.mrf.mxu0 }
 0x655   : > { %v2006_v25 = vpop.f32.mrf.mxu2 }
 0x657   : > { %v2063_v34 = vpop.f32.mrf.mxu1 }
 0x658   : > { %v2107_v5 = vpack.c.bf16 %v2063_v34, %v2044_v9 }
 0x65d   : > { %v2008_v53 = vpop.f32.mrf.mxu2 }
 0x65f   : > { %v2065_v20 = vpop.f32.mrf.mxu1 }
 0x665   : > { %v2025_v17 = vpop.f32.mrf.mxu3 }
 0x666   : > { %v2106_v46 = vpack.c.bf16 %v2025_v17, %v2006_v25  ;;  %v3786_v17 = vld [vmem:[#allocation2 + $0x30] sm:$0xff] }
 0x667   : > { %v2186_v10 = vpop.f32.mrf.mxu1 }
 0x668   : > { %3485 = vmatmul.msk.bf16.gmra.mxu0 %vm1055_vm11, %v2106_v46 }
 0x66d   : > { %v2027_v27 = vpop.f32.mrf.mxu3 }
 0x66f   : > { %v2188_v63 = vpop.f32.mrf.mxu1 }
 0x675   : > { %v2101_v47 = vpop.f32.mrf.mxu3 }
 0x677   : > { %v2191_v50 = vpop.f32.mrf.mxu1 }
 0x678   : > { %3486 = vmatmul.msk.bf16.gmra.mxu0 %vm1055_vm11, %v2107_v5 }
 0x67d   : > { %v2103_v8 = vpop.f32.mrf.mxu3 }
 0x67f   : > { %v2193_v21 = vpop.f32.mrf.mxu1 }
 0x683   : > { %v2082_v51 = vpop.f32.mrf.mxu2 }
 0x684   : > { %v2108_v1 = vpack.c.bf16 %v2101_v47, %v2082_v51 }
 0x687   : > { %v2196_v41 = vpop.f32.mrf.mxu1 }
 0x688   : > { %3487 = vmatmul.msk.bf16.gmra.mxu0 %vm1055_vm11, %v2108_v1 }
 0x68b   : > { %v2084_v2 = vpop.f32.mrf.mxu2 }
 0x68f   : > { %v2198_v3 = vpop.f32.mrf.mxu1 }
 0x697   : > { %v2201_v34 = vpop.f32.mrf.mxu1 }
 0x69f   : > { %v2203_v1 = vpop.f32.mrf.mxu1 }
 0x6bf   : > { %v2139_v24 = vpop.f32.mrf.mxu0 }
 0x6c0   : > { %v2187_v7 = vadd.f32 %v2186_v10, %v2139_v24 }
 0x6c2   : > { %v2206_v26 = vadd.f32 %v3780_v62, %v2187_v7  ;;  %v3787_v7 = vld [vmem:[#allocation2 + $0x38] sm:$0xff] }
 0x6c4   : > { %v4679_v31 = vadd.f32 %v4676_v13, %v2206_v26 }
 0x6c6   : > { %v2226_v14 = vsel %vm670_vm1, %v4679_v31, 0.0 }
 0x6c7   : > { %2227 = vadd.xlane.f32.xlu0 %v2226_v14  ;;  %v2141_v38 = vpop.f32.mrf.mxu0 }
 0x6c8   : > { %v2189_v32 = vadd.f32 %v2188_v63, %v2141_v38 }
 0x6ca   : > { %v2207_v60 = vadd.f32 %v3781_v54, %v2189_v32 }
 0x6cc   : > { %v4684_v39 = vadd.f32 %v4676_v13, %v2207_v60 }
 0x6ce   : > { %v2229_v22 = vsel %vm670_vm1, %v4684_v39, 0.0 }
 0x6cf   : > { %2230 = vadd.xlane.f32.xlu1 %v2229_v22 }
 0x6e5   : > { %v2144_v56 = vpop.f32.mrf.mxu0 }
 0x6e6   : > { %v2192_v16 = vadd.f32 %v2191_v50, %v2144_v56 }
 0x6e8   : > { %v2208_v29 = vadd.f32 %v3782_v52, %v2192_v16 }
 0x6ea   : > { %v4689_v19 = vadd.f32 %v4676_v13, %v2208_v29 }
 0x6ec   : > { %v2232_v23 = vsel %vm670_vm1, %v4689_v19, 0.0 }
 0x6ed   : > { %2233 = vadd.xlane.f32.xlu2 %v2232_v23  ;;  %v2146_v59 = vpop.f32.mrf.mxu0 }
 0x6ee   : > { %v2194_v0 = vadd.f32 %v2193_v21, %v2146_v59 }
 0x6f0   : > { %v2209_v43 = vadd.f32 %v3783_v55, %v2194_v0 }
 0x6f2   : > { %v4694_v15 = vadd.f32 %v4676_v13, %v2209_v43 }
 0x6f4   : > { %v2235_v33 = vsel %vm670_vm1, %v4694_v15, 0.0 }
 0x6f5   : > { %2236 = vadd.xlane.f32.xlu0 %v2235_v33  ;;  %v2149_v61 = vpop.f32.mrf.mxu0 }
 0x6f6   : > { %v2197_v42 = vadd.f32 %v2196_v41, %v2149_v61 }
 0x6f8   : > { %v2210_v45 = vadd.f32 %v3784_v49, %v2197_v42 }
 0x6fa   : > { %v4699_v40 = vadd.f32 %v4676_v13, %v2210_v45 }
 0x6fc   : > { %v2238_v4 = vsel %vm670_vm1, %v4699_v40, 0.0 }
 0x6fd   : > { %2239 = vadd.xlane.f32.xlu1 %v2238_v4  ;;  %v2151_v44 = vpop.f32.mrf.mxu0 }
 0x6fe   : > { %v2199_v18 = vadd.f32 %v2198_v3, %v2151_v44 }
 0x700   : > { %v2211_v9 = vadd.f32 %v3785_v6, %v2199_v18 }
 0x702   : > { %v4704_v48 = vadd.f32 %v4676_v13, %v2211_v9 }
 0x704   : > { %v2241_v25 = vsel %vm670_vm1, %v4704_v48, 0.0 }
 0x705   : > { %2242 = vadd.xlane.f32.xlu2 %v2241_v25  ;;  %v2154_v53 = vpop.f32.mrf.mxu0 }
 0x706   : > { %v2202_v20 = vadd.f32 %v2201_v34, %v2154_v53 }
 0x708   : > { %v2212_v46 = vadd.f32 %v3786_v17, %v2202_v20  ;;  %v3559_v20 = vld [vmem:[%s4107_s13 + $0x8] sm:$0xff] }
 0x709   : > { %2462 = vmatpush.bf16.msra.mxu2 %v3559_v20 }
 0x70a   : > { %v4709_v27 = vadd.f32 %v4676_v13, %v2212_v46  ;;  %v3558_v46 = vld [vmem:[%s4107_s13] sm:$0xff] }
 0x70c   : > { %v2244_v47 = vsel %vm670_vm1, %v4709_v27, 0.0 }
 0x70d   : > { %2245 = vadd.xlane.f32.xlu2 %v2244_v47  ;;  %v2156_v5 = vpop.f32.mrf.mxu0  ;;  %2463 = vmatpush.bf16.msra.mxu2 %v3558_v46 }
 0x70e   : > { %v2204_v2 = vadd.f32 %v2203_v1, %v2156_v5 }
 0x710   : > { %v2213_v62 = vadd.f32 %v3787_v7, %v2204_v2 }
 0x712   : > { %v4722_v38 = vadd.f32 %v4676_v13, %v2213_v62 }
 0x714   : > { %v2247_v22 = vsel %vm670_vm1, %v4722_v38, 0.0 }
 0x73a   : > { %v2228_v8 = vpop.xlane.xlu0 %2227 }
 0x73b   : > { %v2250_v51 = vmul.f32 %v2228_v8, %v4139_v30 }
 0x73d   : > { %v4715_v10 = vsub.f32 %v4679_v31, %v2250_v51 }
 0x73f   : > { %v2266_v24 = vmul.f32 %v4715_v10, %v4715_v10 }
 0x741   : > { %v2274_v26 = vsel %vm670_vm1, %v2266_v24, 0.0 }
 0x742   : > { %v2231_v14 = vpop.xlane.xlu1 %2230  ;;  %2275 = vadd.xlane.f32.xlu0 %v2274_v26 }
 0x743   : > { %v2251_v63 = vmul.f32 %v2231_v14, %v4139_v30 }
 0x745   : > { %v4725_v32 = vsub.f32 %v4684_v39, %v2251_v63 }
 0x747   : > { %v2267_v54 = vmul.f32 %v4725_v32, %v4725_v32 }
 0x749   : > { %v2277_v60 = vsel %vm670_vm1, %v2267_v54, 0.0 }
 0x74a   : > { %2278 = vadd.xlane.f32.xlu1 %v2277_v60  ;;  %2248 = vadd.xlane.f32.xlu0 %v2247_v22 }
 0x760   : > { %v2234_v50 = vpop.xlane.xlu2 %2233 }
 0x761   : > { %v2252_v56 = vmul.f32 %v2234_v50, %v4139_v30 }
 0x763   : > { %v4734_v16 = vsub.f32 %v4689_v19, %v2252_v56 }
 0x765   : > { %v2268_v13 = vmul.f32 %v4734_v16, %v4734_v16 }
 0x767   : > { %v2280_v21 = vsel %vm670_vm1, %v2268_v13, 0.0 }
 0x768   : > { %v2237_v52 = vpop.xlane.xlu0 %2236  ;;  %2281 = vadd.xlane.f32.xlu1 %v2280_v21 }
 0x769   : > { %v2253_v29 = vmul.f32 %v2237_v52, %v4139_v30 }
 0x76b   : > { %v4741_v23 = vsub.f32 %v4694_v15, %v2253_v29  ;;  %v3788_v29 = vld [vmem:[%s4081_s17] sm:$0xf] }
 0x76d   : > { %v2269_v59 = vmul.f32 %v4741_v23, %v4741_v23 }
 0x76f   : > { %v2283_v0 = vsel %vm670_vm1, %v2269_v59, 0.0  ;;  %v4779_v59 = vperm.slane %v3788_v29, 2 }
 0x770   : > { %v2240_v55 = vpop.xlane.xlu1 %2239  ;;  %2284 = vadd.xlane.f32.xlu2 %v2283_v0 }
 0x771   : > { %v2254_v43 = vmul.f32 %v2240_v55, %v4139_v30 }
 0x773   : > { %v4748_v41 = vsub.f32 %v4699_v40, %v2254_v43 }
 0x775   : > { %v2270_v33 = vmul.f32 %v4748_v41, %v4748_v41 }
 0x777   : > { %v2286_v61 = vsel %vm670_vm1, %v2270_v33, 0.0  ;;  %v4782_v33 = vperm.slane %v3788_v29, 3 }
 0x778   : > { %v2243_v42 = vpop.xlane.xlu2 %2242  ;;  %2287 = vadd.xlane.f32.xlu0 %v2286_v61 }
 0x779   : > { %v2255_v49 = vmul.f32 %v2243_v42, %v4139_v30 }
 0x77b   : > { %v4755_v45 = vsub.f32 %v4704_v48, %v2255_v49 }
 0x77d   : > { %v2271_v3 = vmul.f32 %v4755_v45, %v4755_v45 }
 0x77f   : > { %v2289_v4 = vsel %vm670_vm1, %v2271_v3, 0.0 }
 0x780   : > { %2290 = vadd.xlane.f32.xlu1 %v2289_v4  ;;  %v2246_v44 = vpop.xlane.xlu2 %2245 }
 0x781   : > { %v2256_v18 = vmul.f32 %v2246_v44, %v4139_v30 }
 0x783   : > { %v4762_v6 = vsub.f32 %v4709_v27, %v2256_v18 }
 0x785   : > { %v2272_v9 = vmul.f32 %v4762_v6, %v4762_v6 }
 0x787   : > { %v2292_v25 = vsel %vm670_vm1, %v2272_v9, 0.0 }
 0x788   : > { %2293 = vadd.xlane.f32.xlu2 %v2292_v25 }
 0x7b5   : > { %v2276_v34 = vpop.xlane.xlu0 %2275 }
 0x7b6   : > { %v2298_v53 = vmul.f32 %v2276_v34, %v4139_v30 }
 0x7b8   : > { %v2306_v17 = vadd.f32 1e-05, %v2298_v53 }
 0x7ba   : > { %3748 = vrsqrt.f32 %v2306_v17  ;;  %vm2320_vm0 = vweird.f32 %v2306_v17 }
 0x7bd   : > { %v2279_v47 = vpop.xlane.xlu1 %2278  ;;  %v2249_v5 = vpop.xlane.xlu0 %2248 }
 0x7be   : > { %v2299_v8 = vmul.f32 %v2279_v47, %v4139_v30  ;;  %v2257_v51 = vmul.f32 %v2249_v5, %v4139_v30 }
 0x7c0   : > { %v3749_v1 = vpop.eup %3748  ;;  %v2307_v2 = vadd.f32 1e-05, %v2299_v8  ;;  %v4773_v24 = vsub.f32 %v4722_v38, %v2257_v51 }
 0x7c1   : > { %v2315_v7 = vmul.f32 %v3749_v1, %v2306_v17  ;;  %vm2321_vm15 = vweird.f32 %v3749_v1 }
 0x7c2   : > { %3750 = vrsqrt.f32 %v2307_v2  ;;  %v2273_v62 = vmul.f32 %v4773_v24, %v4773_v24  ;;  %vm2322_vm2 = vmor %vm2320_vm0, %vm2321_vm15  ;;  %vm2330_vm4 = vweird.f32 %v2307_v2 }
 0x7c3   : > { %v2316_v26 = vmul.f32 %v3749_v1, %v2315_v7 }
 0x7c4   : > { %v2295_v14 = vsel %vm670_vm1, %v2273_v62, 0.0 }
 0x7c5   : > { %v2317_v63 = vmul.f32 0.5, %v2316_v26  ;;  %2296 = vadd.xlane.f32.xlu0 %v2295_v14 }
 0x7c7   : > { %v2318_v54 = vsub.f32 1.5, %v2317_v63 }
 0x7c8   : > { %v3751_v60 = vpop.eup %3750 }
 0x7c9   : > { %v2319_v22 = vmul.f32 %v3749_v1, %v2318_v54  ;;  %v2325_v50 = vmul.f32 %v3751_v60, %v2307_v2  ;;  %vm2331_vm3 = vweird.f32 %v3751_v60 }
 0x7ca   : > { %vm2332_vm5 = vmor %vm2330_vm4, %vm2331_vm3 }
 0x7cb   : > { %v2326_v56 = vmul.f32 %v3751_v60, %v2325_v50  ;;  %v2323_v13 = vsel %vm2322_vm2, %v3749_v1, %v2319_v22 }
 0x7cc   : > { %v2394_v0 = vmul.f32 %v2323_v13, %v4715_v10 }
 0x7cd   : > { %v2327_v21 = vmul.f32 0.5, %v2326_v56 }
 0x7ce   : > { %v2403_v61 = vmul.f32 %v4779_v59, %v2394_v0 }
 0x7cf   : > { %v2328_v52 = vsub.f32 1.5, %v2327_v21 }
 0x7d0   : > { %v2412_v3 = vadd.f32 %v4782_v33, %v2403_v61 }
 0x7d1   : > { %v2329_v55 = vmul.f32 %v3751_v60, %v2328_v52 }
 0x7d3   : > { %v2333_v43 = vsel %vm2332_vm5, %v3751_v60, %v2329_v55 }
 0x7d4   : > { %v2395_v42 = vmul.f32 %v2333_v43, %v4725_v32 }
 0x7d6   : > { %v2404_v49 = vmul.f32 %v4779_v59, %v2395_v42 }
 0x7d8   : > { %v2413_v4 = vadd.f32 %v4782_v33, %v2404_v49 }
 0x7da   : > { %v2420_v44 = vpack.c.bf16 %v2413_v4, %v2412_v3 }
 0x7db   : > { %v2282_v18 = vpop.xlane.xlu1 %2281 }
 0x7dc   : > { %v2300_v10 = vmul.f32 %v2282_v18, %v4139_v30  ;;  %3504 = vmatmul.msk.bf16.vlgmr.msra.gmra.mxu2 %vm670_vm1, %v2420_v44 }
 0x7de   : > { %v2308_v9 = vadd.f32 1e-05, %v2300_v10 }
 0x7e0   : > { %3752 = vrsqrt.f32 %v2308_v9  ;;  %vm2340_vm7 = vweird.f32 %v2308_v9 }
 0x7e3   : > { %v2285_v25 = vpop.xlane.xlu2 %2284 }
 0x7e4   : > { %v2301_v34 = vmul.f32 %v2285_v25, %v4139_v30 }
 0x7e6   : > { %v3753_v53 = vpop.eup %3752  ;;  %v2309_v20 = vadd.f32 1e-05, %v2301_v34 }
 0x7e7   : > { %v2335_v32 = vmul.f32 %v3753_v53, %v2308_v9  ;;  %vm2341_vm6 = vweird.f32 %v3753_v53 }
 0x7e8   : > { %3754 = vrsqrt.f32 %v2309_v20  ;;  %vm2342_vm8 = vmor %vm2340_vm7, %vm2341_vm6  ;;  %vm2350_vm10 = vweird.f32 %v2309_v20 }
 0x7e9   : > { %v2336_v17 = vmul.f32 %v3753_v53, %v2335_v32 }
 0x7eb   : > { %v2337_v46 = vmul.f32 0.5, %v2336_v17  ;;  %v2288_v47 = vpop.xlane.xlu0 %2287 }
 0x7ec   : > { %v2302_v5 = vmul.f32 %v2288_v47, %v4139_v30 }
 0x7ed   : > { %v2338_v8 = vsub.f32 1.5, %v2337_v46 }
 0x7ee   : > { %v3755_v51 = vpop.eup %3754  ;;  %v2310_v1 = vadd.f32 1e-05, %v2302_v5 }
 0x7ef   : > { %v2339_v2 = vmul.f32 %v3753_v53, %v2338_v8  ;;  %v2345_v7 = vmul.f32 %v3755_v51, %v2309_v20  ;;  %vm2351_vm9 = vweird.f32 %v3755_v51 }
 0x7f0   : > { %3756 = vrsqrt.f32 %v2310_v1  ;;  %vm2352_vm11 = vmor %vm2350_vm10, %vm2351_vm9  ;;  %vm2360_vm13 = vweird.f32 %v2310_v1  ;;  %vm2593_vm10 = vcmask 523264  }
 0x7f1   : > { %v2346_v62 = vmul.f32 %v3755_v51, %v2345_v7  ;;  %v2343_v26 = vsel %vm2342_vm8, %v3753_v53, %v2339_v2 }
 0x7f2   : > { %v2396_v50 = vmul.f32 %v2343_v26, %v4734_v16 }
 0x7f3   : > { %v2347_v14 = vmul.f32 0.5, %v2346_v62  ;;  %v2291_v63 = vpop.xlane.xlu1 %2290 }
 0x7f4   : > { %v2303_v54 = vmul.f32 %v2291_v63, %v4139_v30  ;;  %v2405_v55 = vmul.f32 %v4779_v59, %v2396_v50 }
 0x7f5   : > { %v2348_v60 = vsub.f32 1.5, %v2347_v14 }
 0x7f6   : > { %v3757_v22 = vpop.eup %3756  ;;  %v2311_v56 = vadd.f32 1e-05, %v2303_v54  ;;  %v2414_v3 = vadd.f32 %v4782_v33, %v2405_v55 }
 0x7f7   : > { %v2349_v13 = vmul.f32 %v3755_v51, %v2348_v60  ;;  %v2355_v21 = vmul.f32 %v3757_v22, %v2310_v1  ;;  %vm2361_vm12 = vweird.f32 %v3757_v22 }
 0x7f8   : > { %3758 = vrsqrt.f32 %v2311_v56  ;;  %vm2362_vm15 = vmor %vm2360_vm13, %vm2361_vm12  ;;  %vm2370_vm2 = vweird.f32 %v2311_v56 }
 0x7f9   : > { %v2353_v52 = vsel %vm2352_vm11, %v3755_v51, %v2349_v13  ;;  %v2356_v29 = vmul.f32 %v3757_v22, %v2355_v21 }
 0x7fa   : > { %v2397_v0 = vmul.f32 %v2353_v52, %v4741_v23 }
 0x7fb   : > { %v2357_v43 = vmul.f32 0.5, %v2356_v29  ;;  %v2294_v51 = vpop.xlane.xlu2 %2293 }
 0x7fc   : > { %v2406_v61 = vmul.f32 %v4779_v59, %v2397_v0 }
 0x7fd   : > { %v2358_v42 = vsub.f32 1.5, %v2357_v43 }
 0x7fe   : > { %v3759_v49 = vpop.eup %3758  ;;  %v2415_v16 = vadd.f32 %v4782_v33, %v2406_v61 }
 0x7ff   : > { %v2359_v4 = vmul.f32 %v3757_v22, %v2358_v42  ;;  %v2365_v44 = vmul.f32 %v3759_v49, %v2311_v56  ;;  %vm2371_vm0 = vweird.f32 %v3759_v49 }
 0x800   : > { %v2421_v18 = vpack.c.bf16 %v2415_v16, %v2414_v3  ;;  %vm2372_vm3 = vmor %vm2370_vm2, %vm2371_vm0  ;;  %v3563_v16 = vld [vmem:[%s4117_s12 + $0x18] sm:$0xff] }
 0x801   : > { %v2366_v10 = vmul.f32 %v3759_v49, %v2365_v44  ;;  %v2363_v23 = vsel %vm2362_vm15, %v3757_v22, %v2359_v4  ;;  %2610 = vmatpush.bf16.msra.mxu3 %v3563_v16  ;;  %v3561_v44 = vld [vmem:[%s4117_s12 + $0x8] sm:$0xff] }
 0x802   : > { %3505 = vmatmul.msk.bf16.gmra.mxu2 %vm670_vm1, %v2421_v18  ;;  %v2398_v34 = vmul.f32 %v2363_v23, %v4748_v41  ;;  %v2304_v41 = vmul.f32 %v2294_v51, %v4139_v30  ;;  %v3560_v18 = vld [vmem:[%s4117_s12] sm:$0xff] }
 0x803   : > { %v2367_v9 = vmul.f32 0.5, %v2366_v10 }
 0x804   : > { %v2407_v17 = vmul.f32 %v4779_v59, %v2398_v34  ;;  %v2312_v1 = vadd.f32 1e-05, %v2304_v41 }
 0x805   : > { %v2368_v25 = vsub.f32 1.5, %v2367_v9 }
 0x806   : > { %v2416_v47 = vadd.f32 %v4782_v33, %v2407_v17  ;;  %3760 = vrsqrt.f32 %v2312_v1  ;;  %vm2380_vm5 = vweird.f32 %v2312_v1 }
 0x807   : > { %v2369_v53 = vmul.f32 %v3759_v49, %v2368_v25 }
 0x809   : > { %v2373_v20 = vsel %vm2372_vm3, %v3759_v49, %v2369_v53 }
 0x80a   : > { %v2399_v32 = vmul.f32 %v2373_v20, %v4755_v45 }
 0x80c   : > { %v2408_v46 = vmul.f32 %v4779_v59, %v2399_v32  ;;  %v3761_v2 = vpop.eup %3760 }
 0x80d   : > { %v2375_v7 = vmul.f32 %v3761_v2, %v2312_v1  ;;  %vm2381_vm4 = vweird.f32 %v3761_v2 }
 0x80e   : > { %v2417_v5 = vadd.f32 %v4782_v33, %v2408_v46  ;;  %vm2382_vm6 = vmor %vm2380_vm5, %vm2381_vm4 }
 0x80f   : > { %v2376_v62 = vmul.f32 %v3761_v2, %v2375_v7 }
 0x810   : > { %v2422_v8 = vpack.c.bf16 %v2417_v5, %v2416_v47 }
 0x811   : > { %v2377_v63 = vmul.f32 0.5, %v2376_v62 }
 0x812   : > { %3506 = vmatmul.msk.bf16.gmra.mxu2 %vm670_vm1, %v2422_v8 }
 0x813   : > { %v2378_v54 = vsub.f32 1.5, %v2377_v63 }
 0x815   : > { %v2379_v22 = vmul.f32 %v3761_v2, %v2378_v54 }
 0x817   : > { %v2383_v13 = vsel %vm2382_vm6, %v3761_v2, %v2379_v22 }
 0x818   : > { %v2400_v29 = vmul.f32 %v2383_v13, %v4762_v6  ;;  %v3562_v6 = vld [vmem:[%s4117_s12 + $0x10] sm:$0xff] }
 0x819   : > { %2611 = vmatpush.bf16.msra.mxu3 %v3562_v6 }
 0x81a   : > { %v2409_v61 = vmul.f32 %v4779_v59, %v2400_v29 }
 0x81c   : > { %v2418_v49 = vadd.f32 %v4782_v33, %v2409_v61 }
 0x81d   : > { %2612 = vmatpush.bf16.msra.mxu3 %v3561_v44 }
 0x821   : > { %2613 = vmatpush.bf16.msra.mxu3 %v3560_v18 }
 0x838   : > { %v2297_v45 = vpop.xlane.xlu0 %2296 }
 0x839   : > { %v2305_v26 = vmul.f32 %v2297_v45, %v4139_v30 }
 0x83b   : > { %v2313_v14 = vadd.f32 1e-05, %v2305_v26 }
 0x83d   : > { %3762 = vrsqrt.f32 %v2313_v14  ;;  %vm2390_vm8 = vweird.f32 %v2313_v14 }
 0x843   : > { %v3763_v60 = vpop.eup %3762 }
 0x844   : > { %v2385_v50 = vmul.f32 %v3763_v60, %v2313_v14  ;;  %vm2391_vm7 = vweird.f32 %v3763_v60 }
 0x845   : > { %vm2392_vm9 = vmor %vm2390_vm8, %vm2391_vm7 }
 0x846   : > { %v2386_v56 = vmul.f32 %v3763_v60, %v2385_v50 }
 0x848   : > { %v2387_v21 = vmul.f32 0.5, %v2386_v56 }
 0x84a   : > { %v2388_v52 = vsub.f32 1.5, %v2387_v21 }
 0x84c   : > { %v2389_v0 = vmul.f32 %v3763_v60, %v2388_v52 }
 0x84e   : > { %v2393_v55 = vsel %vm2392_vm9, %v3763_v60, %v2389_v0 }
 0x84f   : > { %v2401_v43 = vmul.f32 %v2393_v55, %v4773_v24  ;;  %v4825_v24 = vld [vmem:[%s590_s21] ss:$0 sm:$0xff] }
 0x851   : > { %v2410_v42 = vmul.f32 %v4779_v59, %v2401_v43 }
 0x853   : > { %v2419_v3 = vadd.f32 %v4782_v33, %v2410_v42 }
 0x855   : > { %v2423_v4 = vpack.c.bf16 %v2419_v3, %v2418_v49 }
 0x857   : > { %3507 = vmatmul.msk.bf16.gmra.mxu2 %vm670_vm1, %v2423_v4 }
 0x85f   : > { %v2465_v59 = vpop.f32.mrf.mxu2 }
 0x860   : > { %v2466_v10 = vadd.f32 %v4825_v24, %v2465_v59 }
 0x862   : > { %v2493_v33 = vmul.f32 0.044715, %v2466_v10  ;;  %v2485_v1 = vmul.f32 0.5, %v2466_v10 }
 0x864   : > { %v2501_v23 = vmul.f32 %v2493_v33, %v2466_v10 }
 0x866   : > { %v2509_v9 = vmul.f32 %v2501_v23, %v2466_v10 }
 0x867   : > { %v2467_v25 = vpop.f32.mrf.mxu2 }
 0x868   : > { %v2517_v34 = vadd.f32 %v2509_v9, %v2466_v10  ;;  %v2468_v53 = vadd.f32 %v4825_v24, %v2467_v25 }
 0x86a   : > { %v2494_v20 = vmul.f32 0.044715, %v2468_v53  ;;  %v2525_v32 = vmul.f32 0.7978846, %v2517_v34  ;;  %v2486_v2 = vmul.f32 0.5, %v2468_v53 }
 0x86c   : > { %v2502_v17 = vmul.f32 %v2494_v20, %v2468_v53  ;;  %3764 = vtanh.f32 %v2525_v32 }
 0x86e   : > { %v2510_v46 = vmul.f32 %v2502_v17, %v2468_v53 }
 0x870   : > { %v2518_v47 = vadd.f32 %v2510_v46, %v2468_v53 }
 0x872   : > { %v2526_v5 = vmul.f32 0.7978846, %v2518_v47  ;;  %v3765_v8 = vpop.eup %3764 }
 0x873   : > { %v2541_v51 = vadd.f32 1.0, %v3765_v8 }
 0x874   : > { %3766 = vtanh.f32 %v2526_v5 }
 0x875   : > { %v2549_v62 = vmul.f32 %v2541_v51, %v2485_v1 }
 0x87a   : > { %v3767_v41 = vpop.eup %3766 }
 0x87b   : > { %v2542_v7 = vadd.f32 1.0, %v3767_v41 }
 0x87d   : > { %v2550_v45 = vmul.f32 %v2542_v7, %v2486_v2 }
 0x87f   : > { %v2557_v26 = vpack.c.bf16 %v2550_v45, %v2549_v62 }
 0x881   : > { %3524 = vmatmul.msk.bf16.vlgmr.msra.gmra.mxu3 %vm2593_vm10, %v2557_v26 }
 0x885   : > { %v2470_v14 = vpop.f32.mrf.mxu2 }
 0x886   : > { %v2471_v63 = vadd.f32 %v4825_v24, %v2470_v14 }
 0x888   : > { %v2495_v54 = vmul.f32 0.044715, %v2471_v63  ;;  %v2487_v23 = vmul.f32 0.5, %v2471_v63 }
 0x88a   : > { %v2503_v60 = vmul.f32 %v2495_v54, %v2471_v63 }
 0x88c   : > { %v2511_v22 = vmul.f32 %v2503_v60, %v2471_v63 }
 0x88d   : > { %v2472_v50 = vpop.f32.mrf.mxu2 }
 0x88e   : > { %v2519_v56 = vadd.f32 %v2511_v22, %v2471_v63  ;;  %v2473_v13 = vadd.f32 %v4825_v24, %v2472_v50 }
 0x890   : > { %v2496_v21 = vmul.f32 0.044715, %v2473_v13  ;;  %v2527_v52 = vmul.f32 0.7978846, %v2519_v56  ;;  %v2488_v9 = vmul.f32 0.5, %v2473_v13 }
 0x892   : > { %v2504_v29 = vmul.f32 %v2496_v21, %v2473_v13  ;;  %3768 = vtanh.f32 %v2527_v52 }
 0x894   : > { %v2512_v0 = vmul.f32 %v2504_v29, %v2473_v13 }
 0x895   : > { %v2475_v55 = vpop.f32.mrf.mxu2 }
 0x896   : > { %v2520_v43 = vadd.f32 %v2512_v0, %v2473_v13  ;;  %v2476_v61 = vadd.f32 %v4825_v24, %v2475_v55 }
 0x898   : > { %v2528_v42 = vmul.f32 0.7978846, %v2520_v43  ;;  %v2497_v49 = vmul.f32 0.044715, %v2476_v61  ;;  %v3769_v16 = vpop.eup %3768  ;;  %v2489_v1 = vmul.f32 0.5, %v2476_v61 }
 0x899   : > { %v2543_v18 = vadd.f32 1.0, %v3769_v16 }
 0x89a   : > { %v2505_v3 = vmul.f32 %v2497_v49, %v2476_v61  ;;  %3770 = vtanh.f32 %v2528_v42 }
 0x89b   : > { %v2551_v20 = vmul.f32 %v2543_v18, %v2487_v23 }
 0x89c   : > { %v2513_v4 = vmul.f32 %v2505_v3, %v2476_v61 }
 0x89d   : > { %v2477_v6 = vpop.f32.mrf.mxu2 }
 0x89e   : > { %v2521_v44 = vadd.f32 %v2513_v4, %v2476_v61  ;;  %v2478_v59 = vadd.f32 %v4825_v24, %v2477_v6 }
 0x8a0   : > { %v3771_v10 = vpop.eup %3770  ;;  %v2498_v33 = vmul.f32 0.044715, %v2478_v59  ;;  %v2529_v34 = vmul.f32 0.7978846, %v2521_v44  ;;  %v2490_v2 = vmul.f32 0.5, %v2478_v59 }
 0x8a1   : > { %v2544_v25 = vadd.f32 1.0, %v3771_v10 }
 0x8a2   : > { %v2506_v53 = vmul.f32 %v2498_v33, %v2478_v59  ;;  %3772 = vtanh.f32 %v2529_v34 }
 0x8a3   : > { %v2552_v32 = vmul.f32 %v2544_v25, %v2488_v9 }
 0x8a4   : > { %v2514_v17 = vmul.f32 %v2506_v53, %v2478_v59 }
 0x8a5   : > { %v2558_v46 = vpack.c.bf16 %v2552_v32, %v2551_v20 }
 0x8a6   : > { %v2522_v47 = vadd.f32 %v2514_v17, %v2478_v59 }
 0x8a7   : > { %3525 = vmatmul.msk.bf16.gmra.mxu3 %vm2593_vm10, %v2558_v46 }
 0x8a8   : > { %v2530_v5 = vmul.f32 0.7978846, %v2522_v47  ;;  %v3773_v8 = vpop.eup %3772 }
 0x8a9   : > { %v2545_v51 = vadd.f32 1.0, %v3773_v8 }
 0x8aa   : > { %3774 = vtanh.f32 %v2530_v5 }
 0x8ab   : > { %v2553_v62 = vmul.f32 %v2545_v51, %v2489_v1 }
 0x8b0   : > { %v3775_v41 = vpop.eup %3774 }
 0x8b1   : > { %v2546_v7 = vadd.f32 1.0, %v3775_v41 }
 0x8b3   : > { %v2554_v45 = vmul.f32 %v2546_v7, %v2490_v2 }
 0x8b5   : > { %v2559_v26 = vpack.c.bf16 %v2554_v45, %v2553_v62 }
 0x8b7   : > { %3526 = vmatmul.msk.bf16.gmra.mxu3 %vm2593_vm10, %v2559_v26 }
 0x8da   : > { %v2480_v14 = vpop.f32.mrf.mxu2 }
 0x8db   : > { %v2481_v63 = vadd.f32 %v4825_v24, %v2480_v14 }
 0x8dd   : > { %v2499_v54 = vmul.f32 0.044715, %v2481_v63  ;;  %v2491_v3 = vmul.f32 0.5, %v2481_v63 }
 0x8df   : > { %v2507_v60 = vmul.f32 %v2499_v54, %v2481_v63 }
 0x8e1   : > { %v2515_v22 = vmul.f32 %v2507_v60, %v2481_v63 }
 0x8e2   : > { %v2482_v50 = vpop.f32.mrf.mxu2 }
 0x8e3   : > { %v2523_v56 = vadd.f32 %v2515_v22, %v2481_v63  ;;  %v2483_v13 = vadd.f32 %v4825_v24, %v2482_v50  ;;  %v3665_v24 = vld [vmem:[%s598_s14] ss:$0 sm:$0xff] }
 0x8e5   : > { %v2500_v21 = vmul.f32 0.044715, %v2483_v13  ;;  %v2531_v52 = vmul.f32 0.7978846, %v2523_v56  ;;  %v2492_v16 = vmul.f32 0.5, %v2483_v13 }
 0x8e7   : > { %v2508_v29 = vmul.f32 %v2500_v21, %v2483_v13  ;;  %3776 = vtanh.f32 %v2531_v52 }
 0x8e9   : > { %v2516_v0 = vmul.f32 %v2508_v29, %v2483_v13 }
 0x8eb   : > { %v2524_v55 = vadd.f32 %v2516_v0, %v2483_v13 }
 0x8ed   : > { %v2532_v43 = vmul.f32 0.7978846, %v2524_v55  ;;  %v3777_v61 = vpop.eup %3776 }
 0x8ee   : > { %v2547_v42 = vadd.f32 1.0, %v3777_v61 }
 0x8ef   : > { %3778 = vtanh.f32 %v2532_v43 }
 0x8f0   : > { %v2555_v6 = vmul.f32 %v2547_v42, %v2491_v3 }
 0x8f5   : > { %v3779_v49 = vpop.eup %3778 }
 0x8f6   : > { %v2548_v4 = vadd.f32 1.0, %v3779_v49 }
 0x8f8   : > { %v2556_v44 = vmul.f32 %v2548_v4, %v2492_v16 }
 0x8fa   : > { %v2560_v59 = vpack.c.bf16 %v2556_v44, %v2555_v6 }
 0x8fc   : > { %3527 = vmatmul.msk.bf16.gmra.mxu3 %vm2593_vm10, %v2560_v59 }
 0x904   : > { %v2615_v18 = vpop.f32.mrf.mxu3 }
 0x905   : > { %v2635_v10 = vadd.f32 %v2615_v18, %v4679_v31 }
 0x907   : > { %v2647_v33 = vadd.f32 %v3665_v24, %v2635_v10 }
 0x909   : > { %2655 = vst.msk [vmem:[#allocation2] sm:$0xff] %vm670_vm1, %v2647_v33 }
 0x90c   : > { %v2617_v23 = vpop.f32.mrf.mxu3 }
 0x90d   : > { %v2636_v9 = vadd.f32 %v2617_v23, %v4684_v39 }
 0x90f   : > { %v4848_v25 = vadd.f32 %v3665_v24, %v2636_v9 }
 0x911   : > { %2656 = vst.msk [vmem:[#allocation2 + $0x8] sm:$0xff] %vm670_vm1, %v4848_v25 }
 0x92a   : > { %v2620_v34 = vpop.f32.mrf.mxu3 }
 0x92b   : > { %v2637_v53 = vadd.f32 %v2620_v34, %v4689_v19 }
 0x92d   : > { %v2649_v20 = vadd.f32 %v3665_v24, %v2637_v53 }
 0x92f   : > { %2657 = vst.msk [vmem:[#allocation2 + $0x10] sm:$0xff] %vm670_vm1, %v2649_v20 }
 0x932   : > { %v2622_v32 = vpop.f32.mrf.mxu3 }
 0x933   : > { %v2638_v31 = vadd.f32 %v2622_v32, %v4694_v15 }
 0x935   : > { %v2650_v17 = vadd.f32 %v3665_v24, %v2638_v31 }
 0x937   : > { %2658 = vst.msk [vmem:[#allocation2 + $0x18] sm:$0xff] %vm670_vm1, %v2650_v17 }
 0x93a   : > { %v2625_v46 = vpop.f32.mrf.mxu3 }
 0x93b   : > { %v2639_v39 = vadd.f32 %v2625_v46, %v4699_v40 }
 0x93d   : > { %v4857_v47 = vadd.f32 %v3665_v24, %v2639_v39 }
 0x93f   : > { %2659 = vst.msk [vmem:[#allocation2 + $0x20] sm:$0xff] %vm670_vm1, %v4857_v47 }
 0x942   : > { %v2627_v5 = vpop.f32.mrf.mxu3 }
 0x943   : > { %v2640_v19 = vadd.f32 %v2627_v5, %v4704_v48 }
 0x945   : > { %v4862_v8 = vadd.f32 %v3665_v24, %v2640_v19 }
 0x947   : > { %2660 = vst.msk [vmem:[#allocation2 + $0x28] sm:$0xff] %vm670_vm1, %v4862_v8 }
 0x97f   : > { %v2630_v15 = vpop.f32.mrf.mxu3 }
 0x980   : > { %v2641_v51 = vadd.f32 %v2630_v15, %v4709_v27 }
 0x982   : > { %v2653_v41 = vadd.f32 %v3665_v24, %v2641_v51 }
 0x984   : > { %2661 = vst.msk [vmem:[#allocation2 + $0x30] sm:$0xff] %vm670_vm1, %v2653_v41 }
 0x987   : > { %v2632_v40 = vpop.f32.mrf.mxu3 }
 0x988   : > { %v2642_v1 = vadd.f32 %v2632_v40, %v4722_v38  ;;  %2666 = sbr.rel (%p3528_p2) target bundleno = 2872 (0xb38), region = 76 }
 0x98a   : > { %v2654_v2 = vadd.f32 %v3665_v24, %v2642_v1 }
 0x98c   : > { %2662 = vst.msk [vmem:[#allocation2 + $0x38] sm:$0xff] %vm670_vm1, %v2654_v2 }
 0x98d   : > { %v2686_v48 = vsel %vm670_vm1, %v2653_v41, 0.0  ;;  %v2674_v7 = vsel %vm670_vm1, %v2649_v20, 0.0  ;;  %v2668_v62 = vsel %vm670_vm1, %v2647_v33, 0.0  ;;  %v2689_v27 = vsel %vm670_vm1, %v2654_v2, 0.0 }
 0x98e   : > { %2687 = vadd.xlane.f32.xlu2 %v2686_v48  ;;  %2675 = vadd.xlane.f32.xlu0 %v2674_v7  ;;  %v2677_v45 = vsel %vm670_vm1, %v2650_v17, 0.0  ;;  %v2671_v38 = vsel %vm670_vm1, %v4848_v25, 0.0  ;;  %v2680_v26 = vsel %vm670_vm1, %v4857_v47, 0.0  ;;  %v2683_v14 = vsel %vm670_vm1, %v4862_v8, 0.0 }
 0x98f   : > { %2669 = vadd.xlane.f32.xlu1 %v2668_v62  ;;  %vm2862_vm11 = vcmask 57344  }
 0x990   : > { %v2869_v7 = vsel %vm2862_vm11, %v4442_v11, 0.0 }
 0x996   : > { %2690 = vadd.xlane.f32.xlu2 %v2689_v27  ;;  %2678 = vadd.xlane.f32.xlu0 %v2677_v45 }
 0x997   : > { %2672 = vadd.xlane.f32.xlu1 %v2671_v38 }
 0x99e   : > { %2681 = vadd.xlane.f32.xlu0 %v2680_v26 }
 0x99f   : > { %2684 = vadd.xlane.f32.xlu1 %v2683_v14 }
 0xa01   : > { %v2688_v63 = vpop.xlane.xlu2 %2687  ;;  %v2676_v54 = vpop.xlane.xlu0 %2675 }
 0xa02   : > { %v2694_v60 = vmul.f32 %v2676_v54, %v4139_v30  ;;  %v2670_v22 = vpop.xlane.xlu1 %2669  ;;  %v2698_v16 = vmul.f32 %v2688_v63, %v4139_v30 }
 0xa03   : > { %v2692_v50 = vmul.f32 %v2670_v22, %v4139_v30 }
 0xa04   : > { %v4884_v56 = vsub.f32 %v2649_v20, %v2694_v60  ;;  %v4911_v10 = vsub.f32 %v2653_v41, %v2698_v16 }
 0xa05   : > { %v4886_v13 = vsub.f32 %v2647_v33, %v2692_v50 }
 0xa06   : > { %v2710_v21 = vmul.f32 %v4884_v56, %v4884_v56  ;;  %v2714_v31 = vmul.f32 %v4911_v10, %v4911_v10 }
 0xa07   : > { %v2708_v52 = vmul.f32 %v4886_v13, %v4886_v13 }
 0xa08   : > { %v2722_v29 = vsel %vm670_vm1, %v2710_v21, 0.0  ;;  %v2734_v39 = vsel %vm670_vm1, %v2714_v31, 0.0 }
 0xa09   : > { %v2691_v0 = vpop.xlane.xlu2 %2690  ;;  %2723 = vadd.xlane.f32.xlu2 %v2722_v29  ;;  %v2679_v55 = vpop.xlane.xlu0 %2678  ;;  %v2716_v43 = vsel %vm670_vm1, %v2708_v52, 0.0 }
 0xa0a   : > { %v2699_v61 = vmul.f32 %v2691_v0, %v4139_v30  ;;  %v2695_v42 = vmul.f32 %v2679_v55, %v4139_v30  ;;  %2717 = vadd.xlane.f32.xlu1 %v2716_v43  ;;  %v2673_v49 = vpop.xlane.xlu1 %2672  ;;  %v2667_v0 = vld [vmem:[%s5183_s15] sm:$0x3]  ;;  %v2863_v55 = vsel %vm2862_vm11, %v4352_v12, 0.0  ;;  %v2872_v43 = vsel %vm2862_vm11, %v4413_v28, 0.0 }
 0xa0b   : > { %v2693_v3 = vmul.f32 %v2673_v49, %v4139_v30  ;;  %v2875_v49 = vsel %vm2862_vm11, %v4385_v57, 0.0 }
 0xa0c   : > { %v4898_v4 = vsub.f32 %v2654_v2, %v2699_v61  ;;  %v4900_v6 = vsub.f32 %v2650_v17, %v2695_v42  ;;  %v2866_v2 = vsel %vm2862_vm11, %v4369_v36, 0.0 }
 0xa0d   : > { %v4903_v44 = vsub.f32 %v4848_v25, %v2693_v3 }
 0xa0e   : > { %v2711_v59 = vmul.f32 %v4900_v6, %v4900_v6  ;;  %v2715_v24 = vmul.f32 %v4898_v4, %v4898_v4 }
 0xa0f   : > { %v2709_v18 = vmul.f32 %v4903_v44, %v4903_v44 }
 0xa10   : > { %v2725_v33 = vsel %vm670_vm1, %v2711_v59, 0.0  ;;  %v2737_v23 = vsel %vm670_vm1, %v2715_v24, 0.0 }
 0xa11   : > { %2726 = vadd.xlane.f32.xlu0 %v2725_v33  ;;  %v2682_v9 = vpop.xlane.xlu0 %2681  ;;  %v2719_v25 = vsel %vm670_vm1, %v2709_v18, 0.0  ;;  %v4970_v33 = vperm.slane %v2667_v0, 0 }
 0xa12   : > { %v2696_v34 = vmul.f32 %v2682_v9, %v4139_v30  ;;  %2738 = vadd.xlane.f32.xlu1 %v2737_v23  ;;  %2720 = vadd.xlane.f32.xlu2 %v2719_v25  ;;  %v2685_v53 = vpop.xlane.xlu1 %2684 }
 0xa13   : > { %v2697_v20 = vmul.f32 %v2685_v53, %v4139_v30 }
 0xa14   : > { %v4919_v32 = vsub.f32 %v4857_v47, %v2696_v34 }
 0xa15   : > { %v4926_v46 = vsub.f32 %v4862_v8, %v2697_v20 }
 0xa16   : > { %v2712_v17 = vmul.f32 %v4919_v32, %v4919_v32 }
 0xa17   : > { %v2713_v19 = vmul.f32 %v4926_v46, %v4926_v46 }
 0xa18   : > { %v2728_v5 = vsel %vm670_vm1, %v2712_v17, 0.0 }
 0xa19   : > { %2735 = vadd.xlane.f32.xlu0 %v2734_v39  ;;  %v2731_v47 = vsel %vm670_vm1, %v2713_v19, 0.0 }
 0xa1a   : > { %2729 = vadd.xlane.f32.xlu2 %v2728_v5  ;;  %2867 = vadd.xlane.f32.xlu1 %v2866_v2  ;;  %v2878_v5 = vsel %vm2862_vm11, %v4397_v37, 0.0 }
 0xa21   : > { %2732 = vadd.xlane.f32.xlu0 %v2731_v47 }
 0xa22   : > { %2870 = vadd.xlane.f32.xlu2 %v2869_v7  ;;  %2873 = vadd.xlane.f32.xlu1 %v2872_v43 }
 0xa29   : > { %2864 = vadd.xlane.f32.xlu0 %v2863_v55 }
 0xa2a   : > { %2876 = vadd.xlane.f32.xlu2 %v2875_v49 }
 0xa31   : > { %2879 = vadd.xlane.f32.xlu0 %v2878_v5 }
 0xa7c   : > { %v2724_v15 = vpop.xlane.xlu2 %2723 }
 0xa7d   : > { %v2742_v51 = vmul.f32 %v2724_v15, %v4139_v30  ;;  %v2718_v41 = vpop.xlane.xlu1 %2717  ;;  %v4995_v15 = vperm.slane %v2667_v0, 1 }
 0xa7e   : > { %v2740_v40 = vmul.f32 %v2718_v41, %v4139_v30 }
 0xa7f   : > { %v2750_v8 = vadd.f32 1e-05, %v2742_v51 }
 0xa80   : > { %v4935_v1 = vadd.f32 1e-05, %v2740_v40 }
 0xa81   : > { %3789 = vrsqrt.f32 %v2750_v8  ;;  %vm2782_vm12 = vweird.f32 %v2750_v8 }
 0xa82   : > { %3791 = vrsqrt.f32 %v4935_v1  ;;  %vm2762_vm15 = vweird.f32 %v4935_v1 }
 0xa84   : > { %v2727_v48 = vpop.xlane.xlu0 %2726 }
 0xa85   : > { %v2743_v62 = vmul.f32 %v2727_v48, %v4139_v30  ;;  %v2721_v27 = vpop.xlane.xlu2 %2720  ;;  %v2739_v45 = vpop.xlane.xlu1 %2738 }
 0xa86   : > { %v2741_v38 = vmul.f32 %v2721_v27, %v4139_v30  ;;  %v2747_v26 = vmul.f32 %v2739_v45, %v4139_v30 }
 0xa87   : > { %v3790_v14 = vpop.eup %3789  ;;  %v4945_v63 = vadd.f32 1e-05, %v2743_v62  ;;  %v2881_v62 = vsel %vm2862_vm11, %v4420_v35, 0.0 }
 0xa88   : > { %v4947_v54 = vpop.eup %3791  ;;  %v2777_v60 = vmul.f32 %v3790_v14, %v2750_v8  ;;  %v4949_v22 = vadd.f32 1e-05, %v2741_v38  ;;  %v4951_v50 = vadd.f32 1e-05, %v2747_v26  ;;  %vm2783_vm13 = vweird.f32 %v3790_v14  ;;  %2882 = vadd.xlane.f32.xlu1 %v2881_v62 }
 0xa89   : > { %v2757_v21 = vmul.f32 %v4947_v54, %v4935_v1  ;;  %3793 = vrsqrt.f32 %v4945_v63  ;;  %vm2763_vm0 = vweird.f32 %v4947_v54  ;;  %vm2784_vm2 = vmor %vm2782_vm12, %vm2783_vm13  ;;  %vm2792_vm3 = vweird.f32 %v4945_v63 }
 0xa8a   : > { %v2778_v52 = vmul.f32 %v3790_v14, %v2777_v60  ;;  %3795 = vrsqrt.f32 %v4949_v22  ;;  %vm2764_vm4 = vmor %vm2762_vm15, %vm2763_vm0  ;;  %v2884_v1 = vsel %vm2862_vm11, %v4434_v58, 0.0  ;;  %vm2832_vm5 = vweird.f32 %v4951_v50 }
 0xa8b   : > { %v2758_v29 = vmul.f32 %v4947_v54, %v2757_v21  ;;  %3797 = vrsqrt.f32 %v4951_v50  ;;  %2885 = vadd.xlane.f32.xlu2 %v2884_v1  ;;  %vm2772_vm8 = vweird.f32 %v4949_v22 }
 0xa8c   : > { %v2779_v61 = vmul.f32 0.5, %v2778_v52  ;;  %v2736_v42 = vpop.xlane.xlu0 %2735 }
 0xa8d   : > { %v2759_v3 = vmul.f32 0.5, %v2758_v29  ;;  %v2746_v16 = vmul.f32 %v2736_v42, %v4139_v30  ;;  %v2730_v59 = vpop.xlane.xlu2 %2729  ;;  %v2868_v1 = vpop.xlane.xlu1 %2867 }
 0xa8e   : > { %v2780_v24 = vsub.f32 1.5, %v2779_v61  ;;  %v2744_v18 = vmul.f32 %v2730_v59, %v4139_v30 }
 0xa8f   : > { %v4972_v23 = vpop.eup %3793  ;;  %v2760_v9 = vsub.f32 1.5, %v2759_v3  ;;  %v4974_v25 = vadd.f32 1e-05, %v2746_v16 }
 0xa90   : > { %v4976_v34 = vpop.eup %3795  ;;  %v2787_v53 = vmul.f32 %v4972_v23, %v4945_v63  ;;  %v4981_v20 = vadd.f32 1e-05, %v2744_v18  ;;  %v2781_v31 = vmul.f32 %v3790_v14, %v2780_v24  ;;  %vm2793_vm6 = vweird.f32 %v4972_v23 }
 0xa91   : > { %v4983_v17 = vpop.eup %3797  ;;  %v2767_v39 = vmul.f32 %v4976_v34, %v4949_v22  ;;  %3799 = vrsqrt.f32 %v4974_v25  ;;  %v2761_v41 = vmul.f32 %v4947_v54, %v2760_v9  ;;  %vm2773_vm9 = vweird.f32 %v4976_v34  ;;  %vm5025_vm10 = vmor %vm2792_vm3, %vm2793_vm6 }
 0xa92   : > { %v2788_v19 = vmul.f32 %v4972_v23, %v2787_v53  ;;  %v2827_v47 = vmul.f32 %v4983_v17, %v4951_v50  ;;  %3801 = vrsqrt.f32 %v4981_v20  ;;  %v2785_v40 = vsel %vm2784_vm2, %v3790_v14, %v2781_v31  ;;  %vm2774_vm12 = vmor %vm2772_vm8, %vm2773_vm9 }
 0xa93   : > { %v2768_v51 = vmul.f32 %v4976_v34, %v2767_v39  ;;  %v2838_v7 = vmul.f32 %v2785_v40, %v4884_v56  ;;  %v2765_v38 = vsel %vm2764_vm4, %v4947_v54, %v2761_v41  ;;  %vm2833_vm7 = vweird.f32 %v4983_v17 }
 0xa94   : > { %v2789_v8 = vmul.f32 0.5, %v2788_v19  ;;  %v2828_v2 = vmul.f32 %v4983_v17, %v2827_v47  ;;  %v2733_v48 = vpop.xlane.xlu0 %2732  ;;  %v2836_v14 = vmul.f32 %v2765_v38, %v4886_v13  ;;  %vm2834_vm11 = vmor %vm2832_vm5, %vm2833_vm7  ;;  %vm2802_vm15 = vweird.f32 %v4981_v20 }
 0xa95   : > { %v2769_v27 = vmul.f32 0.5, %v2768_v51  ;;  %v2745_v45 = vmul.f32 %v2733_v48, %v4139_v30  ;;  %v2847_v56 = vmul.f32 %v4970_v33, %v2838_v7  ;;  %vm2822_vm2 = vweird.f32 %v4974_v25 }
 0xa96   : > { %v2829_v26 = vmul.f32 0.5, %v2828_v2  ;;  %v2790_v21 = vsub.f32 1.5, %v2789_v8  ;;  %v2845_v55 = vmul.f32 %v4970_v33, %v2836_v14  ;;  %v2888_v14 = vmax.f32 %v2868_v1, 1.0 }
 0xa97   : > { %v3800_v60 = vpop.eup %3799  ;;  %v2770_v52 = vsub.f32 1.5, %v2769_v27  ;;  %v5014_v30 = vadd.f32 1e-05, %v2745_v45  ;;  %v2856_v3 = vadd.f32 %v4995_v15, %v2847_v56  ;;  %vm3107_vm8 = vcmask 1042434  }
 0xa98   : > { %v3802_v54 = vpop.eup %3801  ;;  %v2830_v29 = vsub.f32 1.5, %v2829_v26  ;;  %v2817_v0 = vmul.f32 %v3800_v60, %v4974_v25  ;;  %v2854_v49 = vadd.f32 %v4995_v15, %v2845_v55  ;;  %v2791_v59 = vmul.f32 %v4972_v23, %v2790_v21  ;;  %v2871_v26 = vpop.xlane.xlu2 %2870 }
 0xa99   : > { %v2797_v13 = vmul.f32 %v3802_v54, %v4981_v20  ;;  %3803 = vrsqrt.f32 %v5014_v30  ;;  %v2771_v16 = vmul.f32 %v4976_v34, %v2770_v52  ;;  %2956 = vmatpush.msra.mxu2 %v2856_v3  ;;  %vm2823_vm13 = vweird.f32 %v3800_v60 }
 0xa9a   : > { %v2831_v61 = vmul.f32 %v4983_v17, %v2830_v29  ;;  %v2818_v42 = vmul.f32 %v3800_v60, %v2817_v0  ;;  %2912 = vmatpush.msra.mxu0 %v2854_v49  ;;  %v2795_v53 = vsel %vm5025_vm10, %v4972_v23, %v2791_v59  ;;  %3531 = vmatmul.msk.f32.vlgmr.msra.gmra.mxu2 %vm1248_vm14, %v4442_v11  ;;  %vm2803_vm0 = vweird.f32 %v3802_v54  ;;  %vm2824_vm3 = vmor %vm2822_vm2, %vm2823_vm13 }
 0xa9b   : > { %v2798_v22 = vmul.f32 %v3802_v54, %v2797_v13  ;;  %v2775_v9 = vsel %vm2774_vm12, %v4976_v34, %v2771_v16  ;;  %3529 = vmatmul.msk.f32.vlgmr.msra.gmra.mxu0 %vm1248_vm14, %v4352_v12  ;;  %vm2804_vm4 = vmor %vm2802_vm15, %vm2803_vm0  ;;  %vm2812_vm6 = vweird.f32 %v5014_v30  ;;  %3805 = vrcp.f32 %v2888_v14 }
 0xa9c   : > { %v2819_v63 = vmul.f32 0.5, %v2818_v42  ;;  %v2835_v24 = vsel %vm2834_vm11, %v4983_v17, %v2831_v61  ;;  %v2837_v39 = vmul.f32 %v2775_v9, %v4903_v44  ;;  %v2839_v17 = vmul.f32 %v2795_v53, %v4900_v6  ;;  %v2865_v56 = vpop.xlane.xlu0 %2864 }
 0xa9d   : > { %v2799_v18 = vmul.f32 0.5, %v2798_v22  ;;  %v2843_v50 = vmul.f32 %v2835_v24, %v4898_v4  ;;  %vm3110_vm9 = vcmask 1043459   ;;  %vm3113_vm10 = vcmask 1044484  }
 0xa9e   : > { %v2820_v31 = vsub.f32 1.5, %v2819_v63  ;;  %v2846_v11 = vmul.f32 %v4970_v33, %v2837_v39  ;;  %v2848_v44 = vmul.f32 %v4970_v33, %v2839_v17  ;;  %vm3116_vm11 = vcmask 1045509  }
 0xa9f   : > { %v3804_v5 = vpop.eup %3803  ;;  %v2800_v34 = vsub.f32 1.5, %v2799_v18  ;;  %v2852_v23 = vmul.f32 %v4970_v33, %v2843_v50  ;;  %vm3119_vm12 = vcmask 1046534   ;;  %vm3122_vm13 = vcmask 1047559  }
 0xaa0   : > { %v2821_v4 = vmul.f32 %v3800_v60, %v2820_v31  ;;  %v2807_v12 = vmul.f32 %v3804_v5, %v5014_v30  ;;  %v2855_v47 = vadd.f32 %v4995_v15, %v2846_v11  ;;  %v2857_v41 = vadd.f32 %v4995_v15, %v2848_v44 }
 0xaa1   : > { %v2801_v19 = vmul.f32 %v3802_v54, %v2800_v34  ;;  %v2861_v20 = vadd.f32 %v4995_v15, %v2852_v23  ;;  %vm2813_vm5 = vweird.f32 %v3804_v5 }
 0xaa2   : > { %v2808_v6 = vmul.f32 %v3804_v5, %v2807_v12  ;;  %v2825_v51 = vsel %vm2824_vm3, %v3800_v60, %v2821_v4  ;;  %2934 = vmatpush.msra.mxu1 %v2855_v47  ;;  %2978 = vmatpush.msra.mxu3 %v2857_v41  ;;  %vm2814_vm7 = vmor %vm2812_vm6, %vm2813_vm5  ;;  %v2889_v60 = vmax.f32 %v2871_v26, 1.0 }
 0xaa3   : > { %v2805_v40 = vsel %vm2804_vm4, %v3802_v54, %v2801_v19  ;;  %v2842_v25 = vmul.f32 %v2825_v51, %v4911_v10  ;;  %3530 = vmatmul.msk.f32.vlgmr.msra.gmra.mxu1 %vm1248_vm14, %v4369_v36  ;;  %3532 = vmatmul.msk.f32.vlgmr.msra.gmra.mxu3 %vm1248_vm14, %v4413_v28 }
 0xaa4   : > { %v2809_v8 = vmul.f32 0.5, %v2808_v6  ;;  %v2840_v2 = vmul.f32 %v2805_v40, %v4919_v32  ;;  %3066 = vmatpush.msrb.mxu3 %v2861_v20  ;;  %3807 = vrcp.f32 %v2889_v60 }
 0xaa5   : > { %v2851_v48 = vmul.f32 %v4970_v33, %v2842_v25 }
 0xaa6   : > { %v2810_v7 = vsub.f32 1.5, %v2809_v8  ;;  %v2849_v62 = vmul.f32 %v4970_v33, %v2840_v2 }
 0xaa7   : > { %v2860_v10 = vadd.f32 %v4995_v15, %v2851_v48 }
 0xaa8   : > { %v2811_v27 = vmul.f32 %v3804_v5, %v2810_v7  ;;  %v2858_v32 = vadd.f32 %v4995_v15, %v2849_v62 }
 0xaa9   : > { %3044 = vmatpush.msrb.mxu2 %v2860_v10 }
 0xaaa   : > { %3000 = vmatpush.msrb.mxu0 %v2858_v32  ;;  %3535 = vmatmul.msk.f32.vlgmr.msrb.gmra.mxu2 %vm1248_vm14, %v4420_v35  ;;  %v2815_v36 = vsel %vm2814_vm7, %v3804_v5, %v2811_v27  ;;  %v2874_v35 = vpop.xlane.xlu1 %2873 }
 0xaab   : > { %3533 = vmatmul.msk.f32.vlgmr.msrb.gmra.mxu0 %vm1248_vm14, %v4385_v57  ;;  %v2841_v45 = vmul.f32 %v2815_v36, %v4926_v46  ;;  %3536 = vmatmul.msk.f32.vlgmr.msrb.gmra.mxu3 %vm1248_vm14, %v4434_v58  ;;  %v2887_v57 = vmax.f32 %v2865_v56, 1.0  ;;  %v2877_v46 = vpop.xlane.xlu2 %2876  ;;  %v2890_v21 = vmax.f32 %v2874_v35, 1.0  ;;  %v2880_v58 = vpop.xlane.xlu0 %2879 }
 0xaac   : > { %v2892_v54 = vmax.f32 %v2880_v58, 1.0 }
 0xaad   : > { %v2850_v28 = vmul.f32 %v4970_v33, %v2841_v45  ;;  %v2891_v33 = vmax.f32 %v2877_v46, 1.0  ;;  %3809 = vrcp.f32 %v2887_v57 }
 0xaae   : > { %3811 = vrcp.f32 %v2890_v21 }
 0xaaf   : > { %v2859_v38 = vadd.f32 %v4995_v15, %v2850_v28  ;;  %v3806_v15 = vpop.eup %3805  ;;  %3813 = vrcp.f32 %v2891_v33 }
 0xab0   : > { %v3808_v0 = vpop.eup %3807  ;;  %v3080_v55 = vperm.slane %v3806_v15, 0 }
 0xab1   : > { %3022 = vmatpush.msrb.mxu1 %v2859_v38  ;;  %v3081_v49 = vperm.slane %v3808_v0, 0 }
 0xab2   : > { %3534 = vmatmul.msk.f32.vlgmr.msrb.gmra.mxu1 %vm1248_vm14, %v4397_v37  ;;  %vm3104_vm14 = vcmask 1041409  }
 0xab3   : > { %v3810_v13 = vpop.eup %3809 }
 0xab4   : > { %v3812_v42 = vpop.eup %3811  ;;  %v3079_v22 = vperm.slane %v3810_v13, 0 }
 0xab5   : > { %v3814_v3 = vpop.eup %3813  ;;  %v3082_v18 = vperm.slane %v3812_v42, 0 }
 0xab6   : > { %v3083_v9 = vperm.slane %v3814_v3, 0 }
 0xafb   : > { %v2883_v52 = vpop.xlane.xlu1 %2882 }
 0xafc   : > { %v2893_v30 = vmax.f32 %v2883_v52, 1.0 }
 0xafe   : > { %v2886_v29 = vpop.xlane.xlu2 %2885  ;;  %3815 = vrcp.f32 %v2893_v30 }
 0xaff   : > { %v2894_v43 = vmax.f32 %v2886_v29, 1.0  ;;  %3817 = vrcp.f32 %v2892_v54 }
 0xb01   : > { %3819 = vrcp.f32 %v2894_v43 }
 0xb04   : > { %v3816_v63 = vpop.eup %3815 }
 0xb05   : > { %v3818_v39 = vpop.eup %3817  ;;  %v3085_v17 = vperm.slane %v3816_v63, 0 }
 0xb06   : > { %v3084_v11 = vperm.slane %v3818_v39, 0 }
 0xb07   : > { %v3820_v12 = vpop.eup %3819 }
 0xb08   : > { %v3086_v20 = vperm.slane %v3820_v12, 0 }
 0xb18   : > { %v2914_v37 = vpop.f32.mrf.mxu0 }
 0xb19   : > { %v3087_v53 = vmul.f32 %v3079_v22, %v2914_v37 }
 0xb1d   : > { %v2958_v59 = vpop.f32.mrf.mxu2 }
 0xb1e   : > { %v3089_v24 = vmul.f32 %v3081_v49, %v2958_v59 }
 0xb20   : > { %v2936_v61 = vpop.f32.mrf.mxu1  ;;  %v3106_v34 = vrot.slane %v3089_v24, 6 }
 0xb21   : > { %v3088_v16 = vmul.f32 %v3080_v55, %v2936_v61 }
 0xb23   : > { %v3103_v50 = vrot.slane %v3088_v16, 7 }
 0xb25   : > { %v3105_v19 = vsel %vm3104_vm14, %v3103_v50, %v3087_v53 }
 0xb26   : > { %v2980_v5 = vpop.f32.mrf.mxu3  ;;  %v3108_v51 = vsel %vm3107_vm8, %v3106_v34, %v3105_v19 }
 0xb27   : > { %v3090_v23 = vmul.f32 %v3082_v18, %v2980_v5 }
 0xb28   : > { %v3002_v31 = vpop.f32.mrf.mxu0 }
 0xb29   : > { %v3091_v4 = vmul.f32 %v3083_v9, %v3002_v31  ;;  %v3109_v44 = vrot.slane %v3090_v23, 5 }
 0xb2b   : > { %v3112_v41 = vrot.slane %v3091_v4, 4  ;;  %v3111_v25 = vsel %vm3110_vm9, %v3109_v44, %v3108_v51 }
 0xb2d   : > { %v3046_v6 = vpop.f32.mrf.mxu2  ;;  %v3114_v62 = vsel %vm3113_vm10, %v3112_v41, %v3111_v25 }
 0xb2e   : > { %v3093_v47 = vmul.f32 %v3085_v17, %v3046_v6  ;;  %v3068_v7 = vpop.f32.mrf.mxu3 }
 0xb2f   : > { %v3024_v40 = vpop.f32.mrf.mxu1  ;;  %v3094_v10 = vmul.f32 %v3086_v20, %v3068_v7 }
 0xb30   : > { %v3092_v8 = vmul.f32 %v3084_v11, %v3024_v40  ;;  %v3118_v2 = vrot.slane %v3093_v47, 2 }
 0xb31   : > { %v3121_v36 = vrot.slane %v3094_v10, 1 }
 0xb32   : > { %v3115_v48 = vrot.slane %v3092_v8, 3 }
 0xb34   : > { %v3117_v27 = vsel %vm3116_vm11, %v3115_v48, %v3114_v62 }
 0xb35   : > { %v3120_v32 = vsel %vm3119_vm12, %v3118_v2, %v3117_v27 }
 0xb36   : > { %v3123_v45 = vsel %vm3122_vm13, %v3121_v36, %v3120_v32 }
 0xb37   : > { %3125 = vst.msk [vmem:[%s551_s25] sm:$0xff] %vm670_vm1, %v3123_v45 }
 0xb38 PF: > { %s5186_s16 = sld [smem:[#allocation17_spill]]  ;;  %s3139_s19 = sshll.u32 %s551_s25, 4  ;;  %s3140_s19 = int_to_ptr.vmem [resolvable:$true] %s3139_s19 }
 0xb39   : > { %s5187_s17 = sld [smem:[#allocation24_spill]] }
 0xb3a   : > { %s5188_s18 = sld [smem:[#allocation7_spill]] }
 0xb3f   : > { %s3137_s26 = scalar_lea.hbm %s5187_s17, %s5186_s16  ;;  %s3841_s1 = scalar_lea.hbm %s5187_s17, 16 }
 0xb40   : > { %s3141_s21 = sshll.u32 %s3137_s26, 4  ;;  %s5190_s28 = sand.u32 1, %s5188_s18   ;;  %s3142_s21 = int_to_ptr.hbm [resolvable:$true] %s3141_s21 }
 0xb41   : > { %s3127_s23 = scalar_lea.sflag [#allocation4], %s5190_s28  ;;  %s3835_s12 = sshra.s32 %s3142_s21, 4  ;;  %s3836_s12 = int_to_ptr.hbm [resolvable:$true] %s3835_s12 }
 0xb42   : > { %s3837_s22 = scalar_lea.hbm %s3836_s12, 8  ;;  %p3842_p7 = scmp.lt.s32.totalorder %s3836_s12, %s5187_s17 }
 0xb43   : > { %p3838_p4 = scmp.ne.s32.totalorder %s3836_s12, %s3837_s22  ;;  %p3843_p8 = scmp.lt.s32.totalorder %s3841_s1, %s3837_s22 }
 0xb45   : > { %p3839_p5 = pnand %p3838_p4, %p4032_p3  ;;  %p3844_p10 = por %p3843_p8, %p3842_p7 }
 0xb47   : > { %p3840_p6 = pneg %p3839_p5 }
 0xb49   : > { %p3845_p11 = pnand %p3844_p10, %p3840_p6 }
 0xb4b   : > { %3848 = shalt.err (!%p3845_p11)
}
 0xb4c   : > { %3585 = dma.vmem_to_hbm [thread:$0]  (%p4032_p3), %s3140_s19, 128, %s3142_s21, %s3127_s23  }
 0xb4d PF: > { %s5191_s29 = sld [smem:[#allocation11_spill]] }
 0xb4e   : > { %s5192_s25 = sld [smem:[#allocation6_spill]] }
 0xb53   : > { %p3591_p12 = scmp.ge.s32.totalorder %s5191_s29, 2 }
 0xb54   : > { %s3153_s11 = sand.u32 1, %s5192_s25  }
 0xb55   : > { %p3588_p13 = pnand %p3591_p12, %p4042_p9  ;;  %s3154_s24 = scalar_lea.sflag [#allocation4], %s3153_s11 }
 0xb57   : > { %p3589_p0 = pneg %p3588_p13 }
 0xb59   : > { %3882 = dma.done.wait (%p3589_p0), %s3154_s24, 128  }
 0xb5a   : > { %3884 = vsyncadd (%p3589_p0), %s3154_s24, 4294967168  ;;  %s25_s28 = sadd.s32 1, %s5191_s29   ;;  %s5194_s21 = sld [smem:[#allocation7_spill]] }
 0xb5b   : > { %p22_p1 = scmp.ge.s32.totalorder %s25_s28, 6   ;;  %s5195_s22 = sld [smem:[#allocation8_spill]] }
 0xb5c   : > { %s5196_s23 = sld [smem:[#allocation16_spill]] }
 0xb5d   : > { %s5197_s24 = sld [smem:[#allocation9_spill]]  ;;  %24 = sbr.rel (!%p22_p1) target bundleno = 13 (0xd), region = 152 }
 0xb5e   : > { %s5198_s25 = sld [smem:[#allocation10_spill]] }
 0xb5f   : > { %s5199_s26 = sld [smem:[#allocation12_spill]] }
 0xb60   : > { %s5200_s27 = sld [smem:[#allocation14_spill]] }
 0xb62   :  { %3160 = vsyncpa [#allocation4], 1 }
 0xb63   :  { %3162 = vsyncpa [#allocation4 + $0x1], 1 }

</bundles_post_ra>
